<compile_context>
chip_gen: v6e
topology: v6e:2x2x1
jax: 0.10.0
libtpu: 0.0.40
codegen_flags: <defaults>
</compile_context>

<pallas_src>
import functools

import jax
import jax.numpy as jnp
from jax.experimental import pallas as pl
from jax.experimental.pallas import tpu as pltpu


GATE_PAD = 128  # each gate's output block is padded to one full 128-lane block


# ------------------------- fused GRU + head kernel ---------------------------
def gru_fused_kernel(seq_len, batch, gate_pad,
                     ids_ref,        # [B, S] int32, SMEM
                     table_ref,      # [vocab, 1, 3P] f32 pre-projected gi table
                     whh_ref,        # [P, 3P] bf16, fused + zero-padded W_hh
                     bhh_n_ref,      # [1, P]  f32, padded b_hh_n
                     meta_ref,       # [B, meta_dim] f32
                     wm_head_ref,    # [meta_dim, OUT] bf16 (= Wm @ W1m @ Wf)
                     wh_head_ref,    # [P, OUT] bf16 (= W1h @ Wf, zero-padded rows)
                     b_head_ref,     # [1, OUT] f32 (= bm@W1m@Wf + b1@Wf + bf)
                     out_ref):       # [B, OUT] f32
    P = gate_pad

    # Hoisted loop invariants (JAX does not CSE broadcast_in_dim).
    whh = whh_ref[...]                                        # [P, 3P] bf16
    bhh_n = jnp.broadcast_to(bhh_n_ref[...], (batch, P))      # [B, P] f32

    # h carried zero-padded to a full 128-lane block; padding stays exactly 0.
    h = jnp.zeros((batch, P), jnp.float32)

    # Fully unrolled recurrence over a small compile-time seq_len.  Only one
    # fused h @ W_hh matmul per step sits on the serial critical path; the
    # input projection is a pre-baked row gather from the SMEM token ids.
    for t in range(seq_len):
        rows = [table_ref[ids_ref[b, t]] for b in range(batch)]   # each [1, 3P]
        gi = jnp.concatenate(rows, axis=0)                        # [B, 3P] f32

        gh = jnp.dot(h.astype(jnp.bfloat16), whh,
                     preferred_element_type=jnp.float32)          # [B, 3P] f32

        # Gate extraction = whole-vreg slices at 128-lane offsets.
        r = jax.nn.sigmoid(gi[:, 0:P] + gh[:, 0:P])
        z = jax.nn.sigmoid(gi[:, P:2 * P] + gh[:, P:2 * P])
        n = jnp.tanh(gi[:, 2 * P:] + r * (gh[:, 2 * P:] + bhh_n))
        h = n + z * (h - n)                                       # == (1-z)*n + z*h

    # Pre-folded, activation-free head: sigmoid(h @ Wh + meta @ Wm + b).
    om = jnp.dot(meta_ref[...].astype(jnp.bfloat16), wm_head_ref[...],
                 preferred_element_type=jnp.float32)
    logit = (jnp.dot(h.astype(jnp.bfloat16), wh_head_ref[...],
                     preferred_element_type=jnp.float32)
             + om + b_head_ref[...])
    out_ref[...] = jax.nn.sigmoid(logit)


# ------------------------- one-time parameter folding ------------------------
def prepare_params(params):
    """Fold / pad raw parameters into the kernel's fused layout (done once)."""
    H = params["w_hh"].shape[0]
    P = GATE_PAD
    assert H <= P, "hidden size must fit inside one 128-lane gate block"
    vocab = params["emb"].shape[0]

    w_ih, w_hh = params["w_ih"], params["w_hh"]
    b_ih, b_hh = params["b_ih"], params["b_hh"]

    # Per-gate splits, gate order (r, z, n).
    wih = [w_ih[:, g * H:(g + 1) * H] for g in range(3)]
    whh = [w_hh[:, g * H:(g + 1) * H] for g in range(3)]
    bih = [b_ih[:, g * H:(g + 1) * H] for g in range(3)]
    bhh = [b_hh[:, g * H:(g + 1) * H] for g in range(3)]

    emb = params["emb"].astype(jnp.float32)

    # Pre-projected, bias-folded input-gate table: row v = concat over gates of
    # the 128-lane-padded (emb[v] @ Wih_g + b_g).  b_r/b_z fold b_ih + b_hh;
    # the n gate carries only b_ih_n (b_hh_n must stay inside r * (...)).
    gate_in_bias = [bih[0] + bhh[0], bih[1] + bhh[1], bih[2]]
    gi_blocks = []
    for g in range(3):
        blk = emb @ wih[g] + gate_in_bias[g]                 # [vocab, H] f32
        gi_blocks.append(jnp.pad(blk, ((0, 0), (0, P - H))))  # [vocab, P]
    table_gi = jnp.concatenate(gi_blocks, axis=1).reshape(vocab, 1, 3 * P)

    # Fused, zero-padded hidden weights: [P, 3P], one 128-lane block per gate.
    whh_pad = jnp.zeros((P, 3 * P), jnp.float32)
    for g in range(3):
        whh_pad = whh_pad.at[:H, g * P:g * P + H].set(whh[g])
    whh_pad = whh_pad.astype(jnp.bfloat16)

    bhh_n_pad = jnp.pad(bhh[2], ((0, 0), (0, P - H)))         # [1, P] f32

    # Activation-free head folded to sigmoid(h @ Wh + meta @ Wm + b).
    wf, w1h, w1m = params["wf"], params["w1h"], params["w1m"]
    w1m_wf = w1m @ wf
    wh_head = jnp.pad(w1h @ wf, ((0, P - H), (0, 0))).astype(jnp.bfloat16)
    wm_head = (params["wm"] @ w1m_wf).astype(jnp.bfloat16)
    b_head = params["bm"] @ w1m_wf + params["b1"] @ wf + params["bf"]

    return {"table_gi": table_gi, "whh_pad": whh_pad, "bhh_n_pad": bhh_n_pad,
            "wm_head": wm_head, "wh_head": wh_head, "b_head": b_head}


# ------------------------------- full forward --------------------------------
def gru_model_forward(prep, input_text, input_meta):
    B, S = input_text.shape
    out_dim = prep["b_head"].shape[1]

    vmem = pl.BlockSpec(memory_space=pltpu.MemorySpace.VMEM)
    smem = pl.BlockSpec(memory_space=pltpu.MemorySpace.SMEM)

    kernel = functools.partial(gru_fused_kernel, S, B, GATE_PAD)
    return pl.pallas_call(
        kernel,
        out_shape=jax.ShapeDtypeStruct((B, out_dim), jnp.float32),
        in_specs=[smem, vmem, vmem, vmem, vmem, vmem, vmem, vmem],
        out_specs=vmem,
        compiler_params=pltpu.CompilerParams(
            vmem_limit_bytes=32 * 1024 * 1024),
    )(input_text.astype(jnp.int32),
      prep["table_gi"], prep["whh_pad"], prep["bhh_n_pad"],
      input_meta.astype(jnp.float32),
      prep["wm_head"], prep["wh_head"], prep["b_head"])


# ----------------------------- pure-JAX reference -----------------------------
def ref_forward(params, input_text, input_meta):
    emb = jnp.take(params["emb"], input_text, axis=0)
    x = jnp.transpose(emb, (1, 0, 2)).astype(jnp.float32)
    H = params["w_hh"].shape[0]

    def step(h, xt):
        gi = xt @ params["w_ih"] + params["b_ih"][0]
        gh = h @ params["w_hh"] + params["b_hh"][0]
        i_r, i_z, i_n = jnp.split(gi, 3, axis=-1)
        h_r, h_z, h_n = jnp.split(gh, 3, axis=-1)
        r = jax.nn.sigmoid(i_r + h_r)
        z = jax.nn.sigmoid(i_z + h_z)
        n = jnp.tanh(i_n + r * h_n)
        return (1.0 - z) * n + z * h, None

    h0 = jnp.zeros((input_text.shape[0], H), jnp.float32)
    h_final, _ = jax.lax.scan(step, h0, x)
    om = input_meta @ params["wm"] + params["bm"][0]
    w1 = jnp.concatenate([params["w1h"], params["w1m"]], axis=0)
    a = jnp.concatenate([h_final, om], axis=1) @ w1 + params["b1"][0]
    o = a @ params["wf"] + params["bf"][0]
    return jax.nn.sigmoid(o)


# ------------------------------ parameter init --------------------------------
def init_params(key, vocab_size, emb_dim, hidden, meta_dim, meta_hidden,
                total_hidden, output_size):
    ks = jax.random.split(key, 12)

    def uni(k, shape, fan_in):
        bound = 1.0 / jnp.sqrt(fan_in)
        return jax.random.uniform(k, shape, jnp.float32, -bound, bound)

    return {
        "emb":  jax.random.normal(ks[0], (vocab_size, emb_dim), jnp.float32),
        # GRU weights stored transposed: [in, 3H] / [H, 3H], gate order (r,z,n)
        "w_ih": uni(ks[1], (emb_dim, 3 * hidden), hidden),
        "w_hh": uni(ks[2], (hidden, 3 * hidden), hidden),
        "b_ih": uni(ks[3], (1, 3 * hidden), hidden),
        "b_hh": uni(ks[4], (1, 3 * hidden), hidden),
        # metafc
        "wm":   uni(ks[5], (meta_dim, meta_hidden), meta_dim),
        "bm":   uni(ks[6], (1, meta_hidden), meta_dim),
        # fc_1 split into hidden-part / meta-part rows (concat split)
        "w1h":  uni(ks[7], (hidden, total_hidden), hidden + meta_hidden),
        "w1m":  uni(ks[8], (meta_hidden, total_hidden), hidden + meta_hidden),
        "b1":   uni(ks[9], (1, total_hidden), hidden + meta_hidden),
        # fc_final
        "wf":   uni(ks[10], (total_hidden, output_size), total_hidden),
        "bf":   uni(ks[11], (1, output_size), total_hidden),
    }


if __name__ == "__main__":
    VOCAB, EMB, HID = 50, 32, 32
    META_DIM, META_HID = 16, 16
    TOTAL_HID, OUT = 32, 4
    BATCH, SEQ = 8, 10

    key = jax.random.PRNGKey(0)
    k_par, k_txt, k_meta = jax.random.split(key, 3)

    params = init_params(k_par, VOCAB, EMB, HID, META_DIM, META_HID,
                         TOTAL_HID, OUT)
    prep = prepare_params(params)                                  # once
    input_text = jax.random.randint(k_txt, (BATCH, SEQ), 0, VOCAB)  # [B, S] ids
    input_meta = jax.random.normal(k_meta, (BATCH, META_DIM), jnp.float32)

    fwd = jax.jit(gru_model_forward)
    out = jax.block_until_ready(fwd(prep, input_text, input_meta))

    ref = jax.block_until_ready(ref_forward(params, input_text, input_meta))
    assert out.shape == (BATCH, OUT)
    # bf16 matmul operands -> relaxed tolerance vs. the f32 reference.
    assert jnp.allclose(out, ref, atol=3e-2, rtol=3e-2), "mismatch vs reference"

    print("KERNEL_OK")
</pallas_src>

<mosaic_0001>
module attributes {stable_mosaic.version = 11 : i64} {
  func.func @gru_fused_kernel(%arg0: memref<8x10xi32, #tpu.memory_space<smem>>, %arg1: memref<50x1x384xf32, #tpu.memory_space<vmem>>, %arg2: memref<128x384xbf16, #tpu.memory_space<vmem>>, %arg3: memref<1x128xf32, #tpu.memory_space<vmem>>, %arg4: memref<8x16xf32, #tpu.memory_space<vmem>>, %arg5: memref<16x4xbf16, #tpu.memory_space<vmem>>, %arg6: memref<128x4xbf16, #tpu.memory_space<vmem>>, %arg7: memref<1x4xf32, #tpu.memory_space<vmem>>, %arg8: memref<8x4xf32, #tpu.memory_space<vmem>>) attributes {dimension_semantics = [], scalar_prefetch = 0 : i64, scratch_operands = 0 : i64, tpu.core_type = #tpu.core_type<tc>} {
    %c0 = arith.constant 0 : index
    %c0_0 = arith.constant 0 : index
    %0 = vector.load %arg2[%c0, %c0_0] : memref<128x384xbf16, #tpu.memory_space<vmem>>, vector<128x384xbf16>
    %c0_1 = arith.constant 0 : index
    %c0_2 = arith.constant 0 : index
    %1 = vector.load %arg3[%c0_1, %c0_2] : memref<1x128xf32, #tpu.memory_space<vmem>>, vector<1x128xf32>
    %2 = vector.shape_cast %1 : vector<1x128xf32> to vector<1x128xf32>
    %3 = vector.broadcast %2 : vector<1x128xf32> to vector<8x128xf32>
    %cst = arith.constant 0.000000e+00 : f32
    %4 = vector.broadcast %cst : f32 to vector<8x128xf32>
    %c0_3 = arith.constant 0 : index
    %c0_4 = arith.constant 0 : index
    %5 = memref.load %arg0[%c0_3, %c0_4] : memref<8x10xi32, #tpu.memory_space<smem>>
    %6 = arith.index_cast %5 : i32 to index
    %c0_5 = arith.constant 0 : index
    %c0_6 = arith.constant 0 : index
    %7 = vector.load %arg1[%6, %c0_5, %c0_6] : memref<50x1x384xf32, #tpu.memory_space<vmem>>, vector<1x1x384xf32>
    %8 = vector.shape_cast %7 : vector<1x1x384xf32> to vector<1x384xf32>
    %c1 = arith.constant 1 : index
    %c0_7 = arith.constant 0 : index
    %9 = memref.load %arg0[%c1, %c0_7] : memref<8x10xi32, #tpu.memory_space<smem>>
    %10 = arith.index_cast %9 : i32 to index
    %c0_8 = arith.constant 0 : index
    %c0_9 = arith.constant 0 : index
    %11 = vector.load %arg1[%10, %c0_8, %c0_9] : memref<50x1x384xf32, #tpu.memory_space<vmem>>, vector<1x1x384xf32>
    %12 = vector.shape_cast %11 : vector<1x1x384xf32> to vector<1x384xf32>
    %c2 = arith.constant 2 : index
    %c0_10 = arith.constant 0 : index
    %13 = memref.load %arg0[%c2, %c0_10] : memref<8x10xi32, #tpu.memory_space<smem>>
    %14 = arith.index_cast %13 : i32 to index
    %c0_11 = arith.constant 0 : index
    %c0_12 = arith.constant 0 : index
    %15 = vector.load %arg1[%14, %c0_11, %c0_12] : memref<50x1x384xf32, #tpu.memory_space<vmem>>, vector<1x1x384xf32>
    %16 = vector.shape_cast %15 : vector<1x1x384xf32> to vector<1x384xf32>
    %c3 = arith.constant 3 : index
    %c0_13 = arith.constant 0 : index
    %17 = memref.load %arg0[%c3, %c0_13] : memref<8x10xi32, #tpu.memory_space<smem>>
    %18 = arith.index_cast %17 : i32 to index
    %c0_14 = arith.constant 0 : index
    %c0_15 = arith.constant 0 : index
    %19 = vector.load %arg1[%18, %c0_14, %c0_15] : memref<50x1x384xf32, #tpu.memory_space<vmem>>, vector<1x1x384xf32>
    %20 = vector.shape_cast %19 : vector<1x1x384xf32> to vector<1x384xf32>
    %c4 = arith.constant 4 : index
    %c0_16 = arith.constant 0 : index
    %21 = memref.load %arg0[%c4, %c0_16] : memref<8x10xi32, #tpu.memory_space<smem>>
    %22 = arith.index_cast %21 : i32 to index
    %c0_17 = arith.constant 0 : index
    %c0_18 = arith.constant 0 : index
    %23 = vector.load %arg1[%22, %c0_17, %c0_18] : memref<50x1x384xf32, #tpu.memory_space<vmem>>, vector<1x1x384xf32>
    %24 = vector.shape_cast %23 : vector<1x1x384xf32> to vector<1x384xf32>
    %c5 = arith.constant 5 : index
    %c0_19 = arith.constant 0 : index
    %25 = memref.load %arg0[%c5, %c0_19] : memref<8x10xi32, #tpu.memory_space<smem>>
    %26 = arith.index_cast %25 : i32 to index
    %c0_20 = arith.constant 0 : index
    %c0_21 = arith.constant 0 : index
    %27 = vector.load %arg1[%26, %c0_20, %c0_21] : memref<50x1x384xf32, #tpu.memory_space<vmem>>, vector<1x1x384xf32>
    %28 = vector.shape_cast %27 : vector<1x1x384xf32> to vector<1x384xf32>
    %c6 = arith.constant 6 : index
    %c0_22 = arith.constant 0 : index
    %29 = memref.load %arg0[%c6, %c0_22] : memref<8x10xi32, #tpu.memory_space<smem>>
    %30 = arith.index_cast %29 : i32 to index
    %c0_23 = arith.constant 0 : index
    %c0_24 = arith.constant 0 : index
    %31 = vector.load %arg1[%30, %c0_23, %c0_24] : memref<50x1x384xf32, #tpu.memory_space<vmem>>, vector<1x1x384xf32>
    %32 = vector.shape_cast %31 : vector<1x1x384xf32> to vector<1x384xf32>
    %c7 = arith.constant 7 : index
    %c0_25 = arith.constant 0 : index
    %33 = memref.load %arg0[%c7, %c0_25] : memref<8x10xi32, #tpu.memory_space<smem>>
    %34 = arith.index_cast %33 : i32 to index
    %c0_26 = arith.constant 0 : index
    %c0_27 = arith.constant 0 : index
    %35 = vector.load %arg1[%34, %c0_26, %c0_27] : memref<50x1x384xf32, #tpu.memory_space<vmem>>, vector<1x1x384xf32>
    %36 = vector.shape_cast %35 : vector<1x1x384xf32> to vector<1x384xf32>
    %37 = tpu.concatenate %8, %12, %16, %20, %24, %28, %32, %36 in 0 : vector<1x384xf32>, vector<1x384xf32>, vector<1x384xf32>, vector<1x384xf32>, vector<1x384xf32>, vector<1x384xf32>, vector<1x384xf32>, vector<1x384xf32> -> vector<8x384xf32>
    %38 = arith.truncf %4 : vector<8x128xf32> to vector<8x128xbf16>
    %cst_28 = arith.constant dense<0.000000e+00> : vector<8x384xf32>
    %39 = tpu.matmul %38, %0, %cst_28 {dimension_numbers = #tpu.dot_dimension_numbers<[1], [0], [0], [1], [0, 0, 1, 1], [], []>} : vector<8x128xbf16>, vector<128x384xbf16>, vector<8x384xf32> -> vector<8x384xf32>
    %40 = vector.extract_strided_slice %37 {offsets = [0, 0], sizes = [8, 128], strides = [1, 1]} : vector<8x384xf32> to vector<8x128xf32>
    %41 = vector.extract_strided_slice %39 {offsets = [0, 0], sizes = [8, 128], strides = [1, 1]} : vector<8x384xf32> to vector<8x128xf32>
    %42 = arith.addf %40, %41 : vector<8x128xf32>
    %43 = arith.negf %42 : vector<8x128xf32>
    %44 = math.exp %43 : vector<8x128xf32>
    %cst_29 = arith.constant 1.000000e+00 : f32
    %45 = vector.broadcast %cst_29 : f32 to vector<8x128xf32>
    %46 = arith.addf %45, %44 : vector<8x128xf32>
    %47 = arith.divf %45, %46 : vector<8x128xf32>
    %48 = vector.extract_strided_slice %37 {offsets = [0, 128], sizes = [8, 128], strides = [1, 1]} : vector<8x384xf32> to vector<8x128xf32>
    %49 = vector.extract_strided_slice %39 {offsets = [0, 128], sizes = [8, 128], strides = [1, 1]} : vector<8x384xf32> to vector<8x128xf32>
    %50 = arith.addf %48, %49 : vector<8x128xf32>
    %51 = arith.negf %50 : vector<8x128xf32>
    %52 = math.exp %51 : vector<8x128xf32>
    %cst_30 = arith.constant 1.000000e+00 : f32
    %53 = vector.broadcast %cst_30 : f32 to vector<8x128xf32>
    %54 = arith.addf %53, %52 : vector<8x128xf32>
    %55 = arith.divf %53, %54 : vector<8x128xf32>
    %56 = vector.extract_strided_slice %37 {offsets = [0, 256], sizes = [8, 128], strides = [1, 1]} : vector<8x384xf32> to vector<8x128xf32>
    %57 = vector.extract_strided_slice %39 {offsets = [0, 256], sizes = [8, 128], strides = [1, 1]} : vector<8x384xf32> to vector<8x128xf32>
    %58 = arith.addf %57, %3 : vector<8x128xf32>
    %59 = arith.mulf %47, %58 : vector<8x128xf32>
    %60 = arith.addf %56, %59 : vector<8x128xf32>
    %61 = math.tanh %60 : vector<8x128xf32>
    %62 = arith.subf %4, %61 : vector<8x128xf32>
    %63 = arith.mulf %55, %62 : vector<8x128xf32>
    %64 = arith.addf %61, %63 : vector<8x128xf32>
    %c0_31 = arith.constant 0 : index
    %c1_32 = arith.constant 1 : index
    %65 = memref.load %arg0[%c0_31, %c1_32] : memref<8x10xi32, #tpu.memory_space<smem>>
    %66 = arith.index_cast %65 : i32 to index
    %c0_33 = arith.constant 0 : index
    %c0_34 = arith.constant 0 : index
    %67 = vector.load %arg1[%66, %c0_33, %c0_34] : memref<50x1x384xf32, #tpu.memory_space<vmem>>, vector<1x1x384xf32>
    %68 = vector.shape_cast %67 : vector<1x1x384xf32> to vector<1x384xf32>
    %c1_35 = arith.constant 1 : index
    %c1_36 = arith.constant 1 : index
    %69 = memref.load %arg0[%c1_35, %c1_36] : memref<8x10xi32, #tpu.memory_space<smem>>
    %70 = arith.index_cast %69 : i32 to index
    %c0_37 = arith.constant 0 : index
    %c0_38 = arith.constant 0 : index
    %71 = vector.load %arg1[%70, %c0_37, %c0_38] : memref<50x1x384xf32, #tpu.memory_space<vmem>>, vector<1x1x384xf32>
    %72 = vector.shape_cast %71 : vector<1x1x384xf32> to vector<1x384xf32>
    %c2_39 = arith.constant 2 : index
    %c1_40 = arith.constant 1 : index
    %73 = memref.load %arg0[%c2_39, %c1_40] : memref<8x10xi32, #tpu.memory_space<smem>>
    %74 = arith.index_cast %73 : i32 to index
    %c0_41 = arith.constant 0 : index
    %c0_42 = arith.constant 0 : index
    %75 = vector.load %arg1[%74, %c0_41, %c0_42] : memref<50x1x384xf32, #tpu.memory_space<vmem>>, vector<1x1x384xf32>
    %76 = vector.shape_cast %75 : vector<1x1x384xf32> to vector<1x384xf32>
    %c3_43 = arith.constant 3 : index
    %c1_44 = arith.constant 1 : index
    %77 = memref.load %arg0[%c3_43, %c1_44] : memref<8x10xi32, #tpu.memory_space<smem>>
    %78 = arith.index_cast %77 : i32 to index
    %c0_45 = arith.constant 0 : index
    %c0_46 = arith.constant 0 : index
    %79 = vector.load %arg1[%78, %c0_45, %c0_46] : memref<50x1x384xf32, #tpu.memory_space<vmem>>, vector<1x1x384xf32>
    %80 = vector.shape_cast %79 : vector<1x1x384xf32> to vector<1x384xf32>
    %c4_47 = arith.constant 4 : index
    %c1_48 = arith.constant 1 : index
    %81 = memref.load %arg0[%c4_47, %c1_48] : memref<8x10xi32, #tpu.memory_space<smem>>
    %82 = arith.index_cast %81 : i32 to index
    %c0_49 = arith.constant 0 : index
    %c0_50 = arith.constant 0 : index
    %83 = vector.load %arg1[%82, %c0_49, %c0_50] : memref<50x1x384xf32, #tpu.memory_space<vmem>>, vector<1x1x384xf32>
    %84 = vector.shape_cast %83 : vector<1x1x384xf32> to vector<1x384xf32>
    %c5_51 = arith.constant 5 : index
    %c1_52 = arith.constant 1 : index
    %85 = memref.load %arg0[%c5_51, %c1_52] : memref<8x10xi32, #tpu.memory_space<smem>>
    %86 = arith.index_cast %85 : i32 to index
    %c0_53 = arith.constant 0 : index
    %c0_54 = arith.constant 0 : index
    %87 = vector.load %arg1[%86, %c0_53, %c0_54] : memref<50x1x384xf32, #tpu.memory_space<vmem>>, vector<1x1x384xf32>
    %88 = vector.shape_cast %87 : vector<1x1x384xf32> to vector<1x384xf32>
    %c6_55 = arith.constant 6 : index
    %c1_56 = arith.constant 1 : index
    %89 = memref.load %arg0[%c6_55, %c1_56] : memref<8x10xi32, #tpu.memory_space<smem>>
    %90 = arith.index_cast %89 : i32 to index
    %c0_57 = arith.constant 0 : index
    %c0_58 = arith.constant 0 : index
    %91 = vector.load %arg1[%90, %c0_57, %c0_58] : memref<50x1x384xf32, #tpu.memory_space<vmem>>, vector<1x1x384xf32>
    %92 = vector.shape_cast %91 : vector<1x1x384xf32> to vector<1x384xf32>
    %c7_59 = arith.constant 7 : index
    %c1_60 = arith.constant 1 : index
    %93 = memref.load %arg0[%c7_59, %c1_60] : memref<8x10xi32, #tpu.memory_space<smem>>
    %94 = arith.index_cast %93 : i32 to index
    %c0_61 = arith.constant 0 : index
    %c0_62 = arith.constant 0 : index
    %95 = vector.load %arg1[%94, %c0_61, %c0_62] : memref<50x1x384xf32, #tpu.memory_space<vmem>>, vector<1x1x384xf32>
    %96 = vector.shape_cast %95 : vector<1x1x384xf32> to vector<1x384xf32>
    %97 = tpu.concatenate %68, %72, %76, %80, %84, %88, %92, %96 in 0 : vector<1x384xf32>, vector<1x384xf32>, vector<1x384xf32>, vector<1x384xf32>, vector<1x384xf32>, vector<1x384xf32>, vector<1x384xf32>, vector<1x384xf32> -> vector<8x384xf32>
    %98 = arith.truncf %64 : vector<8x128xf32> to vector<8x128xbf16>
    %cst_63 = arith.constant dense<0.000000e+00> : vector<8x384xf32>
    %99 = tpu.matmul %98, %0, %cst_63 {dimension_numbers = #tpu.dot_dimension_numbers<[1], [0], [0], [1], [0, 0, 1, 1], [], []>} : vector<8x128xbf16>, vector<128x384xbf16>, vector<8x384xf32> -> vector<8x384xf32>
    %100 = vector.extract_strided_slice %97 {offsets = [0, 0], sizes = [8, 128], strides = [1, 1]} : vector<8x384xf32> to vector<8x128xf32>
    %101 = vector.extract_strided_slice %99 {offsets = [0, 0], sizes = [8, 128], strides = [1, 1]} : vector<8x384xf32> to vector<8x128xf32>
    %102 = arith.addf %100, %101 : vector<8x128xf32>
    %103 = arith.negf %102 : vector<8x128xf32>
    %104 = math.exp %103 : vector<8x128xf32>
    %cst_64 = arith.constant 1.000000e+00 : f32
    %105 = vector.broadcast %cst_64 : f32 to vector<8x128xf32>
    %106 = arith.addf %105, %104 : vector<8x128xf32>
    %107 = arith.divf %105, %106 : vector<8x128xf32>
    %108 = vector.extract_strided_slice %97 {offsets = [0, 128], sizes = [8, 128], strides = [1, 1]} : vector<8x384xf32> to vector<8x128xf32>
    %109 = vector.extract_strided_slice %99 {offsets = [0, 128], sizes = [8, 128], strides = [1, 1]} : vector<8x384xf32> to vector<8x128xf32>
    %110 = arith.addf %108, %109 : vector<8x128xf32>
    %111 = arith.negf %110 : vector<8x128xf32>
    %112 = math.exp %111 : vector<8x128xf32>
    %cst_65 = arith.constant 1.000000e+00 : f32
    %113 = vector.broadcast %cst_65 : f32 to vector<8x128xf32>
    %114 = arith.addf %113, %112 : vector<8x128xf32>
    %115 = arith.divf %113, %114 : vector<8x128xf32>
    %116 = vector.extract_strided_slice %97 {offsets = [0, 256], sizes = [8, 128], strides = [1, 1]} : vector<8x384xf32> to vector<8x128xf32>
    %117 = vector.extract_strided_slice %99 {offsets = [0, 256], sizes = [8, 128], strides = [1, 1]} : vector<8x384xf32> to vector<8x128xf32>
    %118 = arith.addf %117, %3 : vector<8x128xf32>
    %119 = arith.mulf %107, %118 : vector<8x128xf32>
    %120 = arith.addf %116, %119 : vector<8x128xf32>
    %121 = math.tanh %120 : vector<8x128xf32>
    %122 = arith.subf %64, %121 : vector<8x128xf32>
    %123 = arith.mulf %115, %122 : vector<8x128xf32>
    %124 = arith.addf %121, %123 : vector<8x128xf32>
    %c0_66 = arith.constant 0 : index
    %c2_67 = arith.constant 2 : index
    %125 = memref.load %arg0[%c0_66, %c2_67] : memref<8x10xi32, #tpu.memory_space<smem>>
    %126 = arith.index_cast %125 : i32 to index
    %c0_68 = arith.constant 0 : index
    %c0_69 = arith.constant 0 : index
    %127 = vector.load %arg1[%126, %c0_68, %c0_69] : memref<50x1x384xf32, #tpu.memory_space<vmem>>, vector<1x1x384xf32>
    %128 = vector.shape_cast %127 : vector<1x1x384xf32> to vector<1x384xf32>
    %c1_70 = arith.constant 1 : index
    %c2_71 = arith.constant 2 : index
    %129 = memref.load %arg0[%c1_70, %c2_71] : memref<8x10xi32, #tpu.memory_space<smem>>
    %130 = arith.index_cast %129 : i32 to index
    %c0_72 = arith.constant 0 : index
    %c0_73 = arith.constant 0 : index
    %131 = vector.load %arg1[%130, %c0_72, %c0_73] : memref<50x1x384xf32, #tpu.memory_space<vmem>>, vector<1x1x384xf32>
    %132 = vector.shape_cast %131 : vector<1x1x384xf32> to vector<1x384xf32>
    %c2_74 = arith.constant 2 : index
    %c2_75 = arith.constant 2 : index
    %133 = memref.load %arg0[%c2_74, %c2_75] : memref<8x10xi32, #tpu.memory_space<smem>>
    %134 = arith.index_cast %133 : i32 to index
    %c0_76 = arith.constant 0 : index
    %c0_77 = arith.constant 0 : index
    %135 = vector.load %arg1[%134, %c0_76, %c0_77] : memref<50x1x384xf32, #tpu.memory_space<vmem>>, vector<1x1x384xf32>
    %136 = vector.shape_cast %135 : vector<1x1x384xf32> to vector<1x384xf32>
    %c3_78 = arith.constant 3 : index
    %c2_79 = arith.constant 2 : index
    %137 = memref.load %arg0[%c3_78, %c2_79] : memref<8x10xi32, #tpu.memory_space<smem>>
    %138 = arith.index_cast %137 : i32 to index
    %c0_80 = arith.constant 0 : index
    %c0_81 = arith.constant 0 : index
    %139 = vector.load %arg1[%138, %c0_80, %c0_81] : memref<50x1x384xf32, #tpu.memory_space<vmem>>, vector<1x1x384xf32>
    %140 = vector.shape_cast %139 : vector<1x1x384xf32> to vector<1x384xf32>
    %c4_82 = arith.constant 4 : index
    %c2_83 = arith.constant 2 : index
    %141 = memref.load %arg0[%c4_82, %c2_83] : memref<8x10xi32, #tpu.memory_space<smem>>
    %142 = arith.index_cast %141 : i32 to index
    %c0_84 = arith.constant 0 : index
    %c0_85 = arith.constant 0 : index
    %143 = vector.load %arg1[%142, %c0_84, %c0_85] : memref<50x1x384xf32, #tpu.memory_space<vmem>>, vector<1x1x384xf32>
    %144 = vector.shape_cast %143 : vector<1x1x384xf32> to vector<1x384xf32>
    %c5_86 = arith.constant 5 : index
    %c2_87 = arith.constant 2 : index
    %145 = memref.load %arg0[%c5_86, %c2_87] : memref<8x10xi32, #tpu.memory_space<smem>>
    %146 = arith.index_cast %145 : i32 to index
    %c0_88 = arith.constant 0 : index
    %c0_89 = arith.constant 0 : index
    %147 = vector.load %arg1[%146, %c0_88, %c0_89] : memref<50x1x384xf32, #tpu.memory_space<vmem>>, vector<1x1x384xf32>
    %148 = vector.shape_cast %147 : vector<1x1x384xf32> to vector<1x384xf32>
    %c6_90 = arith.constant 6 : index
    %c2_91 = arith.constant 2 : index
    %149 = memref.load %arg0[%c6_90, %c2_91] : memref<8x10xi32, #tpu.memory_space<smem>>
    %150 = arith.index_cast %149 : i32 to index
    %c0_92 = arith.constant 0 : index
    %c0_93 = arith.constant 0 : index
    %151 = vector.load %arg1[%150, %c0_92, %c0_93] : memref<50x1x384xf32, #tpu.memory_space<vmem>>, vector<1x1x384xf32>
    %152 = vector.shape_cast %151 : vector<1x1x384xf32> to vector<1x384xf32>
    %c7_94 = arith.constant 7 : index
    %c2_95 = arith.constant 2 : index
    %153 = memref.load %arg0[%c7_94, %c2_95] : memref<8x10xi32, #tpu.memory_space<smem>>
    %154 = arith.index_cast %153 : i32 to index
    %c0_96 = arith.constant 0 : index
    %c0_97 = arith.constant 0 : index
    %155 = vector.load %arg1[%154, %c0_96, %c0_97] : memref<50x1x384xf32, #tpu.memory_space<vmem>>, vector<1x1x384xf32>
    %156 = vector.shape_cast %155 : vector<1x1x384xf32> to vector<1x384xf32>
    %157 = tpu.concatenate %128, %132, %136, %140, %144, %148, %152, %156 in 0 : vector<1x384xf32>, vector<1x384xf32>, vector<1x384xf32>, vector<1x384xf32>, vector<1x384xf32>, vector<1x384xf32>, vector<1x384xf32>, vector<1x384xf32> -> vector<8x384xf32>
    %158 = arith.truncf %124 : vector<8x128xf32> to vector<8x128xbf16>
    %cst_98 = arith.constant dense<0.000000e+00> : vector<8x384xf32>
    %159 = tpu.matmul %158, %0, %cst_98 {dimension_numbers = #tpu.dot_dimension_numbers<[1], [0], [0], [1], [0, 0, 1, 1], [], []>} : vector<8x128xbf16>, vector<128x384xbf16>, vector<8x384xf32> -> vector<8x384xf32>
    %160 = vector.extract_strided_slice %157 {offsets = [0, 0], sizes = [8, 128], strides = [1, 1]} : vector<8x384xf32> to vector<8x128xf32>
    %161 = vector.extract_strided_slice %159 {offsets = [0, 0], sizes = [8, 128], strides = [1, 1]} : vector<8x384xf32> to vector<8x128xf32>
    %162 = arith.addf %160, %161 : vector<8x128xf32>
    %163 = arith.negf %162 : vector<8x128xf32>
    %164 = math.exp %163 : vector<8x128xf32>
    %cst_99 = arith.constant 1.000000e+00 : f32
    %165 = vector.broadcast %cst_99 : f32 to vector<8x128xf32>
    %166 = arith.addf %165, %164 : vector<8x128xf32>
    %167 = arith.divf %165, %166 : vector<8x128xf32>
    %168 = vector.extract_strided_slice %157 {offsets = [0, 128], sizes = [8, 128], strides = [1, 1]} : vector<8x384xf32> to vector<8x128xf32>
    %169 = vector.extract_strided_slice %159 {offsets = [0, 128], sizes = [8, 128], strides = [1, 1]} : vector<8x384xf32> to vector<8x128xf32>
    %170 = arith.addf %168, %169 : vector<8x128xf32>
    %171 = arith.negf %170 : vector<8x128xf32>
    %172 = math.exp %171 : vector<8x128xf32>
    %cst_100 = arith.constant 1.000000e+00 : f32
    %173 = vector.broadcast %cst_100 : f32 to vector<8x128xf32>
    %174 = arith.addf %173, %172 : vector<8x128xf32>
    %175 = arith.divf %173, %174 : vector<8x128xf32>
    %176 = vector.extract_strided_slice %157 {offsets = [0, 256], sizes = [8, 128], strides = [1, 1]} : vector<8x384xf32> to vector<8x128xf32>
    %177 = vector.extract_strided_slice %159 {offsets = [0, 256], sizes = [8, 128], strides = [1, 1]} : vector<8x384xf32> to vector<8x128xf32>
    %178 = arith.addf %177, %3 : vector<8x128xf32>
    %179 = arith.mulf %167, %178 : vector<8x128xf32>
    %180 = arith.addf %176, %179 : vector<8x128xf32>
    %181 = math.tanh %180 : vector<8x128xf32>
    %182 = arith.subf %124, %181 : vector<8x128xf32>
    %183 = arith.mulf %175, %182 : vector<8x128xf32>
    %184 = arith.addf %181, %183 : vector<8x128xf32>
    %c0_101 = arith.constant 0 : index
    %c3_102 = arith.constant 3 : index
    %185 = memref.load %arg0[%c0_101, %c3_102] : memref<8x10xi32, #tpu.memory_space<smem>>
    %186 = arith.index_cast %185 : i32 to index
    %c0_103 = arith.constant 0 : index
    %c0_104 = arith.constant 0 : index
    %187 = vector.load %arg1[%186, %c0_103, %c0_104] : memref<50x1x384xf32, #tpu.memory_space<vmem>>, vector<1x1x384xf32>
    %188 = vector.shape_cast %187 : vector<1x1x384xf32> to vector<1x384xf32>
    %c1_105 = arith.constant 1 : index
    %c3_106 = arith.constant 3 : index
    %189 = memref.load %arg0[%c1_105, %c3_106] : memref<8x10xi32, #tpu.memory_space<smem>>
    %190 = arith.index_cast %189 : i32 to index
    %c0_107 = arith.constant 0 : index
    %c0_108 = arith.constant 0 : index
    %191 = vector.load %arg1[%190, %c0_107, %c0_108] : memref<50x1x384xf32, #tpu.memory_space<vmem>>, vector<1x1x384xf32>
    %192 = vector.shape_cast %191 : vector<1x1x384xf32> to vector<1x384xf32>
    %c2_109 = arith.constant 2 : index
    %c3_110 = arith.constant 3 : index
    %193 = memref.load %arg0[%c2_109, %c3_110] : memref<8x10xi32, #tpu.memory_space<smem>>
    %194 = arith.index_cast %193 : i32 to index
    %c0_111 = arith.constant 0 : index
    %c0_112 = arith.constant 0 : index
    %195 = vector.load %arg1[%194, %c0_111, %c0_112] : memref<50x1x384xf32, #tpu.memory_space<vmem>>, vector<1x1x384xf32>
    %196 = vector.shape_cast %195 : vector<1x1x384xf32> to vector<1x384xf32>
    %c3_113 = arith.constant 3 : index
    %c3_114 = arith.constant 3 : index
    %197 = memref.load %arg0[%c3_113, %c3_114] : memref<8x10xi32, #tpu.memory_space<smem>>
    %198 = arith.index_cast %197 : i32 to index
    %c0_115 = arith.constant 0 : index
    %c0_116 = arith.constant 0 : index
    %199 = vector.load %arg1[%198, %c0_115, %c0_116] : memref<50x1x384xf32, #tpu.memory_space<vmem>>, vector<1x1x384xf32>
    %200 = vector.shape_cast %199 : vector<1x1x384xf32> to vector<1x384xf32>
    %c4_117 = arith.constant 4 : index
    %c3_118 = arith.constant 3 : index
    %201 = memref.load %arg0[%c4_117, %c3_118] : memref<8x10xi32, #tpu.memory_space<smem>>
    %202 = arith.index_cast %201 : i32 to index
    %c0_119 = arith.constant 0 : index
    %c0_120 = arith.constant 0 : index
    %203 = vector.load %arg1[%202, %c0_119, %c0_120] : memref<50x1x384xf32, #tpu.memory_space<vmem>>, vector<1x1x384xf32>
    %204 = vector.shape_cast %203 : vector<1x1x384xf32> to vector<1x384xf32>
    %c5_121 = arith.constant 5 : index
    %c3_122 = arith.constant 3 : index
    %205 = memref.load %arg0[%c5_121, %c3_122] : memref<8x10xi32, #tpu.memory_space<smem>>
    %206 = arith.index_cast %205 : i32 to index
    %c0_123 = arith.constant 0 : index
    %c0_124 = arith.constant 0 : index
    %207 = vector.load %arg1[%206, %c0_123, %c0_124] : memref<50x1x384xf32, #tpu.memory_space<vmem>>, vector<1x1x384xf32>
    %208 = vector.shape_cast %207 : vector<1x1x384xf32> to vector<1x384xf32>
    %c6_125 = arith.constant 6 : index
    %c3_126 = arith.constant 3 : index
    %209 = memref.load %arg0[%c6_125, %c3_126] : memref<8x10xi32, #tpu.memory_space<smem>>
    %210 = arith.index_cast %209 : i32 to index
    %c0_127 = arith.constant 0 : index
    %c0_128 = arith.constant 0 : index
    %211 = vector.load %arg1[%210, %c0_127, %c0_128] : memref<50x1x384xf32, #tpu.memory_space<vmem>>, vector<1x1x384xf32>
    %212 = vector.shape_cast %211 : vector<1x1x384xf32> to vector<1x384xf32>
    %c7_129 = arith.constant 7 : index
    %c3_130 = arith.constant 3 : index
    %213 = memref.load %arg0[%c7_129, %c3_130] : memref<8x10xi32, #tpu.memory_space<smem>>
    %214 = arith.index_cast %213 : i32 to index
    %c0_131 = arith.constant 0 : index
    %c0_132 = arith.constant 0 : index
    %215 = vector.load %arg1[%214, %c0_131, %c0_132] : memref<50x1x384xf32, #tpu.memory_space<vmem>>, vector<1x1x384xf32>
    %216 = vector.shape_cast %215 : vector<1x1x384xf32> to vector<1x384xf32>
    %217 = tpu.concatenate %188, %192, %196, %200, %204, %208, %212, %216 in 0 : vector<1x384xf32>, vector<1x384xf32>, vector<1x384xf32>, vector<1x384xf32>, vector<1x384xf32>, vector<1x384xf32>, vector<1x384xf32>, vector<1x384xf32> -> vector<8x384xf32>
    %218 = arith.truncf %184 : vector<8x128xf32> to vector<8x128xbf16>
    %cst_133 = arith.constant dense<0.000000e+00> : vector<8x384xf32>
    %219 = tpu.matmul %218, %0, %cst_133 {dimension_numbers = #tpu.dot_dimension_numbers<[1], [0], [0], [1], [0, 0, 1, 1], [], []>} : vector<8x128xbf16>, vector<128x384xbf16>, vector<8x384xf32> -> vector<8x384xf32>
    %220 = vector.extract_strided_slice %217 {offsets = [0, 0], sizes = [8, 128], strides = [1, 1]} : vector<8x384xf32> to vector<8x128xf32>
    %221 = vector.extract_strided_slice %219 {offsets = [0, 0], sizes = [8, 128], strides = [1, 1]} : vector<8x384xf32> to vector<8x128xf32>
    %222 = arith.addf %220, %221 : vector<8x128xf32>
    %223 = arith.negf %222 : vector<8x128xf32>
    %224 = math.exp %223 : vector<8x128xf32>
    %cst_134 = arith.constant 1.000000e+00 : f32
    %225 = vector.broadcast %cst_134 : f32 to vector<8x128xf32>
    %226 = arith.addf %225, %224 : vector<8x128xf32>
    %227 = arith.divf %225, %226 : vector<8x128xf32>
    %228 = vector.extract_strided_slice %217 {offsets = [0, 128], sizes = [8, 128], strides = [1, 1]} : vector<8x384xf32> to vector<8x128xf32>
    %229 = vector.extract_strided_slice %219 {offsets = [0, 128], sizes = [8, 128], strides = [1, 1]} : vector<8x384xf32> to vector<8x128xf32>
    %230 = arith.addf %228, %229 : vector<8x128xf32>
    %231 = arith.negf %230 : vector<8x128xf32>
    %232 = math.exp %231 : vector<8x128xf32>
    %cst_135 = arith.constant 1.000000e+00 : f32
    %233 = vector.broadcast %cst_135 : f32 to vector<8x128xf32>
    %234 = arith.addf %233, %232 : vector<8x128xf32>
    %235 = arith.divf %233, %234 : vector<8x128xf32>
    %236 = vector.extract_strided_slice %217 {offsets = [0, 256], sizes = [8, 128], strides = [1, 1]} : vector<8x384xf32> to vector<8x128xf32>
    %237 = vector.extract_strided_slice %219 {offsets = [0, 256], sizes = [8, 128], strides = [1, 1]} : vector<8x384xf32> to vector<8x128xf32>
    %238 = arith.addf %237, %3 : vector<8x128xf32>
    %239 = arith.mulf %227, %238 : vector<8x128xf32>
    %240 = arith.addf %236, %239 : vector<8x128xf32>
    %241 = math.tanh %240 : vector<8x128xf32>
    %242 = arith.subf %184, %241 : vector<8x128xf32>
    %243 = arith.mulf %235, %242 : vector<8x128xf32>
    %244 = arith.addf %241, %243 : vector<8x128xf32>
    %c0_136 = arith.constant 0 : index
    %c4_137 = arith.constant 4 : index
    %245 = memref.load %arg0[%c0_136, %c4_137] : memref<8x10xi32, #tpu.memory_space<smem>>
    %246 = arith.index_cast %245 : i32 to index
    %c0_138 = arith.constant 0 : index
    %c0_139 = arith.constant 0 : index
    %247 = vector.load %arg1[%246, %c0_138, %c0_139] : memref<50x1x384xf32, #tpu.memory_space<vmem>>, vector<1x1x384xf32>
    %248 = vector.shape_cast %247 : vector<1x1x384xf32> to vector<1x384xf32>
    %c1_140 = arith.constant 1 : index
    %c4_141 = arith.constant 4 : index
    %249 = memref.load %arg0[%c1_140, %c4_141] : memref<8x10xi32, #tpu.memory_space<smem>>
    %250 = arith.index_cast %249 : i32 to index
    %c0_142 = arith.constant 0 : index
    %c0_143 = arith.constant 0 : index
    %251 = vector.load %arg1[%250, %c0_142, %c0_143] : memref<50x1x384xf32, #tpu.memory_space<vmem>>, vector<1x1x384xf32>
    %252 = vector.shape_cast %251 : vector<1x1x384xf32> to vector<1x384xf32>
    %c2_144 = arith.constant 2 : index
    %c4_145 = arith.constant 4 : index
    %253 = memref.load %arg0[%c2_144, %c4_145] : memref<8x10xi32, #tpu.memory_space<smem>>
    %254 = arith.index_cast %253 : i32 to index
    %c0_146 = arith.constant 0 : index
    %c0_147 = arith.constant 0 : index
    %255 = vector.load %arg1[%254, %c0_146, %c0_147] : memref<50x1x384xf32, #tpu.memory_space<vmem>>, vector<1x1x384xf32>
    %256 = vector.shape_cast %255 : vector<1x1x384xf32> to vector<1x384xf32>
    %c3_148 = arith.constant 3 : index
    %c4_149 = arith.constant 4 : index
    %257 = memref.load %arg0[%c3_148, %c4_149] : memref<8x10xi32, #tpu.memory_space<smem>>
    %258 = arith.index_cast %257 : i32 to index
    %c0_150 = arith.constant 0 : index
    %c0_151 = arith.constant 0 : index
    %259 = vector.load %arg1[%258, %c0_150, %c0_151] : memref<50x1x384xf32, #tpu.memory_space<vmem>>, vector<1x1x384xf32>
    %260 = vector.shape_cast %259 : vector<1x1x384xf32> to vector<1x384xf32>
    %c4_152 = arith.constant 4 : index
    %c4_153 = arith.constant 4 : index
    %261 = memref.load %arg0[%c4_152, %c4_153] : memref<8x10xi32, #tpu.memory_space<smem>>
    %262 = arith.index_cast %261 : i32 to index
    %c0_154 = arith.constant 0 : index
    %c0_155 = arith.constant 0 : index
    %263 = vector.load %arg1[%262, %c0_154, %c0_155] : memref<50x1x384xf32, #tpu.memory_space<vmem>>, vector<1x1x384xf32>
    %264 = vector.shape_cast %263 : vector<1x1x384xf32> to vector<1x384xf32>
    %c5_156 = arith.constant 5 : index
    %c4_157 = arith.constant 4 : index
    %265 = memref.load %arg0[%c5_156, %c4_157] : memref<8x10xi32, #tpu.memory_space<smem>>
    %266 = arith.index_cast %265 : i32 to index
    %c0_158 = arith.constant 0 : index
    %c0_159 = arith.constant 0 : index
    %267 = vector.load %arg1[%266, %c0_158, %c0_159] : memref<50x1x384xf32, #tpu.memory_space<vmem>>, vector<1x1x384xf32>
    %268 = vector.shape_cast %267 : vector<1x1x384xf32> to vector<1x384xf32>
    %c6_160 = arith.constant 6 : index
    %c4_161 = arith.constant 4 : index
    %269 = memref.load %arg0[%c6_160, %c4_161] : memref<8x10xi32, #tpu.memory_space<smem>>
    %270 = arith.index_cast %269 : i32 to index
    %c0_162 = arith.constant 0 : index
    %c0_163 = arith.constant 0 : index
    %271 = vector.load %arg1[%270, %c0_162, %c0_163] : memref<50x1x384xf32, #tpu.memory_space<vmem>>, vector<1x1x384xf32>
    %272 = vector.shape_cast %271 : vector<1x1x384xf32> to vector<1x384xf32>
    %c7_164 = arith.constant 7 : index
    %c4_165 = arith.constant 4 : index
    %273 = memref.load %arg0[%c7_164, %c4_165] : memref<8x10xi32, #tpu.memory_space<smem>>
    %274 = arith.index_cast %273 : i32 to index
    %c0_166 = arith.constant 0 : index
    %c0_167 = arith.constant 0 : index
    %275 = vector.load %arg1[%274, %c0_166, %c0_167] : memref<50x1x384xf32, #tpu.memory_space<vmem>>, vector<1x1x384xf32>
    %276 = vector.shape_cast %275 : vector<1x1x384xf32> to vector<1x384xf32>
    %277 = tpu.concatenate %248, %252, %256, %260, %264, %268, %272, %276 in 0 : vector<1x384xf32>, vector<1x384xf32>, vector<1x384xf32>, vector<1x384xf32>, vector<1x384xf32>, vector<1x384xf32>, vector<1x384xf32>, vector<1x384xf32> -> vector<8x384xf32>
    %278 = arith.truncf %244 : vector<8x128xf32> to vector<8x128xbf16>
    %cst_168 = arith.constant dense<0.000000e+00> : vector<8x384xf32>
    %279 = tpu.matmul %278, %0, %cst_168 {dimension_numbers = #tpu.dot_dimension_numbers<[1], [0], [0], [1], [0, 0, 1, 1], [], []>} : vector<8x128xbf16>, vector<128x384xbf16>, vector<8x384xf32> -> vector<8x384xf32>
    %280 = vector.extract_strided_slice %277 {offsets = [0, 0], sizes = [8, 128], strides = [1, 1]} : vector<8x384xf32> to vector<8x128xf32>
    %281 = vector.extract_strided_slice %279 {offsets = [0, 0], sizes = [8, 128], strides = [1, 1]} : vector<8x384xf32> to vector<8x128xf32>
    %282 = arith.addf %280, %281 : vector<8x128xf32>
    %283 = arith.negf %282 : vector<8x128xf32>
    %284 = math.exp %283 : vector<8x128xf32>
    %cst_169 = arith.constant 1.000000e+00 : f32
    %285 = vector.broadcast %cst_169 : f32 to vector<8x128xf32>
    %286 = arith.addf %285, %284 : vector<8x128xf32>
    %287 = arith.divf %285, %286 : vector<8x128xf32>
    %288 = vector.extract_strided_slice %277 {offsets = [0, 128], sizes = [8, 128], strides = [1, 1]} : vector<8x384xf32> to vector<8x128xf32>
    %289 = vector.extract_strided_slice %279 {offsets = [0, 128], sizes = [8, 128], strides = [1, 1]} : vector<8x384xf32> to vector<8x128xf32>
    %290 = arith.addf %288, %289 : vector<8x128xf32>
    %291 = arith.negf %290 : vector<8x128xf32>
    %292 = math.exp %291 : vector<8x128xf32>
    %cst_170 = arith.constant 1.000000e+00 : f32
    %293 = vector.broadcast %cst_170 : f32 to vector<8x128xf32>
    %294 = arith.addf %293, %292 : vector<8x128xf32>
    %295 = arith.divf %293, %294 : vector<8x128xf32>
    %296 = vector.extract_strided_slice %277 {offsets = [0, 256], sizes = [8, 128], strides = [1, 1]} : vector<8x384xf32> to vector<8x128xf32>
    %297 = vector.extract_strided_slice %279 {offsets = [0, 256], sizes = [8, 128], strides = [1, 1]} : vector<8x384xf32> to vector<8x128xf32>
    %298 = arith.addf %297, %3 : vector<8x128xf32>
    %299 = arith.mulf %287, %298 : vector<8x128xf32>
    %300 = arith.addf %296, %299 : vector<8x128xf32>
    %301 = math.tanh %300 : vector<8x128xf32>
    %302 = arith.subf %244, %301 : vector<8x128xf32>
    %303 = arith.mulf %295, %302 : vector<8x128xf32>
    %304 = arith.addf %301, %303 : vector<8x128xf32>
    %c0_171 = arith.constant 0 : index
    %c5_172 = arith.constant 5 : index
    %305 = memref.load %arg0[%c0_171, %c5_172] : memref<8x10xi32, #tpu.memory_space<smem>>
    %306 = arith.index_cast %305 : i32 to index
    %c0_173 = arith.constant 0 : index
    %c0_174 = arith.constant 0 : index
    %307 = vector.load %arg1[%306, %c0_173, %c0_174] : memref<50x1x384xf32, #tpu.memory_space<vmem>>, vector<1x1x384xf32>
    %308 = vector.shape_cast %307 : vector<1x1x384xf32> to vector<1x384xf32>
    %c1_175 = arith.constant 1 : index
    %c5_176 = arith.constant 5 : index
    %309 = memref.load %arg0[%c1_175, %c5_176] : memref<8x10xi32, #tpu.memory_space<smem>>
    %310 = arith.index_cast %309 : i32 to index
    %c0_177 = arith.constant 0 : index
    %c0_178 = arith.constant 0 : index
    %311 = vector.load %arg1[%310, %c0_177, %c0_178] : memref<50x1x384xf32, #tpu.memory_space<vmem>>, vector<1x1x384xf32>
    %312 = vector.shape_cast %311 : vector<1x1x384xf32> to vector<1x384xf32>
    %c2_179 = arith.constant 2 : index
    %c5_180 = arith.constant 5 : index
    %313 = memref.load %arg0[%c2_179, %c5_180] : memref<8x10xi32, #tpu.memory_space<smem>>
    %314 = arith.index_cast %313 : i32 to index
    %c0_181 = arith.constant 0 : index
    %c0_182 = arith.constant 0 : index
    %315 = vector.load %arg1[%314, %c0_181, %c0_182] : memref<50x1x384xf32, #tpu.memory_space<vmem>>, vector<1x1x384xf32>
    %316 = vector.shape_cast %315 : vector<1x1x384xf32> to vector<1x384xf32>
    %c3_183 = arith.constant 3 : index
    %c5_184 = arith.constant 5 : index
    %317 = memref.load %arg0[%c3_183, %c5_184] : memref<8x10xi32, #tpu.memory_space<smem>>
    %318 = arith.index_cast %317 : i32 to index
    %c0_185 = arith.constant 0 : index
    %c0_186 = arith.constant 0 : index
    %319 = vector.load %arg1[%318, %c0_185, %c0_186] : memref<50x1x384xf32, #tpu.memory_space<vmem>>, vector<1x1x384xf32>
    %320 = vector.shape_cast %319 : vector<1x1x384xf32> to vector<1x384xf32>
    %c4_187 = arith.constant 4 : index
    %c5_188 = arith.constant 5 : index
    %321 = memref.load %arg0[%c4_187, %c5_188] : memref<8x10xi32, #tpu.memory_space<smem>>
    %322 = arith.index_cast %321 : i32 to index
    %c0_189 = arith.constant 0 : index
    %c0_190 = arith.constant 0 : index
    %323 = vector.load %arg1[%322, %c0_189, %c0_190] : memref<50x1x384xf32, #tpu.memory_space<vmem>>, vector<1x1x384xf32>
    %324 = vector.shape_cast %323 : vector<1x1x384xf32> to vector<1x384xf32>
    %c5_191 = arith.constant 5 : index
    %c5_192 = arith.constant 5 : index
    %325 = memref.load %arg0[%c5_191, %c5_192] : memref<8x10xi32, #tpu.memory_space<smem>>
    %326 = arith.index_cast %325 : i32 to index
    %c0_193 = arith.constant 0 : index
    %c0_194 = arith.constant 0 : index
    %327 = vector.load %arg1[%326, %c0_193, %c0_194] : memref<50x1x384xf32, #tpu.memory_space<vmem>>, vector<1x1x384xf32>
    %328 = vector.shape_cast %327 : vector<1x1x384xf32> to vector<1x384xf32>
    %c6_195 = arith.constant 6 : index
    %c5_196 = arith.constant 5 : index
    %329 = memref.load %arg0[%c6_195, %c5_196] : memref<8x10xi32, #tpu.memory_space<smem>>
    %330 = arith.index_cast %329 : i32 to index
    %c0_197 = arith.constant 0 : index
    %c0_198 = arith.constant 0 : index
    %331 = vector.load %arg1[%330, %c0_197, %c0_198] : memref<50x1x384xf32, #tpu.memory_space<vmem>>, vector<1x1x384xf32>
    %332 = vector.shape_cast %331 : vector<1x1x384xf32> to vector<1x384xf32>
    %c7_199 = arith.constant 7 : index
    %c5_200 = arith.constant 5 : index
    %333 = memref.load %arg0[%c7_199, %c5_200] : memref<8x10xi32, #tpu.memory_space<smem>>
    %334 = arith.index_cast %333 : i32 to index
    %c0_201 = arith.constant 0 : index
    %c0_202 = arith.constant 0 : index
    %335 = vector.load %arg1[%334, %c0_201, %c0_202] : memref<50x1x384xf32, #tpu.memory_space<vmem>>, vector<1x1x384xf32>
    %336 = vector.shape_cast %335 : vector<1x1x384xf32> to vector<1x384xf32>
    %337 = tpu.concatenate %308, %312, %316, %320, %324, %328, %332, %336 in 0 : vector<1x384xf32>, vector<1x384xf32>, vector<1x384xf32>, vector<1x384xf32>, vector<1x384xf32>, vector<1x384xf32>, vector<1x384xf32>, vector<1x384xf32> -> vector<8x384xf32>
    %338 = arith.truncf %304 : vector<8x128xf32> to vector<8x128xbf16>
    %cst_203 = arith.constant dense<0.000000e+00> : vector<8x384xf32>
    %339 = tpu.matmul %338, %0, %cst_203 {dimension_numbers = #tpu.dot_dimension_numbers<[1], [0], [0], [1], [0, 0, 1, 1], [], []>} : vector<8x128xbf16>, vector<128x384xbf16>, vector<8x384xf32> -> vector<8x384xf32>
    %340 = vector.extract_strided_slice %337 {offsets = [0, 0], sizes = [8, 128], strides = [1, 1]} : vector<8x384xf32> to vector<8x128xf32>
    %341 = vector.extract_strided_slice %339 {offsets = [0, 0], sizes = [8, 128], strides = [1, 1]} : vector<8x384xf32> to vector<8x128xf32>
    %342 = arith.addf %340, %341 : vector<8x128xf32>
    %343 = arith.negf %342 : vector<8x128xf32>
    %344 = math.exp %343 : vector<8x128xf32>
    %cst_204 = arith.constant 1.000000e+00 : f32
    %345 = vector.broadcast %cst_204 : f32 to vector<8x128xf32>
    %346 = arith.addf %345, %344 : vector<8x128xf32>
    %347 = arith.divf %345, %346 : vector<8x128xf32>
    %348 = vector.extract_strided_slice %337 {offsets = [0, 128], sizes = [8, 128], strides = [1, 1]} : vector<8x384xf32> to vector<8x128xf32>
    %349 = vector.extract_strided_slice %339 {offsets = [0, 128], sizes = [8, 128], strides = [1, 1]} : vector<8x384xf32> to vector<8x128xf32>
    %350 = arith.addf %348, %349 : vector<8x128xf32>
    %351 = arith.negf %350 : vector<8x128xf32>
    %352 = math.exp %351 : vector<8x128xf32>
    %cst_205 = arith.constant 1.000000e+00 : f32
    %353 = vector.broadcast %cst_205 : f32 to vector<8x128xf32>
    %354 = arith.addf %353, %352 : vector<8x128xf32>
    %355 = arith.divf %353, %354 : vector<8x128xf32>
    %356 = vector.extract_strided_slice %337 {offsets = [0, 256], sizes = [8, 128], strides = [1, 1]} : vector<8x384xf32> to vector<8x128xf32>
    %357 = vector.extract_strided_slice %339 {offsets = [0, 256], sizes = [8, 128], strides = [1, 1]} : vector<8x384xf32> to vector<8x128xf32>
    %358 = arith.addf %357, %3 : vector<8x128xf32>
    %359 = arith.mulf %347, %358 : vector<8x128xf32>
    %360 = arith.addf %356, %359 : vector<8x128xf32>
    %361 = math.tanh %360 : vector<8x128xf32>
    %362 = arith.subf %304, %361 : vector<8x128xf32>
    %363 = arith.mulf %355, %362 : vector<8x128xf32>
    %364 = arith.addf %361, %363 : vector<8x128xf32>
    %c0_206 = arith.constant 0 : index
    %c6_207 = arith.constant 6 : index
    %365 = memref.load %arg0[%c0_206, %c6_207] : memref<8x10xi32, #tpu.memory_space<smem>>
    %366 = arith.index_cast %365 : i32 to index
    %c0_208 = arith.constant 0 : index
    %c0_209 = arith.constant 0 : index
    %367 = vector.load %arg1[%366, %c0_208, %c0_209] : memref<50x1x384xf32, #tpu.memory_space<vmem>>, vector<1x1x384xf32>
    %368 = vector.shape_cast %367 : vector<1x1x384xf32> to vector<1x384xf32>
    %c1_210 = arith.constant 1 : index
    %c6_211 = arith.constant 6 : index
    %369 = memref.load %arg0[%c1_210, %c6_211] : memref<8x10xi32, #tpu.memory_space<smem>>
    %370 = arith.index_cast %369 : i32 to index
    %c0_212 = arith.constant 0 : index
    %c0_213 = arith.constant 0 : index
    %371 = vector.load %arg1[%370, %c0_212, %c0_213] : memref<50x1x384xf32, #tpu.memory_space<vmem>>, vector<1x1x384xf32>
    %372 = vector.shape_cast %371 : vector<1x1x384xf32> to vector<1x384xf32>
    %c2_214 = arith.constant 2 : index
    %c6_215 = arith.constant 6 : index
    %373 = memref.load %arg0[%c2_214, %c6_215] : memref<8x10xi32, #tpu.memory_space<smem>>
    %374 = arith.index_cast %373 : i32 to index
    %c0_216 = arith.constant 0 : index
    %c0_217 = arith.constant 0 : index
    %375 = vector.load %arg1[%374, %c0_216, %c0_217] : memref<50x1x384xf32, #tpu.memory_space<vmem>>, vector<1x1x384xf32>
    %376 = vector.shape_cast %375 : vector<1x1x384xf32> to vector<1x384xf32>
    %c3_218 = arith.constant 3 : index
    %c6_219 = arith.constant 6 : index
    %377 = memref.load %arg0[%c3_218, %c6_219] : memref<8x10xi32, #tpu.memory_space<smem>>
    %378 = arith.index_cast %377 : i32 to index
    %c0_220 = arith.constant 0 : index
    %c0_221 = arith.constant 0 : index
    %379 = vector.load %arg1[%378, %c0_220, %c0_221] : memref<50x1x384xf32, #tpu.memory_space<vmem>>, vector<1x1x384xf32>
    %380 = vector.shape_cast %379 : vector<1x1x384xf32> to vector<1x384xf32>
    %c4_222 = arith.constant 4 : index
    %c6_223 = arith.constant 6 : index
    %381 = memref.load %arg0[%c4_222, %c6_223] : memref<8x10xi32, #tpu.memory_space<smem>>
    %382 = arith.index_cast %381 : i32 to index
    %c0_224 = arith.constant 0 : index
    %c0_225 = arith.constant 0 : index
    %383 = vector.load %arg1[%382, %c0_224, %c0_225] : memref<50x1x384xf32, #tpu.memory_space<vmem>>, vector<1x1x384xf32>
    %384 = vector.shape_cast %383 : vector<1x1x384xf32> to vector<1x384xf32>
    %c5_226 = arith.constant 5 : index
    %c6_227 = arith.constant 6 : index
    %385 = memref.load %arg0[%c5_226, %c6_227] : memref<8x10xi32, #tpu.memory_space<smem>>
    %386 = arith.index_cast %385 : i32 to index
    %c0_228 = arith.constant 0 : index
    %c0_229 = arith.constant 0 : index
    %387 = vector.load %arg1[%386, %c0_228, %c0_229] : memref<50x1x384xf32, #tpu.memory_space<vmem>>, vector<1x1x384xf32>
    %388 = vector.shape_cast %387 : vector<1x1x384xf32> to vector<1x384xf32>
    %c6_230 = arith.constant 6 : index
    %c6_231 = arith.constant 6 : index
    %389 = memref.load %arg0[%c6_230, %c6_231] : memref<8x10xi32, #tpu.memory_space<smem>>
    %390 = arith.index_cast %389 : i32 to index
    %c0_232 = arith.constant 0 : index
    %c0_233 = arith.constant 0 : index
    %391 = vector.load %arg1[%390, %c0_232, %c0_233] : memref<50x1x384xf32, #tpu.memory_space<vmem>>, vector<1x1x384xf32>
    %392 = vector.shape_cast %391 : vector<1x1x384xf32> to vector<1x384xf32>
    %c7_234 = arith.constant 7 : index
    %c6_235 = arith.constant 6 : index
    %393 = memref.load %arg0[%c7_234, %c6_235] : memref<8x10xi32, #tpu.memory_space<smem>>
    %394 = arith.index_cast %393 : i32 to index
    %c0_236 = arith.constant 0 : index
    %c0_237 = arith.constant 0 : index
    %395 = vector.load %arg1[%394, %c0_236, %c0_237] : memref<50x1x384xf32, #tpu.memory_space<vmem>>, vector<1x1x384xf32>
    %396 = vector.shape_cast %395 : vector<1x1x384xf32> to vector<1x384xf32>
    %397 = tpu.concatenate %368, %372, %376, %380, %384, %388, %392, %396 in 0 : vector<1x384xf32>, vector<1x384xf32>, vector<1x384xf32>, vector<1x384xf32>, vector<1x384xf32>, vector<1x384xf32>, vector<1x384xf32>, vector<1x384xf32> -> vector<8x384xf32>
    %398 = arith.truncf %364 : vector<8x128xf32> to vector<8x128xbf16>
    %cst_238 = arith.constant dense<0.000000e+00> : vector<8x384xf32>
    %399 = tpu.matmul %398, %0, %cst_238 {dimension_numbers = #tpu.dot_dimension_numbers<[1], [0], [0], [1], [0, 0, 1, 1], [], []>} : vector<8x128xbf16>, vector<128x384xbf16>, vector<8x384xf32> -> vector<8x384xf32>
    %400 = vector.extract_strided_slice %397 {offsets = [0, 0], sizes = [8, 128], strides = [1, 1]} : vector<8x384xf32> to vector<8x128xf32>
    %401 = vector.extract_strided_slice %399 {offsets = [0, 0], sizes = [8, 128], strides = [1, 1]} : vector<8x384xf32> to vector<8x128xf32>
    %402 = arith.addf %400, %401 : vector<8x128xf32>
    %403 = arith.negf %402 : vector<8x128xf32>
    %404 = math.exp %403 : vector<8x128xf32>
    %cst_239 = arith.constant 1.000000e+00 : f32
    %405 = vector.broadcast %cst_239 : f32 to vector<8x128xf32>
    %406 = arith.addf %405, %404 : vector<8x128xf32>
    %407 = arith.divf %405, %406 : vector<8x128xf32>
    %408 = vector.extract_strided_slice %397 {offsets = [0, 128], sizes = [8, 128], strides = [1, 1]} : vector<8x384xf32> to vector<8x128xf32>
    %409 = vector.extract_strided_slice %399 {offsets = [0, 128], sizes = [8, 128], strides = [1, 1]} : vector<8x384xf32> to vector<8x128xf32>
    %410 = arith.addf %408, %409 : vector<8x128xf32>
    %411 = arith.negf %410 : vector<8x128xf32>
    %412 = math.exp %411 : vector<8x128xf32>
    %cst_240 = arith.constant 1.000000e+00 : f32
    %413 = vector.broadcast %cst_240 : f32 to vector<8x128xf32>
    %414 = arith.addf %413, %412 : vector<8x128xf32>
    %415 = arith.divf %413, %414 : vector<8x128xf32>
    %416 = vector.extract_strided_slice %397 {offsets = [0, 256], sizes = [8, 128], strides = [1, 1]} : vector<8x384xf32> to vector<8x128xf32>
    %417 = vector.extract_strided_slice %399 {offsets = [0, 256], sizes = [8, 128], strides = [1, 1]} : vector<8x384xf32> to vector<8x128xf32>
    %418 = arith.addf %417, %3 : vector<8x128xf32>
    %419 = arith.mulf %407, %418 : vector<8x128xf32>
    %420 = arith.addf %416, %419 : vector<8x128xf32>
    %421 = math.tanh %420 : vector<8x128xf32>
    %422 = arith.subf %364, %421 : vector<8x128xf32>
    %423 = arith.mulf %415, %422 : vector<8x128xf32>
    %424 = arith.addf %421, %423 : vector<8x128xf32>
    %c0_241 = arith.constant 0 : index
    %c7_242 = arith.constant 7 : index
    %425 = memref.load %arg0[%c0_241, %c7_242] : memref<8x10xi32, #tpu.memory_space<smem>>
    %426 = arith.index_cast %425 : i32 to index
    %c0_243 = arith.constant 0 : index
    %c0_244 = arith.constant 0 : index
    %427 = vector.load %arg1[%426, %c0_243, %c0_244] : memref<50x1x384xf32, #tpu.memory_space<vmem>>, vector<1x1x384xf32>
    %428 = vector.shape_cast %427 : vector<1x1x384xf32> to vector<1x384xf32>
    %c1_245 = arith.constant 1 : index
    %c7_246 = arith.constant 7 : index
    %429 = memref.load %arg0[%c1_245, %c7_246] : memref<8x10xi32, #tpu.memory_space<smem>>
    %430 = arith.index_cast %429 : i32 to index
    %c0_247 = arith.constant 0 : index
    %c0_248 = arith.constant 0 : index
    %431 = vector.load %arg1[%430, %c0_247, %c0_248] : memref<50x1x384xf32, #tpu.memory_space<vmem>>, vector<1x1x384xf32>
    %432 = vector.shape_cast %431 : vector<1x1x384xf32> to vector<1x384xf32>
    %c2_249 = arith.constant 2 : index
    %c7_250 = arith.constant 7 : index
    %433 = memref.load %arg0[%c2_249, %c7_250] : memref<8x10xi32, #tpu.memory_space<smem>>
    %434 = arith.index_cast %433 : i32 to index
    %c0_251 = arith.constant 0 : index
    %c0_252 = arith.constant 0 : index
    %435 = vector.load %arg1[%434, %c0_251, %c0_252] : memref<50x1x384xf32, #tpu.memory_space<vmem>>, vector<1x1x384xf32>
    %436 = vector.shape_cast %435 : vector<1x1x384xf32> to vector<1x384xf32>
    %c3_253 = arith.constant 3 : index
    %c7_254 = arith.constant 7 : index
    %437 = memref.load %arg0[%c3_253, %c7_254] : memref<8x10xi32, #tpu.memory_space<smem>>
    %438 = arith.index_cast %437 : i32 to index
    %c0_255 = arith.constant 0 : index
    %c0_256 = arith.constant 0 : index
    %439 = vector.load %arg1[%438, %c0_255, %c0_256] : memref<50x1x384xf32, #tpu.memory_space<vmem>>, vector<1x1x384xf32>
    %440 = vector.shape_cast %439 : vector<1x1x384xf32> to vector<1x384xf32>
    %c4_257 = arith.constant 4 : index
    %c7_258 = arith.constant 7 : index
    %441 = memref.load %arg0[%c4_257, %c7_258] : memref<8x10xi32, #tpu.memory_space<smem>>
    %442 = arith.index_cast %441 : i32 to index
    %c0_259 = arith.constant 0 : index
    %c0_260 = arith.constant 0 : index
    %443 = vector.load %arg1[%442, %c0_259, %c0_260] : memref<50x1x384xf32, #tpu.memory_space<vmem>>, vector<1x1x384xf32>
    %444 = vector.shape_cast %443 : vector<1x1x384xf32> to vector<1x384xf32>
    %c5_261 = arith.constant 5 : index
    %c7_262 = arith.constant 7 : index
    %445 = memref.load %arg0[%c5_261, %c7_262] : memref<8x10xi32, #tpu.memory_space<smem>>
    %446 = arith.index_cast %445 : i32 to index
    %c0_263 = arith.constant 0 : index
    %c0_264 = arith.constant 0 : index
    %447 = vector.load %arg1[%446, %c0_263, %c0_264] : memref<50x1x384xf32, #tpu.memory_space<vmem>>, vector<1x1x384xf32>
    %448 = vector.shape_cast %447 : vector<1x1x384xf32> to vector<1x384xf32>
    %c6_265 = arith.constant 6 : index
    %c7_266 = arith.constant 7 : index
    %449 = memref.load %arg0[%c6_265, %c7_266] : memref<8x10xi32, #tpu.memory_space<smem>>
    %450 = arith.index_cast %449 : i32 to index
    %c0_267 = arith.constant 0 : index
    %c0_268 = arith.constant 0 : index
    %451 = vector.load %arg1[%450, %c0_267, %c0_268] : memref<50x1x384xf32, #tpu.memory_space<vmem>>, vector<1x1x384xf32>
    %452 = vector.shape_cast %451 : vector<1x1x384xf32> to vector<1x384xf32>
    %c7_269 = arith.constant 7 : index
    %c7_270 = arith.constant 7 : index
    %453 = memref.load %arg0[%c7_269, %c7_270] : memref<8x10xi32, #tpu.memory_space<smem>>
    %454 = arith.index_cast %453 : i32 to index
    %c0_271 = arith.constant 0 : index
    %c0_272 = arith.constant 0 : index
    %455 = vector.load %arg1[%454, %c0_271, %c0_272] : memref<50x1x384xf32, #tpu.memory_space<vmem>>, vector<1x1x384xf32>
    %456 = vector.shape_cast %455 : vector<1x1x384xf32> to vector<1x384xf32>
    %457 = tpu.concatenate %428, %432, %436, %440, %444, %448, %452, %456 in 0 : vector<1x384xf32>, vector<1x384xf32>, vector<1x384xf32>, vector<1x384xf32>, vector<1x384xf32>, vector<1x384xf32>, vector<1x384xf32>, vector<1x384xf32> -> vector<8x384xf32>
    %458 = arith.truncf %424 : vector<8x128xf32> to vector<8x128xbf16>
    %cst_273 = arith.constant dense<0.000000e+00> : vector<8x384xf32>
    %459 = tpu.matmul %458, %0, %cst_273 {dimension_numbers = #tpu.dot_dimension_numbers<[1], [0], [0], [1], [0, 0, 1, 1], [], []>} : vector<8x128xbf16>, vector<128x384xbf16>, vector<8x384xf32> -> vector<8x384xf32>
    %460 = vector.extract_strided_slice %457 {offsets = [0, 0], sizes = [8, 128], strides = [1, 1]} : vector<8x384xf32> to vector<8x128xf32>
    %461 = vector.extract_strided_slice %459 {offsets = [0, 0], sizes = [8, 128], strides = [1, 1]} : vector<8x384xf32> to vector<8x128xf32>
    %462 = arith.addf %460, %461 : vector<8x128xf32>
    %463 = arith.negf %462 : vector<8x128xf32>
    %464 = math.exp %463 : vector<8x128xf32>
    %cst_274 = arith.constant 1.000000e+00 : f32
    %465 = vector.broadcast %cst_274 : f32 to vector<8x128xf32>
    %466 = arith.addf %465, %464 : vector<8x128xf32>
    %467 = arith.divf %465, %466 : vector<8x128xf32>
    %468 = vector.extract_strided_slice %457 {offsets = [0, 128], sizes = [8, 128], strides = [1, 1]} : vector<8x384xf32> to vector<8x128xf32>
    %469 = vector.extract_strided_slice %459 {offsets = [0, 128], sizes = [8, 128], strides = [1, 1]} : vector<8x384xf32> to vector<8x128xf32>
    %470 = arith.addf %468, %469 : vector<8x128xf32>
    %471 = arith.negf %470 : vector<8x128xf32>
    %472 = math.exp %471 : vector<8x128xf32>
    %cst_275 = arith.constant 1.000000e+00 : f32
    %473 = vector.broadcast %cst_275 : f32 to vector<8x128xf32>
    %474 = arith.addf %473, %472 : vector<8x128xf32>
    %475 = arith.divf %473, %474 : vector<8x128xf32>
    %476 = vector.extract_strided_slice %457 {offsets = [0, 256], sizes = [8, 128], strides = [1, 1]} : vector<8x384xf32> to vector<8x128xf32>
    %477 = vector.extract_strided_slice %459 {offsets = [0, 256], sizes = [8, 128], strides = [1, 1]} : vector<8x384xf32> to vector<8x128xf32>
    %478 = arith.addf %477, %3 : vector<8x128xf32>
    %479 = arith.mulf %467, %478 : vector<8x128xf32>
    %480 = arith.addf %476, %479 : vector<8x128xf32>
    %481 = math.tanh %480 : vector<8x128xf32>
    %482 = arith.subf %424, %481 : vector<8x128xf32>
    %483 = arith.mulf %475, %482 : vector<8x128xf32>
    %484 = arith.addf %481, %483 : vector<8x128xf32>
    %c0_276 = arith.constant 0 : index
    %c8 = arith.constant 8 : index
    %485 = memref.load %arg0[%c0_276, %c8] : memref<8x10xi32, #tpu.memory_space<smem>>
    %486 = arith.index_cast %485 : i32 to index
    %c0_277 = arith.constant 0 : index
    %c0_278 = arith.constant 0 : index
    %487 = vector.load %arg1[%486, %c0_277, %c0_278] : memref<50x1x384xf32, #tpu.memory_space<vmem>>, vector<1x1x384xf32>
    %488 = vector.shape_cast %487 : vector<1x1x384xf32> to vector<1x384xf32>
    %c1_279 = arith.constant 1 : index
    %c8_280 = arith.constant 8 : index
    %489 = memref.load %arg0[%c1_279, %c8_280] : memref<8x10xi32, #tpu.memory_space<smem>>
    %490 = arith.index_cast %489 : i32 to index
    %c0_281 = arith.constant 0 : index
    %c0_282 = arith.constant 0 : index
    %491 = vector.load %arg1[%490, %c0_281, %c0_282] : memref<50x1x384xf32, #tpu.memory_space<vmem>>, vector<1x1x384xf32>
    %492 = vector.shape_cast %491 : vector<1x1x384xf32> to vector<1x384xf32>
    %c2_283 = arith.constant 2 : index
    %c8_284 = arith.constant 8 : index
    %493 = memref.load %arg0[%c2_283, %c8_284] : memref<8x10xi32, #tpu.memory_space<smem>>
    %494 = arith.index_cast %493 : i32 to index
    %c0_285 = arith.constant 0 : index
    %c0_286 = arith.constant 0 : index
    %495 = vector.load %arg1[%494, %c0_285, %c0_286] : memref<50x1x384xf32, #tpu.memory_space<vmem>>, vector<1x1x384xf32>
    %496 = vector.shape_cast %495 : vector<1x1x384xf32> to vector<1x384xf32>
    %c3_287 = arith.constant 3 : index
    %c8_288 = arith.constant 8 : index
    %497 = memref.load %arg0[%c3_287, %c8_288] : memref<8x10xi32, #tpu.memory_space<smem>>
    %498 = arith.index_cast %497 : i32 to index
    %c0_289 = arith.constant 0 : index
    %c0_290 = arith.constant 0 : index
    %499 = vector.load %arg1[%498, %c0_289, %c0_290] : memref<50x1x384xf32, #tpu.memory_space<vmem>>, vector<1x1x384xf32>
    %500 = vector.shape_cast %499 : vector<1x1x384xf32> to vector<1x384xf32>
    %c4_291 = arith.constant 4 : index
    %c8_292 = arith.constant 8 : index
    %501 = memref.load %arg0[%c4_291, %c8_292] : memref<8x10xi32, #tpu.memory_space<smem>>
    %502 = arith.index_cast %501 : i32 to index
    %c0_293 = arith.constant 0 : index
    %c0_294 = arith.constant 0 : index
    %503 = vector.load %arg1[%502, %c0_293, %c0_294] : memref<50x1x384xf32, #tpu.memory_space<vmem>>, vector<1x1x384xf32>
    %504 = vector.shape_cast %503 : vector<1x1x384xf32> to vector<1x384xf32>
    %c5_295 = arith.constant 5 : index
    %c8_296 = arith.constant 8 : index
    %505 = memref.load %arg0[%c5_295, %c8_296] : memref<8x10xi32, #tpu.memory_space<smem>>
    %506 = arith.index_cast %505 : i32 to index
    %c0_297 = arith.constant 0 : index
    %c0_298 = arith.constant 0 : index
    %507 = vector.load %arg1[%506, %c0_297, %c0_298] : memref<50x1x384xf32, #tpu.memory_space<vmem>>, vector<1x1x384xf32>
    %508 = vector.shape_cast %507 : vector<1x1x384xf32> to vector<1x384xf32>
    %c6_299 = arith.constant 6 : index
    %c8_300 = arith.constant 8 : index
    %509 = memref.load %arg0[%c6_299, %c8_300] : memref<8x10xi32, #tpu.memory_space<smem>>
    %510 = arith.index_cast %509 : i32 to index
    %c0_301 = arith.constant 0 : index
    %c0_302 = arith.constant 0 : index
    %511 = vector.load %arg1[%510, %c0_301, %c0_302] : memref<50x1x384xf32, #tpu.memory_space<vmem>>, vector<1x1x384xf32>
    %512 = vector.shape_cast %511 : vector<1x1x384xf32> to vector<1x384xf32>
    %c7_303 = arith.constant 7 : index
    %c8_304 = arith.constant 8 : index
    %513 = memref.load %arg0[%c7_303, %c8_304] : memref<8x10xi32, #tpu.memory_space<smem>>
    %514 = arith.index_cast %513 : i32 to index
    %c0_305 = arith.constant 0 : index
    %c0_306 = arith.constant 0 : index
    %515 = vector.load %arg1[%514, %c0_305, %c0_306] : memref<50x1x384xf32, #tpu.memory_space<vmem>>, vector<1x1x384xf32>
    %516 = vector.shape_cast %515 : vector<1x1x384xf32> to vector<1x384xf32>
    %517 = tpu.concatenate %488, %492, %496, %500, %504, %508, %512, %516 in 0 : vector<1x384xf32>, vector<1x384xf32>, vector<1x384xf32>, vector<1x384xf32>, vector<1x384xf32>, vector<1x384xf32>, vector<1x384xf32>, vector<1x384xf32> -> vector<8x384xf32>
    %518 = arith.truncf %484 : vector<8x128xf32> to vector<8x128xbf16>
    %cst_307 = arith.constant dense<0.000000e+00> : vector<8x384xf32>
    %519 = tpu.matmul %518, %0, %cst_307 {dimension_numbers = #tpu.dot_dimension_numbers<[1], [0], [0], [1], [0, 0, 1, 1], [], []>} : vector<8x128xbf16>, vector<128x384xbf16>, vector<8x384xf32> -> vector<8x384xf32>
    %520 = vector.extract_strided_slice %517 {offsets = [0, 0], sizes = [8, 128], strides = [1, 1]} : vector<8x384xf32> to vector<8x128xf32>
    %521 = vector.extract_strided_slice %519 {offsets = [0, 0], sizes = [8, 128], strides = [1, 1]} : vector<8x384xf32> to vector<8x128xf32>
    %522 = arith.addf %520, %521 : vector<8x128xf32>
    %523 = arith.negf %522 : vector<8x128xf32>
    %524 = math.exp %523 : vector<8x128xf32>
    %cst_308 = arith.constant 1.000000e+00 : f32
    %525 = vector.broadcast %cst_308 : f32 to vector<8x128xf32>
    %526 = arith.addf %525, %524 : vector<8x128xf32>
    %527 = arith.divf %525, %526 : vector<8x128xf32>
    %528 = vector.extract_strided_slice %517 {offsets = [0, 128], sizes = [8, 128], strides = [1, 1]} : vector<8x384xf32> to vector<8x128xf32>
    %529 = vector.extract_strided_slice %519 {offsets = [0, 128], sizes = [8, 128], strides = [1, 1]} : vector<8x384xf32> to vector<8x128xf32>
    %530 = arith.addf %528, %529 : vector<8x128xf32>
    %531 = arith.negf %530 : vector<8x128xf32>
    %532 = math.exp %531 : vector<8x128xf32>
    %cst_309 = arith.constant 1.000000e+00 : f32
    %533 = vector.broadcast %cst_309 : f32 to vector<8x128xf32>
    %534 = arith.addf %533, %532 : vector<8x128xf32>
    %535 = arith.divf %533, %534 : vector<8x128xf32>
    %536 = vector.extract_strided_slice %517 {offsets = [0, 256], sizes = [8, 128], strides = [1, 1]} : vector<8x384xf32> to vector<8x128xf32>
    %537 = vector.extract_strided_slice %519 {offsets = [0, 256], sizes = [8, 128], strides = [1, 1]} : vector<8x384xf32> to vector<8x128xf32>
    %538 = arith.addf %537, %3 : vector<8x128xf32>
    %539 = arith.mulf %527, %538 : vector<8x128xf32>
    %540 = arith.addf %536, %539 : vector<8x128xf32>
    %541 = math.tanh %540 : vector<8x128xf32>
    %542 = arith.subf %484, %541 : vector<8x128xf32>
    %543 = arith.mulf %535, %542 : vector<8x128xf32>
    %544 = arith.addf %541, %543 : vector<8x128xf32>
    %c0_310 = arith.constant 0 : index
    %c9 = arith.constant 9 : index
    %545 = memref.load %arg0[%c0_310, %c9] : memref<8x10xi32, #tpu.memory_space<smem>>
    %546 = arith.index_cast %545 : i32 to index
    %c0_311 = arith.constant 0 : index
    %c0_312 = arith.constant 0 : index
    %547 = vector.load %arg1[%546, %c0_311, %c0_312] : memref<50x1x384xf32, #tpu.memory_space<vmem>>, vector<1x1x384xf32>
    %548 = vector.shape_cast %547 : vector<1x1x384xf32> to vector<1x384xf32>
    %c1_313 = arith.constant 1 : index
    %c9_314 = arith.constant 9 : index
    %549 = memref.load %arg0[%c1_313, %c9_314] : memref<8x10xi32, #tpu.memory_space<smem>>
    %550 = arith.index_cast %549 : i32 to index
    %c0_315 = arith.constant 0 : index
    %c0_316 = arith.constant 0 : index
    %551 = vector.load %arg1[%550, %c0_315, %c0_316] : memref<50x1x384xf32, #tpu.memory_space<vmem>>, vector<1x1x384xf32>
    %552 = vector.shape_cast %551 : vector<1x1x384xf32> to vector<1x384xf32>
    %c2_317 = arith.constant 2 : index
    %c9_318 = arith.constant 9 : index
    %553 = memref.load %arg0[%c2_317, %c9_318] : memref<8x10xi32, #tpu.memory_space<smem>>
    %554 = arith.index_cast %553 : i32 to index
    %c0_319 = arith.constant 0 : index
    %c0_320 = arith.constant 0 : index
    %555 = vector.load %arg1[%554, %c0_319, %c0_320] : memref<50x1x384xf32, #tpu.memory_space<vmem>>, vector<1x1x384xf32>
    %556 = vector.shape_cast %555 : vector<1x1x384xf32> to vector<1x384xf32>
    %c3_321 = arith.constant 3 : index
    %c9_322 = arith.constant 9 : index
    %557 = memref.load %arg0[%c3_321, %c9_322] : memref<8x10xi32, #tpu.memory_space<smem>>
    %558 = arith.index_cast %557 : i32 to index
    %c0_323 = arith.constant 0 : index
    %c0_324 = arith.constant 0 : index
    %559 = vector.load %arg1[%558, %c0_323, %c0_324] : memref<50x1x384xf32, #tpu.memory_space<vmem>>, vector<1x1x384xf32>
    %560 = vector.shape_cast %559 : vector<1x1x384xf32> to vector<1x384xf32>
    %c4_325 = arith.constant 4 : index
    %c9_326 = arith.constant 9 : index
    %561 = memref.load %arg0[%c4_325, %c9_326] : memref<8x10xi32, #tpu.memory_space<smem>>
    %562 = arith.index_cast %561 : i32 to index
    %c0_327 = arith.constant 0 : index
    %c0_328 = arith.constant 0 : index
    %563 = vector.load %arg1[%562, %c0_327, %c0_328] : memref<50x1x384xf32, #tpu.memory_space<vmem>>, vector<1x1x384xf32>
    %564 = vector.shape_cast %563 : vector<1x1x384xf32> to vector<1x384xf32>
    %c5_329 = arith.constant 5 : index
    %c9_330 = arith.constant 9 : index
    %565 = memref.load %arg0[%c5_329, %c9_330] : memref<8x10xi32, #tpu.memory_space<smem>>
    %566 = arith.index_cast %565 : i32 to index
    %c0_331 = arith.constant 0 : index
    %c0_332 = arith.constant 0 : index
    %567 = vector.load %arg1[%566, %c0_331, %c0_332] : memref<50x1x384xf32, #tpu.memory_space<vmem>>, vector<1x1x384xf32>
    %568 = vector.shape_cast %567 : vector<1x1x384xf32> to vector<1x384xf32>
    %c6_333 = arith.constant 6 : index
    %c9_334 = arith.constant 9 : index
    %569 = memref.load %arg0[%c6_333, %c9_334] : memref<8x10xi32, #tpu.memory_space<smem>>
    %570 = arith.index_cast %569 : i32 to index
    %c0_335 = arith.constant 0 : index
    %c0_336 = arith.constant 0 : index
    %571 = vector.load %arg1[%570, %c0_335, %c0_336] : memref<50x1x384xf32, #tpu.memory_space<vmem>>, vector<1x1x384xf32>
    %572 = vector.shape_cast %571 : vector<1x1x384xf32> to vector<1x384xf32>
    %c7_337 = arith.constant 7 : index
    %c9_338 = arith.constant 9 : index
    %573 = memref.load %arg0[%c7_337, %c9_338] : memref<8x10xi32, #tpu.memory_space<smem>>
    %574 = arith.index_cast %573 : i32 to index
    %c0_339 = arith.constant 0 : index
    %c0_340 = arith.constant 0 : index
    %575 = vector.load %arg1[%574, %c0_339, %c0_340] : memref<50x1x384xf32, #tpu.memory_space<vmem>>, vector<1x1x384xf32>
    %576 = vector.shape_cast %575 : vector<1x1x384xf32> to vector<1x384xf32>
    %577 = tpu.concatenate %548, %552, %556, %560, %564, %568, %572, %576 in 0 : vector<1x384xf32>, vector<1x384xf32>, vector<1x384xf32>, vector<1x384xf32>, vector<1x384xf32>, vector<1x384xf32>, vector<1x384xf32>, vector<1x384xf32> -> vector<8x384xf32>
    %578 = arith.truncf %544 : vector<8x128xf32> to vector<8x128xbf16>
    %cst_341 = arith.constant dense<0.000000e+00> : vector<8x384xf32>
    %579 = tpu.matmul %578, %0, %cst_341 {dimension_numbers = #tpu.dot_dimension_numbers<[1], [0], [0], [1], [0, 0, 1, 1], [], []>} : vector<8x128xbf16>, vector<128x384xbf16>, vector<8x384xf32> -> vector<8x384xf32>
    %580 = vector.extract_strided_slice %577 {offsets = [0, 0], sizes = [8, 128], strides = [1, 1]} : vector<8x384xf32> to vector<8x128xf32>
    %581 = vector.extract_strided_slice %579 {offsets = [0, 0], sizes = [8, 128], strides = [1, 1]} : vector<8x384xf32> to vector<8x128xf32>
    %582 = arith.addf %580, %581 : vector<8x128xf32>
    %583 = arith.negf %582 : vector<8x128xf32>
    %584 = math.exp %583 : vector<8x128xf32>
    %cst_342 = arith.constant 1.000000e+00 : f32
    %585 = vector.broadcast %cst_342 : f32 to vector<8x128xf32>
    %586 = arith.addf %585, %584 : vector<8x128xf32>
    %587 = arith.divf %585, %586 : vector<8x128xf32>
    %588 = vector.extract_strided_slice %577 {offsets = [0, 128], sizes = [8, 128], strides = [1, 1]} : vector<8x384xf32> to vector<8x128xf32>
    %589 = vector.extract_strided_slice %579 {offsets = [0, 128], sizes = [8, 128], strides = [1, 1]} : vector<8x384xf32> to vector<8x128xf32>
    %590 = arith.addf %588, %589 : vector<8x128xf32>
    %591 = arith.negf %590 : vector<8x128xf32>
    %592 = math.exp %591 : vector<8x128xf32>
    %cst_343 = arith.constant 1.000000e+00 : f32
    %593 = vector.broadcast %cst_343 : f32 to vector<8x128xf32>
    %594 = arith.addf %593, %592 : vector<8x128xf32>
    %595 = arith.divf %593, %594 : vector<8x128xf32>
    %596 = vector.extract_strided_slice %577 {offsets = [0, 256], sizes = [8, 128], strides = [1, 1]} : vector<8x384xf32> to vector<8x128xf32>
    %597 = vector.extract_strided_slice %579 {offsets = [0, 256], sizes = [8, 128], strides = [1, 1]} : vector<8x384xf32> to vector<8x128xf32>
    %598 = arith.addf %597, %3 : vector<8x128xf32>
    %599 = arith.mulf %587, %598 : vector<8x128xf32>
    %600 = arith.addf %596, %599 : vector<8x128xf32>
    %601 = math.tanh %600 : vector<8x128xf32>
    %602 = arith.subf %544, %601 : vector<8x128xf32>
    %603 = arith.mulf %595, %602 : vector<8x128xf32>
    %604 = arith.addf %601, %603 : vector<8x128xf32>
    %c0_344 = arith.constant 0 : index
    %c0_345 = arith.constant 0 : index
    %605 = vector.load %arg4[%c0_344, %c0_345] : memref<8x16xf32, #tpu.memory_space<vmem>>, vector<8x16xf32>
    %606 = arith.truncf %605 : vector<8x16xf32> to vector<8x16xbf16>
    %c0_346 = arith.constant 0 : index
    %c0_347 = arith.constant 0 : index
    %607 = vector.load %arg5[%c0_346, %c0_347] : memref<16x4xbf16, #tpu.memory_space<vmem>>, vector<16x4xbf16>
    %cst_348 = arith.constant dense<0.000000e+00> : vector<8x4xf32>
    %608 = tpu.matmul %606, %607, %cst_348 {dimension_numbers = #tpu.dot_dimension_numbers<[1], [0], [0], [1], [0, 0, 1, 1], [], []>} : vector<8x16xbf16>, vector<16x4xbf16>, vector<8x4xf32> -> vector<8x4xf32>
    %609 = arith.truncf %604 : vector<8x128xf32> to vector<8x128xbf16>
    %c0_349 = arith.constant 0 : index
    %c0_350 = arith.constant 0 : index
    %610 = vector.load %arg6[%c0_349, %c0_350] : memref<128x4xbf16, #tpu.memory_space<vmem>>, vector<128x4xbf16>
    %cst_351 = arith.constant dense<0.000000e+00> : vector<8x4xf32>
    %611 = tpu.matmul %609, %610, %cst_351 {dimension_numbers = #tpu.dot_dimension_numbers<[1], [0], [0], [1], [0, 0, 1, 1], [], []>} : vector<8x128xbf16>, vector<128x4xbf16>, vector<8x4xf32> -> vector<8x4xf32>
    %612 = arith.addf %611, %608 : vector<8x4xf32>
    %c0_352 = arith.constant 0 : index
    %c0_353 = arith.constant 0 : index
    %613 = vector.load %arg7[%c0_352, %c0_353] : memref<1x4xf32, #tpu.memory_space<vmem>>, vector<1x4xf32>
    %614 = vector.broadcast %613 : vector<1x4xf32> to vector<8x4xf32>
    %615 = arith.addf %612, %614 : vector<8x4xf32>
    %616 = arith.negf %615 : vector<8x4xf32>
    %617 = math.exp %616 : vector<8x4xf32>
    %cst_354 = arith.constant 1.000000e+00 : f32
    %618 = vector.broadcast %cst_354 : f32 to vector<8x4xf32>
    %619 = arith.addf %618, %617 : vector<8x4xf32>
    %620 = arith.divf %618, %619 : vector<8x4xf32>
    %c0_355 = arith.constant 0 : index
    %c0_356 = arith.constant 0 : index
    %621 = vector.load %arg8[%c0_355, %c0_356] : memref<8x4xf32, #tpu.memory_space<vmem>>, vector<8x4xf32>
    tpu.vector_store %arg8[%c0_355, %c0_356], %620 {strides = array<i32>} : memref<8x4xf32, #tpu.memory_space<vmem>>, vector<8x4xf32>,
    return
  }
}

</mosaic_0001>

<bundles_post_ra>
// kernel: gru_model_forward.1
= control target key start
LH: loop header
LB: loop body
LE: loop exit
PB: predicated region body
PF: predicated region fallthrough
CT: control target
= control target key end

     0   :  { %13 = vsyncpa [#allocation4], 0  ;;  %s5490_s0 = inlined_call_operand.vmem [shape: s32[8,10], index: 0, kind: input, shape index: {}]   ;;  %s5491_s1 = inlined_call_operand.hbm [shape: f32[50,1,384], index: 1, kind: input, shape index: {}]   ;;  %s5492_s2 = inlined_call_operand.hbm [shape: bf16[128,384], index: 2, kind: input, shape index: {}]   ;;  %s5493_s3 = inlined_call_operand.vmem [shape: f32[1,128], index: 3, kind: input, shape index: {}]   ;;  %s5494_s4 = inlined_call_operand.vmem [shape: f32[8,16], index: 4, kind: input, shape index: {}]   ;;  %s5495_s5 = inlined_call_operand.vmem [shape: bf16[16,4], index: 5, kind: input, shape index: {}]   ;;  %s5496_s6 = inlined_call_operand.vmem [shape: bf16[128,4], index: 6, kind: input, shape index: {}]   ;;  %s5497_s7 = inlined_call_operand.vmem [shape: f32[1,4], index: 7, kind: input, shape index: {}]   ;;  %s5498_s8 = inlined_call_operand.vmem [shape: f32[8,4], index: 8, kind: output, shape index: {}]  }
   0x1   :  { %14 = vsyncpa [#allocation3], 0  ;;  %s22_s29 = sshll.u32 %s5490_s0, 4  ;;  %s23_s29 = int_to_ptr.vmem [resolvable:$true] %s22_s29 }
   0x2   :  { %15 = vsyncpa [#allocation7], 0  ;;  %s4094_s30 = scalar_lea.vmem %s23_s29, 128  ;;  %p4099_p1 = scmp.lt.s32.totalorder %s23_s29, %s23_s29 }
   0x3   :  { %p4095_p0 = scmp.ne.s32.totalorder %s23_s29, %s4094_s30  ;;  %p4100_p2 = scmp.lt.s32.totalorder %s4094_s30, %s4094_s30 }
   0x5   :  { %p4101_p3 = por %p4100_p2, %p4099_p1 }
   0x7   :  { %p4102_p4 = pnand %p4101_p3, %p4095_p0 }
   0x9   :  { %4105 = shalt.err (!%p4102_p4)
}
   0xa   :  { %s4152_s9 = smov [#allocation2]   ;;  %s4153_s10 = smov [#allocation5]  }
   0xb   :  { %25 = dma.vmem_to_smem %s23_s29, 128, %s4152_s9, [#allocation4]  }
   0xc   :  { %s31_s11 = sshll.u32 %s4153_s10, 4  ;;  %s32_s11 = int_to_ptr.vmem [resolvable:$true] %s31_s11 }
   0xd   :  { %s4114_s12 = scalar_lea.vmem %s32_s11, 2400  ;;  %p4119_p6 = scmp.lt.s32.totalorder %s32_s11, %s32_s11 }
   0xe   :  { %p4115_p5 = scmp.ne.s32.totalorder %s32_s11, %s4114_s12  ;;  %p4120_p7 = scmp.lt.s32.totalorder %s4114_s12, %s4114_s12 }
  0x10   :  { %p4121_p8 = por %p4120_p7, %p4119_p6 }
  0x12   :  { %p4122_p9 = pnand %p4121_p8, %p4115_p5 }
  0x14   :  { %4125 = shalt.err (!%p4122_p9)
}
  0x15   :  { %s4154_s0 = smov 48   ;;  %s4155_s13 = smov 3  }
  0x16   :  { %37 = dma.hbm_to_vmem [thread:$0]  %s5491_s1, 2400, %s32_s11, [#allocation3], %s4154_s0, %s4154_s0, %s4155_s13  }
  0x17   :  { %s4156_s16 = smov [#allocation6]  }
  0x18   :  { %s43_s17 = sshll.u32 %s4156_s16, 4  ;;  %s44_s17 = int_to_ptr.vmem [resolvable:$true] %s43_s17 }
  0x19   :  { %s4134_s18 = scalar_lea.vmem %s44_s17, 3072  ;;  %p4139_p11 = scmp.lt.s32.totalorder %s44_s17, %s44_s17 }
  0x1a   :  { %p4135_p10 = scmp.ne.s32.totalorder %s44_s17, %s4134_s18  ;;  %p4140_p12 = scmp.lt.s32.totalorder %s4134_s18, %s4134_s18 }
  0x1c   :  { %p4141_p13 = por %p4140_p12, %p4139_p11 }
  0x1e   :  { %p4142_p0 = pnand %p4141_p13, %p4135_p10 }
  0x20   :  { %4145 = shalt.err (!%p4142_p0)
}
  0x21   :  { %s4157_s19 = smov 192   ;;  %s4158_s20 = smov 12  }
  0x22   :  { %49 = dma.hbm_to_vmem [thread:$0]  %s5492_s2, 3072, %s44_s17, [#allocation7], %s4157_s19, %s4157_s19, %s4158_s20  }
  0x23   :  { %4146 = dma.done.wait [#allocation4], 128  }
  0x24   :  { %4147 = vsyncadd [#allocation4], 4294967168 }
  0x25   :  { %4148 = dma.done.wait [#allocation3], 2400  }
  0x26   :  { %4149 = vsyncadd [#allocation3], 4294964896 }
  0x27   :  { %4150 = dma.done.wait [#allocation7], 3072  }
  0x28   :  { %4151 = vsyncadd [#allocation7], 4294964224 }
  0x29   :  { %69 = sfence }
  0x2a   :  { %v4216_v0 = vld [vmem:[#allocation6 + $0xac] ss:$12 sps:$4 sm:$0xff]   ;;  %v4218_v1 = vld [vmem:[#allocation6 + $0xa8] ss:$12 sps:$4 sm:$0xff]   ;;  %v4159_v2 = vmov 0.0   ;;  %v4160_v3 = vmov 0   ;;  %v143_v26 = vlaneseq }
  0x2b   :  { %3663 = vmatprep.subr.bf16.mxu1 %v4159_v2  ;;  %458 = vmatprep.mubr.bf16.mxu0 %v4160_v3  ;;  %v4223_v4 = vld [vmem:[#allocation6 + $0x94] ss:$12 sps:$4 sm:$0xff]   ;;  %vm4161_vm0 = vmmov 0   ;;  %v4228_v5 = vld [vmem:[#allocation6 + $0x90] ss:$12 sps:$4 sm:$0xff]   ;;  %s110_s1 = sld [smem:[#allocation2]] }
  0x2c   :  { %426 = vmatprep.subr.bf16.mxu0 %v4216_v0  ;;  %3679 = vmatprep.mubr.msk.bf16.mxu1 %vm4161_vm0, %v4159_v2  ;;  %v4231_v6 = vld [vmem:[#allocation6 + $0x7c] ss:$12 sps:$4 sm:$0xff]   ;;  %v4234_v7 = vld [vmem:[#allocation6 + $0x78] ss:$12 sps:$4 sm:$0xff]   ;;  %v4242_v10 = vld [vmem:[#allocation6 + $0x60] ss:$12 sps:$4 sm:$0xff]  }
  0x2d   :  { %427 = vmatpush1.bf16.msra.mxu0 %v4218_v1  ;;  %v4237_v8 = vld [vmem:[#allocation6 + $0x64] ss:$12 sps:$4 sm:$0xff]   ;;  %v4244_v11 = vld [vmem:[#allocation6 + $0x4c] ss:$12 sps:$4 sm:$0xff]   ;;  %v4251_v13 = vld [vmem:[#allocation6 + $0x48] ss:$12 sps:$4 sm:$0xff]  }
  0x2e   :  { %428 = vmatprep.subr.bf16.mxu0 %v4223_v4  ;;  %v4239_v9 = vld [vmem:[#allocation6 + $0xb0] ss:$12 sps:$4 sm:$0xff]   ;;  %v4248_v12 = vld [vmem:[#allocation6 + $0x98] ss:$12 sps:$4 sm:$0xff]   ;;  %v4254_v14 = vld [vmem:[#allocation6 + $0x34] ss:$12 sps:$4 sm:$0xff]  }
  0x2f   :  { %3664 = vmatpush3.bf16.msra.mxu1 %v4239_v9  ;;  %v4258_v15 = vld [vmem:[#allocation6 + $0x80] ss:$12 sps:$4 sm:$0xff]   ;;  %v4262_v16 = vld [vmem:[#allocation6 + $0x30] ss:$12 sps:$4 sm:$0xff]   ;;  %v4268_v18 = vld [vmem:[#allocation6 + $0x68] ss:$12 sps:$4 sm:$0xff]  }
  0x30   :  { %3665 = vmatprep.subr.bf16.mxu1 %v4159_v2  ;;  %v4265_v17 = vld [vmem:[#allocation6 + $0x1c] ss:$12 sps:$4 sm:$0xff]   ;;  %v4271_v19 = vld [vmem:[#allocation6 + $0x18] ss:$12 sps:$4 sm:$0xff]   ;;  %v4282_v22 = vld [vmem:[#allocation6] ss:$12 sps:$4 sm:$0xff]  }
  0x31   :  { %429 = vmatpush1.bf16.msra.mxu0 %v4228_v5  ;;  %v4273_v20 = vld [vmem:[#allocation6 + $0x4] ss:$12 sps:$4 sm:$0xff]   ;;  %v4291_v24 = vld [vmem:[#allocation6 + $0x20] ss:$12 sps:$4 sm:$0xff]   ;;  %v4299_v25 = vld [vmem:[#allocation6 + $0x8] ss:$12 sps:$4 sm:$0xff]  }
  0x32   :  { %430 = vmatprep.subr.bf16.mxu0 %v4231_v6  ;;  %v4276_v21 = vld [vmem:[#allocation6 + $0x50] ss:$12 sps:$4 sm:$0xff]   ;;  %v4286_v23 = vld [vmem:[#allocation6 + $0x38] ss:$12 sps:$4 sm:$0xff]   ;;  %s3427_s2 = sld [smem:[#allocation2 + $0x80]]  ;;  %s111_s25 = smul.u32 3, %s110_s1 }
  0x33   :  { %3666 = vmatpush3.bf16.msra.mxu1 %v4248_v12  ;;  %s3428_s23 = sld [smem:[#allocation2 + $0x100]]  ;;  %v4338_v27 = vshrl.u32 %v143_v26, 7  ;;  %vm270_vm1 = vcmask 1040384   ;;  %vm274_vm2 = vcmask 1041408   ;;  %vm278_vm3 = vcmask 1042432  }
  0x34   :  { %3667 = vmatprep.subr.bf16.mxu1 %v4159_v2  ;;  %s3429_s24 = sld [smem:[#allocation2 + $0x180]]  ;;  %s112_s30 = scalar_lea.vmem [#allocation5], %s111_s25  ;;  %vm282_vm4 = vcmask 1043456   ;;  %vm286_vm5 = vcmask 1044480   ;;  %vm290_vm6 = vcmask 1045504   ;;  %vm294_vm7 = vcmask 1046528  }
  0x35   :  { %431 = vmatpush1.bf16.msra.mxu0 %v4234_v7  ;;  %s3430_s27 = sld [smem:[#allocation2 + $0x200]]  ;;  %v4342_v28 = vld [vmem:[%s112_s30] sm:$0x7]  ;;  %v4345_v29 = vsub.s32 0, %v4338_v27  ;;  %v4372_v40 = vsub.s32 1, %v4338_v27  ;;  %vm3094_vm8 = vcmask 130048  }
  0x36   :  { %432 = vmatprep.subr.bf16.mxu0 %v4237_v8  ;;  %s4340_s29 = sld [smem:[#allocation2 + $0x280]]  ;;  %vm3257_vm9 = vcmask 31744  }
  0x37   :  { %3668 = vmatpush3.bf16.msra.mxu1 %v4258_v15  ;;  %s4349_s11 = sld [smem:[#allocation2 + $0x300]]  ;;  %v146_v32 = vrot.slane %v4342_v28, %v4345_v29  ;;  %v150_v44 = vrot.slane %v4342_v28, %v4372_v40 }
  0x38   :  { %3669 = vmatprep.subr.bf16.mxu1 %v4159_v2  ;;  %s115_s26 = smul.u32 3, %s3427_s2  ;;  %s4353_s13 = sld [smem:[#allocation2 + $0x380]] }
  0x39   :  { %433 = vmatpush1.bf16.msra.mxu0 %v4242_v10  ;;  %s119_s28 = smul.u32 3, %s3428_s23  ;;  %s3460_s2 = sld [smem:[#allocation2 + $0x1]] }
  0x3a   :  { %434 = vmatprep.subr.bf16.mxu0 %v4244_v11  ;;  %s123_s9 = smul.u32 3, %s3429_s24  ;;  %s116_s10 = scalar_lea.vmem [#allocation5], %s115_s26 }
  0x3b   :  { %3670 = vmatpush3.bf16.msra.mxu1 %v4268_v18  ;;  %v4347_v30 = vld [vmem:[%s116_s10] sm:$0x7]  ;;  %s127_s12 = smul.u32 3, %s3430_s27  ;;  %s120_s0 = scalar_lea.vmem [#allocation5], %s119_s28 }
  0x3c   :  { %3671 = vmatprep.subr.bf16.mxu1 %v4159_v2  ;;  %v4351_v31 = vld [vmem:[%s120_s0] sm:$0x7]  ;;  %v162_v33 = vrot.slane %v4347_v30, %v4345_v29  ;;  %s131_s14 = smul.u32 3, %s4340_s29  ;;  %s124_s15 = scalar_lea.vmem [#allocation5], %s123_s9  ;;  %v166_v45 = vrot.slane %v4347_v30, %v4372_v40 }
  0x3d   :  { %435 = vmatpush1.bf16.msra.mxu0 %v4251_v13  ;;  %v4360_v34 = vld [vmem:[%s124_s15] sm:$0x7]  ;;  %v178_v35 = vrot.slane %v4351_v31, %v4345_v29  ;;  %s135_s16 = smul.u32 3, %s4349_s11  ;;  %s128_s17 = scalar_lea.vmem [#allocation5], %s127_s12  ;;  %v182_v49 = vrot.slane %v4351_v31, %v4372_v40 }
  0x3e   :  { %436 = vmatprep.subr.bf16.mxu0 %v4254_v14  ;;  %v271_v36 = vsel %vm270_vm1, %v146_v32, %v162_v33  ;;  %v4366_v37 = vld [vmem:[%s128_s17] sm:$0x7]  ;;  %v194_v38 = vrot.slane %v4360_v34, %v4345_v29  ;;  %s139_s18 = smul.u32 3, %s4353_s13  ;;  %s132_s19 = scalar_lea.vmem [#allocation5], %s131_s14  ;;  %v272_v52 = vsel %vm270_vm1, %v150_v44, %v166_v45  ;;  %v198_v54 = vrot.slane %v4360_v34, %v4372_v40 }
  0x3f   :  { %3672 = vmatpush3.bf16.msra.mxu1 %v4276_v21  ;;  %v275_v39 = vsel %vm274_vm2, %v271_v36, %v178_v35  ;;  %v4375_v41 = vld [vmem:[%s132_s19] sm:$0x7]  ;;  %v210_v42 = vrot.slane %v4366_v37, %v4345_v29  ;;  %s136_s20 = scalar_lea.vmem [#allocation5], %s135_s16  ;;  %v276_v56 = vsel %vm274_vm2, %v272_v52, %v182_v49  ;;  %v214_v58 = vrot.slane %v4366_v37, %v4372_v40  ;;  %s3461_s23 = sld [smem:[#allocation2 + $0x81]] }
  0x40   :  { %3673 = vmatprep.subr.bf16.mxu1 %v4159_v2  ;;  %v279_v43 = vsel %vm278_vm3, %v275_v39, %v194_v38  ;;  %v137_v46 = vld [vmem:[%s136_s20] sm:$0x7]  ;;  %v226_v47 = vrot.slane %v4375_v41, %v4345_v29  ;;  %s140_s21 = scalar_lea.vmem [#allocation5], %s139_s18  ;;  %v280_v59 = vsel %vm278_vm3, %v276_v56, %v198_v54  ;;  %v230_v61 = vrot.slane %v4375_v41, %v4372_v40  ;;  %s3462_s24 = sld [smem:[#allocation2 + $0x101]] }
  0x41   :  { %437 = vmatpush1.bf16.msra.mxu0 %v4262_v16  ;;  %v283_v48 = vsel %vm282_vm4, %v279_v43, %v210_v42  ;;  %v141_v50 = vld [vmem:[%s140_s21] sm:$0x7]  ;;  %v242_v51 = vrot.slane %v137_v46, %v4345_v29  ;;  %v284_v63 = vsel %vm282_vm4, %v280_v59, %v214_v58  ;;  %v246_v32 = vrot.slane %v137_v46, %v4372_v40  ;;  %s3463_s25 = sld [smem:[#allocation2 + $0x181]]  ;;  %s529_s26 = smul.u32 3, %s3460_s2 }
  0x42   :  { %438 = vmatprep.subr.bf16.mxu0 %v4265_v17  ;;  %v287_v53 = vsel %vm286_vm5, %v283_v48, %v226_v47  ;;  %v258_v55 = vrot.slane %v141_v50, %v4345_v29  ;;  %v288_v36 = vsel %vm286_vm5, %v284_v63, %v230_v61  ;;  %v262_v39 = vrot.slane %v141_v50, %v4372_v40  ;;  %s3464_s28 = sld [smem:[#allocation2 + $0x201]] }
  0x43   :  { %3674 = vmatpush3.bf16.msra.mxu1 %v4286_v23  ;;  %v291_v57 = vsel %vm290_vm6, %v287_v53, %v242_v51  ;;  %v292_v42 = vsel %vm290_vm6, %v288_v36, %v246_v32  ;;  %v4409_v44 = vsub.s32 2, %v4338_v27  ;;  %s3465_s30 = sld [smem:[#allocation2 + $0x281]]  ;;  %s530_s11 = scalar_lea.vmem [#allocation5], %s529_s26 }
  0x44   :  { %3675 = vmatprep.subr.bf16.mxu1 %v4159_v2  ;;  %v295_v60 = vsel %vm294_vm7, %v291_v57, %v258_v55  ;;  %v296_v45 = vsel %vm294_vm7, %v292_v42, %v262_v39  ;;  %s3466_s10 = sld [smem:[#allocation2 + $0x301]] }
  0x45   :  { %439 = vmatpush1.bf16.msra.mxu0 %v4271_v19  ;;  %v154_v51 = vrot.slane %v4342_v28, %v4409_v44  ;;  %v170_v52 = vrot.slane %v4347_v30, %v4409_v44  ;;  %v186_v54 = vrot.slane %v4351_v31, %v4409_v44  ;;  %v202_v58 = vrot.slane %v4360_v34, %v4409_v44  ;;  %v4432_v34 = vld [vmem:[%s5493_s3] ss:$0 sm:$0xff]  ;;  %s533_s27 = smul.u32 3, %s3461_s23  ;;  %s3467_s14 = sld [smem:[#allocation2 + $0x381]] }
  0x46   :  { %440 = vmatprep.subr.bf16.mxu0 %v4273_v20  ;;  %v218_v28 = vrot.slane %v4366_v37, %v4409_v44  ;;  %v234_v31 = vrot.slane %v4375_v41, %v4409_v44  ;;  %s537_s29 = smul.u32 3, %s3462_s24  ;;  %s3470_s1 = sld [smem:[#allocation2 + $0x2]] }
  0x47   :  { %3676 = vmatpush3.bf16.msra.mxu1 %v4291_v24  ;;  %v273_v27 = vsel %vm270_vm1, %v154_v51, %v170_v52  ;;  %s541_s9 = smul.u32 3, %s3463_s25  ;;  %s534_s12 = scalar_lea.vmem [#allocation5], %s533_s27 }
  0x48   :  { %3677 = vmatprep.subr.bf16.mxu1 %v4159_v2  ;;  %s545_s0 = smul.u32 3, %s3464_s28  ;;  %s538_s13 = scalar_lea.vmem [#allocation5], %s537_s29 }
  0x49   :  { %441 = vmatpush1.bf16.msra.mxu0 %v4282_v22  ;;  %v4482_v51 = vld [vmem:[%s538_s13] sm:$0x7]  ;;  %s549_s15 = smul.u32 3, %s3465_s30  ;;  %s542_s16 = scalar_lea.vmem [#allocation5], %s541_s9 }
  0x4a   :  { %710 = vmatprep.subr.bf16.mxu0 %v4216_v0  ;;  %s553_s17 = smul.u32 3, %s3466_s10  ;;  %s546_s18 = scalar_lea.vmem [#allocation5], %s545_s0 }
  0x4b   :  { %3678 = vmatpush3.bf16.msra.mxu1 %v4299_v25  ;;  %s557_s19 = smul.u32 3, %s3467_s14  ;;  %s550_s20 = scalar_lea.vmem [#allocation5], %s549_s15 }
  0x4c   :  { %459 = vmatmul.mubr.bf16.vlgmr.msra.gmra.mxu0 %v4160_v3  ;;  %3683 = vmatprep.subr.bf16.mxu1 %v4159_v2  ;;  %s554_s21 = scalar_lea.vmem [#allocation5], %s553_s17  ;;  %s3471_s2 = sld [smem:[#allocation2 + $0x82]] }
  0x4d   :  { %711 = vmatpush1.bf16.msra.mxu0 %v4218_v1  ;;  %742 = vmatprep.mubr.bf16.mxu0 %v4160_v3  ;;  %s558_s22 = scalar_lea.vmem [#allocation5], %s557_s19  ;;  %s3472_s23 = sld [smem:[#allocation2 + $0x102]] }
  0x4e   :  { %712 = vmatprep.subr.bf16.mxu0 %v4223_v4  ;;  %3680 = vmatmul.mubr.bf16.vlgmr.msra.gmra.mxu1 %v4160_v3  ;;  %s3473_s24 = sld [smem:[#allocation2 + $0x182]]  ;;  %s813_s25 = smul.u32 3, %s3470_s1 }
  0x4f   :  { %3684 = vmatpush3.bf16.msra.mxu1 %v4239_v9  ;;  %3699 = vmatprep.mubr.msk.bf16.mxu1 %vm4161_vm0, %v4159_v2  ;;  %s3474_s27 = sld [smem:[#allocation2 + $0x202]] }
  0x50   :  { %3685 = vmatprep.subr.bf16.mxu1 %v4159_v2  ;;  %s3475_s29 = sld [smem:[#allocation2 + $0x282]]  ;;  %s814_s10 = scalar_lea.vmem [#allocation5], %s813_s25 }
  0x51   :  { %713 = vmatpush1.bf16.msra.mxu0 %v4228_v5  ;;  %s3476_s9 = sld [smem:[#allocation2 + $0x302]] }
  0x52   :  { %714 = vmatprep.subr.bf16.mxu0 %v4231_v6  ;;  %s817_s26 = smul.u32 3, %s3471_s2  ;;  %s3477_s13 = sld [smem:[#allocation2 + $0x382]] }
  0x53   :  { %3686 = vmatpush3.bf16.msra.mxu1 %v4248_v12  ;;  %s821_s28 = smul.u32 3, %s3472_s23  ;;  %s3481_s1 = sld [smem:[#allocation2 + $0x83]] }
  0x54   :  { %3687 = vmatprep.subr.bf16.mxu1 %v4159_v2  ;;  %s825_s30 = smul.u32 3, %s3473_s24  ;;  %s3482_s2 = sld [smem:[#allocation2 + $0x103]] }
  0x55   :  { %715 = vmatpush1.bf16.msra.mxu0 %v4234_v7  ;;  %s822_s0 = scalar_lea.vmem [#allocation5], %s821_s28  ;;  %s3483_s23 = sld [smem:[#allocation2 + $0x183]] }
  0x56   :  { %716 = vmatprep.subr.bf16.mxu0 %v4237_v8  ;;  %s833_s14 = smul.u32 3, %s3475_s29  ;;  %s826_s15 = scalar_lea.vmem [#allocation5], %s825_s30 }
  0x57   :  { %3688 = vmatpush3.bf16.msra.mxu1 %v4258_v15  ;;  %s3485_s28 = sld [smem:[#allocation2 + $0x283]] }
  0x58   :  { %3689 = vmatprep.subr.bf16.mxu1 %v4159_v2  ;;  %s834_s19 = scalar_lea.vmem [#allocation5], %s833_s14  ;;  %s3486_s30 = sld [smem:[#allocation2 + $0x303]] }
  0x59   :  { %717 = vmatpush1.bf16.msra.mxu0 %v4242_v10  ;;  %s1101_s25 = smul.u32 3, %s3481_s1  ;;  %s3492_s1 = sld [smem:[#allocation2 + $0x104]] }
  0x5a   :  { %718 = vmatprep.subr.bf16.mxu0 %v4244_v11 }
  0x5b   :  { %3690 = vmatpush3.bf16.msra.mxu1 %v4268_v18  ;;  %s1109_s29 = smul.u32 3, %s3483_s23 }
  0x5c   :  { %3691 = vmatprep.subr.bf16.mxu1 %v4159_v2 }
  0x5d   :  { %719 = vmatpush1.bf16.msra.mxu0 %v4251_v13  ;;  %s1110_s14 = scalar_lea.vmem [#allocation5], %s1109_s29  ;;  %s3496_s29 = sld [smem:[#allocation2 + $0x304]] }
  0x5e   :  { %720 = vmatprep.subr.bf16.mxu0 %v4254_v14 }
  0x5f   :  { %3692 = vmatpush3.bf16.msra.mxu1 %v4276_v21 }
  0x60   :  { %3693 = vmatprep.subr.bf16.mxu1 %v4159_v2 }
  0x61   :  { %721 = vmatpush1.bf16.msra.mxu0 %v4262_v16 }
  0x62   :  { %722 = vmatprep.subr.bf16.mxu0 %v4265_v17 }
  0x63   :  { %3694 = vmatpush3.bf16.msra.mxu1 %v4286_v23 }
  0x64   :  { %3695 = vmatprep.subr.bf16.mxu1 %v4159_v2 }
  0x65   :  { %723 = vmatpush1.bf16.msra.mxu0 %v4271_v19 }
  0x66   :  { %724 = vmatprep.subr.bf16.mxu0 %v4273_v20 }
  0x67   :  { %3696 = vmatpush3.bf16.msra.mxu1 %v4291_v24 }
  0x68   :  { %3697 = vmatprep.subr.bf16.mxu1 %v4159_v2 }
  0x69   :  { %725 = vmatpush1.bf16.msra.mxu0 %v4282_v22 }
  0x6a   :  { %994 = vmatprep.subr.bf16.mxu0 %v4216_v0 }
  0x6b   :  { %3698 = vmatpush3.bf16.msra.mxu1 %v4299_v25 }
  0x6c   :  { %3703 = vmatprep.subr.bf16.mxu1 %v4159_v2 }
 0x10c   :  { %v460_v62 = vpop.f32.mrf.mxu0 }
 0x10d   :  { %v507_v26 = vadd.f32 %v460_v62, %v295_v60  ;;  %v277_v60 = vsel %vm274_vm2, %v273_v27, %v186_v54  ;;  %v250_v62 = vrot.slane %v137_v46, %v4409_v44  ;;  %v4488_v54 = vld [vmem:[%s542_s16] sm:$0x7]  ;;  %s837_s16 = smul.u32 3, %s3476_s9 }
 0x10e   :  { %v462_v33 = vpop.f32.mrf.mxu0  ;;  %v501_v47 = vpop.f32.mrf.mxu1  ;;  %v281_v30 = vsel %vm278_vm3, %v277_v60, %v202_v58  ;;  %v547_v27 = vld [vmem:[%s546_s18] sm:$0x7]  ;;  %s841_s18 = smul.u32 3, %s3477_s13 }
 0x10f   :  { %v3458_v35 = vmul.f32 -1.442695, %v507_v26  ;;  %v514_v49 = vadd.f32 %v462_v33, %v296_v45  ;;  %v285_v61 = vsel %vm282_vm4, %v281_v30, %v218_v28  ;;  %v266_v26 = vrot.slane %v141_v50, %v4409_v44  ;;  %s1117_s13 = smul.u32 3, %s3485_s28 }
 0x110   :  { %v464_v38 = vpop.f32.mrf.mxu0  ;;  %v3681_v48 = vpop.f32.mrf.mxu1  ;;  %v289_v63 = vsel %vm286_vm5, %v285_v61, %v234_v31  ;;  %v521_v32 = vadd.f32 %v4432_v34, %v501_v47  ;;  %v4478_v47 = vld [vmem:[%s530_s11] sm:$0x7]  ;;  %v628_v60 = vrot.slane %v547_v27, %v4345_v29  ;;  %s818_s11 = scalar_lea.vmem [#allocation5], %s817_s26  ;;  %s3484_s26 = sld [smem:[#allocation2 + $0x203]] }
 0x111   :  { %3940 = vpow2.f32 %v3458_v35  ;;  %v3459_v56 = vmul.f32 -1.442695, %v514_v49  ;;  %v293_v37 = vsel %vm290_vm6, %v289_v63, %v250_v62  ;;  %v4480_v49 = vld [vmem:[%s534_s12] sm:$0x7]  ;;  %v564_v52 = vrot.slane %v4478_v47, %v4345_v29  ;;  %s829_s12 = smul.u32 3, %s3474_s27 }
 0x112   :  { %v465_v43 = vpop.f32.mrf.mxu0  ;;  %v504_v53 = vpop.f32.mrf.mxu1  ;;  %v297_v41 = vsel %vm294_vm7, %v293_v37, %v266_v26  ;;  %v568_v30 = vrot.slane %v4478_v47, %v4372_v40  ;;  %v584_v31 = vrot.slane %v4480_v49, %v4372_v40  ;;  %v555_v61 = vld [vmem:[%s554_s21] sm:$0x7]  ;;  %v600_v26 = vrot.slane %v4482_v51, %v4372_v40  ;;  %s842_s21 = scalar_lea.vmem [#allocation5], %s841_s18  ;;  %s1105_s27 = smul.u32 3, %s3482_s2 }
 0x113   :  { %3942 = vpow2.f32 %v3459_v56  ;;  %v580_v53 = vrot.slane %v4480_v49, %v4345_v29  ;;  %v559_v37 = vld [vmem:[%s558_s22] sm:$0x7]  ;;  %s830_s17 = scalar_lea.vmem [#allocation5], %s829_s12  ;;  %s3480_s22 = sld [smem:[#allocation2 + $0x3]] }
 0x114   :  { %v3682_v55 = vpop.f32.mrf.mxu1  ;;  %s1106_s12 = scalar_lea.vmem [#allocation5], %s1105_s27  ;;  %s1118_s18 = scalar_lea.vmem [#allocation5], %s1117_s13 }
 0x115   :  { %v596_v55 = vrot.slane %v4482_v51, %v4345_v29  ;;  %v688_v56 = vsel %vm270_vm1, %v564_v52, %v580_v53  ;;  %s3493_s2 = sld [smem:[#allocation2 + $0x184]] }
 0x116   :  { %s3495_s27 = sld [smem:[#allocation2 + $0x284]] }
 0x117   :  { %v691_v58 = vsel %vm274_vm2, %v688_v56, %v596_v55  ;;  %v664_v56 = vrot.slane %v555_v61, %v4372_v40 }
 0x119   :  { %s1097_s24 = smul.u32 3, %s3480_s22  ;;  %s3491_s22 = sld [smem:[#allocation2 + $0x84]] }
 0x11b   :  { %s1098_s9 = scalar_lea.vmem [#allocation5], %s1097_s24  ;;  %s1393_s28 = smul.u32 3, %s3493_s2 }
 0x11c   :  { %s3502_s2 = sld [smem:[#allocation2 + $0x105]] }
 0x11d   :  { %s1394_s13 = scalar_lea.vmem [#allocation5], %s1393_s28  ;;  %s3505_s28 = sld [smem:[#allocation2 + $0x285]] }
 0x11e   :  { %v3941_v57 = vpop.eup %3940 }
 0x11f   :  { %v511_v59 = vadd.f32 1.0, %v3941_v57  ;;  %v612_v57 = vrot.slane %v4488_v54, %v4345_v29  ;;  %s1385_s24 = smul.u32 3, %s3491_s22  ;;  %s3500_s22 = sld [smem:[#allocation2 + $0x5]] }
 0x120   :  { %v3943_v33 = vpop.eup %3942 }
 0x121   :  { %3944 = vrcp.f32 %v511_v59  ;;  %v518_v38 = vadd.f32 1.0, %v3943_v33  ;;  %v551_v59 = vld [vmem:[%s550_s20] sm:$0x7]  ;;  %v694_v28 = vsel %vm278_vm3, %v691_v58, %v612_v57  ;;  %v689_v33 = vsel %vm270_vm1, %v568_v30, %v584_v31  ;;  %s838_s20 = scalar_lea.vmem [#allocation5], %s837_s16 }
 0x122   :  { %v644_v62 = vrot.slane %v551_v59, %v4345_v29  ;;  %v697_v63 = vsel %vm282_vm4, %v694_v28, %v628_v60 }
 0x12e   :  { %v3945_v35 = vpop.eup %3944 }
 0x12f   :  { %v522_v36 = vmul.f32 %v3945_v35, %v521_v32  ;;  %v660_v32 = vrot.slane %v555_v61, %v4345_v29  ;;  %v700_v35 = vsel %vm286_vm5, %v697_v63, %v644_v62  ;;  %v680_v62 = vrot.slane %v559_v37, %v4372_v40 }
 0x131   :  { %v523_v46 = vadd.f32 %v522_v36, %v297_v41  ;;  %v616_v41 = vrot.slane %v4488_v54, %v4372_v40  ;;  %v676_v36 = vrot.slane %v559_v37, %v4345_v29 }
 0x133   :  { %3946 = vtanh.f32 %v523_v46  ;;  %v703_v46 = vsel %vm290_vm6, %v700_v35, %v660_v32  ;;  %v572_v35 = vrot.slane %v4478_v47, %v4409_v44  ;;  %v636_v47 = vrot.slane %v547_v27, %v4409_v44 }
 0x134   :  { %3948 = vrcp.f32 %v518_v38  ;;  %v692_v38 = vsel %vm274_vm2, %v689_v33, %v600_v26 }
 0x140   :  { %v3947_v39 = vpop.eup %3946 }
 0x141   :  { %v525_v42 = vsub.f32 0.0, %v3947_v39  ;;  %v3949_v43 = vpop.eup %3948 }
 0x143   :  { %v526_v45 = vmul.f32 %v3949_v43, %v525_v42  ;;  %v695_v42 = vsel %vm278_vm3, %v692_v38, %v616_v41  ;;  %v706_v43 = vsel %vm294_vm7, %v703_v46, %v676_v36  ;;  %v588_v41 = vrot.slane %v4480_v49, %v4409_v44 }
 0x144   :  { %v604_v38 = vrot.slane %v4482_v51, %v4409_v44 }
 0x145   :  { %v4439_v48 = vadd.f32 %v3947_v39, %v526_v45  ;;  %v632_v39 = vrot.slane %v547_v27, %v4372_v40  ;;  %v648_v45 = vrot.slane %v551_v59, %v4372_v40  ;;  %v690_v46 = vsel %vm270_vm1, %v572_v35, %v588_v41 }
 0x147   :  { %v709_v50 = vpack.c.bf16 %v4439_v48, %v4439_v48  ;;  %v698_v53 = vsel %vm282_vm4, %v695_v42, %v632_v39 }
 0x148   :  { %v701_v28 = vsel %vm286_vm5, %v698_v53, %v648_v45  ;;  %v652_v53 = vrot.slane %v551_v59, %v4409_v44 }
 0x149   :  { %743 = vmatmul.mubr.bf16.vlgmr.msra.gmra.mxu0 %v709_v50  ;;  %3700 = vmatmul.mubr.bf16.vlgmr.msra.gmra.mxu1 %v709_v50  ;;  %v704_v63 = vsel %vm290_vm6, %v701_v28, %v664_v56 }
 0x14a   :  { %995 = vmatpush1.bf16.msra.mxu0 %v4218_v1  ;;  %3704 = vmatpush3.bf16.msra.mxu1 %v4239_v9  ;;  %v707_v33 = vsel %vm294_vm7, %v704_v63, %v680_v62 }
 0x14b   :  { %996 = vmatprep.subr.bf16.mxu0 %v4223_v4  ;;  %3705 = vmatprep.subr.bf16.mxu1 %v4159_v2 }
 0x14c   :  { %1026 = vmatprep.mubr.bf16.mxu0 %v4160_v3  ;;  %3719 = vmatprep.mubr.msk.bf16.mxu1 %vm4161_vm0, %v4159_v2 }
 0x14e   :  { %997 = vmatpush1.bf16.msra.mxu0 %v4228_v5  ;;  %3706 = vmatpush3.bf16.msra.mxu1 %v4248_v12 }
 0x14f   :  { %998 = vmatprep.subr.bf16.mxu0 %v4231_v6  ;;  %3707 = vmatprep.subr.bf16.mxu1 %v4159_v2 }
 0x152   :  { %999 = vmatpush1.bf16.msra.mxu0 %v4234_v7  ;;  %3708 = vmatpush3.bf16.msra.mxu1 %v4258_v15 }
 0x153   :  { %1000 = vmatprep.subr.bf16.mxu0 %v4237_v8  ;;  %3709 = vmatprep.subr.bf16.mxu1 %v4159_v2 }
 0x156   :  { %1001 = vmatpush1.bf16.msra.mxu0 %v4242_v10  ;;  %3710 = vmatpush3.bf16.msra.mxu1 %v4268_v18 }
 0x157   :  { %1002 = vmatprep.subr.bf16.mxu0 %v4244_v11  ;;  %3711 = vmatprep.subr.bf16.mxu1 %v4159_v2 }
 0x15a   :  { %1003 = vmatpush1.bf16.msra.mxu0 %v4251_v13  ;;  %3712 = vmatpush3.bf16.msra.mxu1 %v4276_v21 }
 0x15b   :  { %1004 = vmatprep.subr.bf16.mxu0 %v4254_v14  ;;  %3713 = vmatprep.subr.bf16.mxu1 %v4159_v2 }
 0x15e   :  { %1005 = vmatpush1.bf16.msra.mxu0 %v4262_v16  ;;  %3714 = vmatpush3.bf16.msra.mxu1 %v4286_v23 }
 0x15f   :  { %1006 = vmatprep.subr.bf16.mxu0 %v4265_v17  ;;  %3715 = vmatprep.subr.bf16.mxu1 %v4159_v2 }
 0x162   :  { %1007 = vmatpush1.bf16.msra.mxu0 %v4271_v19  ;;  %3716 = vmatpush3.bf16.msra.mxu1 %v4291_v24 }
 0x163   :  { %1008 = vmatprep.subr.bf16.mxu0 %v4273_v20  ;;  %3717 = vmatprep.subr.bf16.mxu1 %v4159_v2 }
 0x166   :  { %1009 = vmatpush1.bf16.msra.mxu0 %v4282_v22  ;;  %3718 = vmatpush3.bf16.msra.mxu1 %v4299_v25 }
 0x167   :  { %1278 = vmatprep.subr.bf16.mxu0 %v4216_v0  ;;  %3723 = vmatprep.subr.bf16.mxu1 %v4159_v2 }
 0x209   :  { %v744_v50 = vpop.f32.mrf.mxu0  ;;  %v785_v52 = vpop.f32.mrf.mxu1 }
 0x20a   :  { %v791_v55 = vadd.f32 %v744_v50, %v706_v43  ;;  %v620_v43 = vrot.slane %v4488_v54, %v4409_v44  ;;  %v693_v50 = vsel %vm274_vm2, %v690_v46, %v604_v38 }
 0x20b   :  { %v746_v57 = vpop.f32.mrf.mxu0  ;;  %v3701_v58 = vpop.f32.mrf.mxu1 }
 0x20c   :  { %v3468_v60 = vmul.f32 -1.442695, %v791_v55  ;;  %v798_v36 = vadd.f32 %v746_v57, %v707_v33  ;;  %v696_v49 = vsel %vm278_vm3, %v693_v50, %v620_v43  ;;  %v668_v55 = vrot.slane %v555_v61, %v4409_v44  ;;  %v843_v33 = vld [vmem:[%s842_s21] sm:$0x7]  ;;  %s3490_s21 = sld [smem:[#allocation2 + $0x4]] }
 0x20d   :  { %v748_v30 = vpop.f32.mrf.mxu0  ;;  %v788_v31 = vpop.f32.mrf.mxu1  ;;  %v699_v51 = vsel %vm282_vm4, %v696_v49, %v636_v47  ;;  %v684_v57 = vrot.slane %v559_v37, %v4409_v44  ;;  %v960_v46 = vrot.slane %v843_v33, %v4345_v29 }
 0x20e   :  { %3950 = vpow2.f32 %v3468_v60  ;;  %v3469_v39 = vmul.f32 -1.442695, %v798_v36  ;;  %v702_v56 = vsel %vm286_vm5, %v699_v51, %v652_v53  ;;  %v805_v60 = vadd.f32 %v4432_v34, %v785_v52 }
 0x20f   :  { %v749_v26 = vpop.f32.mrf.mxu0  ;;  %v3702_v32 = vpop.f32.mrf.mxu1  ;;  %v705_v54 = vsel %vm290_vm6, %v702_v56, %v668_v55 }
 0x210   :  { %3952 = vpow2.f32 %v3469_v39  ;;  %v708_v27 = vsel %vm294_vm7, %v705_v54, %v684_v57 }
 0x212   :  { %s1381_s23 = smul.u32 3, %s3490_s21  ;;  %s3510_s21 = sld [smem:[#allocation2 + $0x6]] }
 0x21b   :  { %v3951_v42 = vpop.eup %3950 }
 0x21c   :  { %v795_v45 = vadd.f32 1.0, %v3951_v42 }
 0x21d   :  { %v3953_v58 = vpop.eup %3952 }
 0x21e   :  { %3954 = vrcp.f32 %v795_v45  ;;  %v802_v62 = vadd.f32 1.0, %v3953_v58 }
 0x22b   :  { %v3955_v28 = vpop.eup %3954 }
 0x22c   :  { %v806_v30 = vmul.f32 %v3955_v28, %v805_v60 }
 0x22e   :  { %v807_v31 = vadd.f32 %v806_v30, %v708_v27  ;;  %v964_v30 = vrot.slane %v843_v33, %v4372_v40 }
 0x230   :  { %3956 = vtanh.f32 %v807_v31 }
 0x231   :  { %3958 = vrcp.f32 %v802_v62 }
 0x23d   :  { %v3957_v59 = vpop.eup %3956 }
 0x23e   :  { %v809_v61 = vsub.f32 %v4439_v48, %v3957_v59  ;;  %v3959_v63 = vpop.eup %3958 }
 0x240   :  { %v810_v26 = vmul.f32 %v3959_v63, %v809_v61 }
 0x242   :  { %v4545_v32 = vadd.f32 %v3957_v59, %v810_v26 }
 0x244   :  { %v993_v37 = vpack.c.bf16 %v4545_v32, %v4545_v32 }
 0x246   :  { %1027 = vmatmul.mubr.bf16.vlgmr.msra.gmra.mxu0 %v993_v37  ;;  %3720 = vmatmul.mubr.bf16.vlgmr.msra.gmra.mxu1 %v993_v37 }
 0x247   :  { %1279 = vmatpush1.bf16.msra.mxu0 %v4218_v1  ;;  %3724 = vmatpush3.bf16.msra.mxu1 %v4239_v9  ;;  %v4584_v1 = vld [vmem:[%s814_s10] sm:$0x7]  ;;  %s1102_s10 = scalar_lea.vmem [#allocation5], %s1101_s25  ;;  %s3494_s25 = sld [smem:[#allocation2 + $0x204]] }
 0x248   :  { %1280 = vmatprep.subr.bf16.mxu0 %v4223_v4  ;;  %3725 = vmatprep.subr.bf16.mxu1 %v4159_v2  ;;  %v4586_v4 = vld [vmem:[%s818_s11] sm:$0x7]  ;;  %v856_v63 = vrot.slane %v4584_v1, %v4409_v44  ;;  %s1113_s11 = smul.u32 3, %s3484_s26 }
 0x249   :  { %1310 = vmatprep.mubr.bf16.mxu0 %v4160_v3  ;;  %3739 = vmatprep.mubr.msk.bf16.mxu1 %vm4161_vm0, %v4159_v2  ;;  %v872_v26 = vrot.slane %v4586_v4, %v4409_v44  ;;  %s1389_s26 = smul.u32 3, %s3492_s1  ;;  %s3501_s1 = sld [smem:[#allocation2 + $0x85]] }
 0x24a   :  { %s1114_s16 = scalar_lea.vmem [#allocation5], %s1113_s11 }
 0x24b   :  { %1281 = vmatpush1.bf16.msra.mxu0 %v4228_v5  ;;  %3726 = vmatpush3.bf16.msra.mxu1 %v4248_v12  ;;  %v848_v5 = vrot.slane %v4584_v1, %v4345_v29  ;;  %s1390_s11 = scalar_lea.vmem [#allocation5], %s1389_s26  ;;  %s3504_s26 = sld [smem:[#allocation2 + $0x205]] }
 0x24c   :  { %1282 = vmatprep.subr.bf16.mxu0 %v4231_v6  ;;  %3727 = vmatprep.subr.bf16.mxu1 %v4159_v2  ;;  %v864_v6 = vrot.slane %v4586_v4, %v4345_v29 }
 0x24e   :  { %v972_v9 = vsel %vm270_vm1, %v848_v5, %v864_v6  ;;  %v974_v6 = vsel %vm270_vm1, %v856_v63, %v872_v26 }
 0x24f   :  { %1283 = vmatpush1.bf16.msra.mxu0 %v4234_v7  ;;  %3728 = vmatpush3.bf16.msra.mxu1 %v4258_v15  ;;  %v4594_v7 = vld [vmem:[%s826_s15] sm:$0x7]  ;;  %s1121_s15 = smul.u32 3, %s3486_s30  ;;  %s1382_s30 = scalar_lea.vmem [#allocation5], %s1381_s23 }
 0x250   :  { %1284 = vmatprep.subr.bf16.mxu0 %v4237_v8  ;;  %3729 = vmatprep.subr.bf16.mxu1 %v4159_v2  ;;  %v900_v38 = vrot.slane %v4594_v7, %v4372_v40  ;;  %s3503_s23 = sld [smem:[#allocation2 + $0x185]] }
 0x253   :  { %1285 = vmatpush1.bf16.msra.mxu0 %v4242_v10  ;;  %3730 = vmatpush3.bf16.msra.mxu1 %v4268_v18  ;;  %v831_v10 = vld [vmem:[%s830_s17] sm:$0x7] }
 0x254   :  { %1286 = vmatprep.subr.bf16.mxu0 %v4244_v11  ;;  %3731 = vmatprep.subr.bf16.mxu1 %v4159_v2  ;;  %v896_v11 = vrot.slane %v4594_v7, %v4345_v29  ;;  %v916_v43 = vrot.slane %v831_v10, %v4372_v40 }
 0x257   :  { %1287 = vmatpush1.bf16.msra.mxu0 %v4251_v13  ;;  %3732 = vmatpush3.bf16.msra.mxu1 %v4276_v21  ;;  %v835_v13 = vld [vmem:[%s834_s19] sm:$0x7]  ;;  %s1122_s19 = scalar_lea.vmem [#allocation5], %s1121_s15 }
 0x258   :  { %1288 = vmatprep.subr.bf16.mxu0 %v4254_v14  ;;  %3733 = vmatprep.subr.bf16.mxu1 %v4159_v2  ;;  %v912_v14 = vrot.slane %v831_v10, %v4345_v29  ;;  %v932_v47 = vrot.slane %v835_v13, %v4372_v40 }
 0x25b   :  { %1289 = vmatpush1.bf16.msra.mxu0 %v4262_v16  ;;  %3734 = vmatpush3.bf16.msra.mxu1 %v4286_v23  ;;  %v852_v16 = vrot.slane %v4584_v1, %v4372_v40  ;;  %v920_v1 = vrot.slane %v831_v10, %v4409_v44 }
 0x25c   :  { %1290 = vmatprep.subr.bf16.mxu0 %v4265_v17  ;;  %3735 = vmatprep.subr.bf16.mxu1 %v4159_v2  ;;  %v868_v17 = vrot.slane %v4586_v4, %v4372_v40 }
 0x25e   :  { %v973_v41 = vsel %vm270_vm1, %v852_v16, %v868_v17 }
 0x25f   :  { %1291 = vmatpush1.bf16.msra.mxu0 %v4271_v19  ;;  %3736 = vmatpush3.bf16.msra.mxu1 %v4291_v24  ;;  %v839_v19 = vld [vmem:[%s838_s20] sm:$0x7] }
 0x260   :  { %1292 = vmatprep.subr.bf16.mxu0 %v4273_v20  ;;  %3737 = vmatprep.subr.bf16.mxu1 %v4159_v2  ;;  %v928_v20 = vrot.slane %v835_v13, %v4345_v29  ;;  %v944_v35 = vrot.slane %v839_v19, %v4345_v29  ;;  %v948_v56 = vrot.slane %v839_v19, %v4372_v40 }
 0x261   :  { %v952_v16 = vrot.slane %v839_v19, %v4409_v44 }
 0x263   :  { %1293 = vmatpush1.bf16.msra.mxu0 %v4282_v22  ;;  %3738 = vmatpush3.bf16.msra.mxu1 %v4299_v25 }
 0x264   :  { %1562 = vmatprep.subr.bf16.mxu0 %v4216_v0  ;;  %3743 = vmatprep.subr.bf16.mxu1 %v4159_v2  ;;  %v4588_v0 = vld [vmem:[%s822_s0] sm:$0x7]  ;;  %s3487_s0 = sld [smem:[#allocation2 + $0x383]] }
 0x265   :  { %v880_v8 = vrot.slane %v4588_v0, %v4345_v29  ;;  %v884_v52 = vrot.slane %v4588_v0, %v4372_v40  ;;  %v888_v5 = vrot.slane %v4588_v0, %v4409_v44 }
 0x267   :  { %v975_v12 = vsel %vm274_vm2, %v972_v9, %v880_v8  ;;  %v976_v39 = vsel %vm274_vm2, %v973_v41, %v884_v52 }
 0x268   :  { %v978_v15 = vsel %vm278_vm3, %v975_v12, %v896_v11  ;;  %v979_v45 = vsel %vm278_vm3, %v976_v39, %v900_v38  ;;  %v904_v11 = vrot.slane %v4594_v7, %v4409_v44 }
 0x269   :  { %v981_v48 = vsel %vm282_vm4, %v978_v15, %v912_v14  ;;  %v982_v51 = vsel %vm282_vm4, %v979_v45, %v916_v43  ;;  %v977_v14 = vsel %vm274_vm2, %v974_v6, %v888_v5  ;;  %v936_v15 = vrot.slane %v835_v13, %v4409_v44  ;;  %v4655_v43 = vld [vmem:[#allocation6 + $0xa8] ss:$12 sps:$4 sm:$0xff]   ;;  %v4658_v45 = vld [vmem:[#allocation6 + $0xb0] ss:$12 sps:$4 sm:$0xff]  }
 0x26a   :  { %v984_v36 = vsel %vm286_vm5, %v981_v48, %v928_v20  ;;  %v985_v60 = vsel %vm286_vm5, %v982_v51, %v932_v47  ;;  %v980_v4 = vsel %vm278_vm3, %v977_v14, %v904_v11  ;;  %v968_v20 = vrot.slane %v843_v33, %v4409_v44  ;;  %v4671_v47 = vld [vmem:[#allocation6 + $0x98] ss:$12 sps:$4 sm:$0xff]   ;;  %v4681_v51 = vld [vmem:[#allocation6 + $0x80] ss:$12 sps:$4 sm:$0xff]   ;;  %s1125_s17 = smul.u32 3, %s3487_s0 }
 0x26b   :  { %v987_v42 = vsel %vm290_vm6, %v984_v36, %v944_v35  ;;  %v988_v31 = vsel %vm290_vm6, %v985_v60, %v948_v56  ;;  %v983_v0 = vsel %vm282_vm4, %v980_v4, %v920_v1  ;;  %v4688_v56 = vld [vmem:[#allocation6 + $0x60] ss:$12 sps:$4 sm:$0xff]   ;;  %v4704_v60 = vld [vmem:[#allocation6 + $0x30] ss:$12 sps:$4 sm:$0xff]   ;;  %s1401_s0 = smul.u32 3, %s3495_s27 }
 0x26c   :  { %v990_v50 = vsel %vm294_vm7, %v987_v42, %v960_v46  ;;  %v991_v61 = vsel %vm294_vm7, %v988_v31, %v964_v30  ;;  %v986_v17 = vsel %vm286_vm5, %v983_v0, %v936_v15  ;;  %v4736_v31 = vld [vmem:[%s1110_s14] sm:$0x7]  ;;  %s1126_s20 = scalar_lea.vmem [#allocation5], %s1125_s17  ;;  %s1405_s14 = smul.u32 3, %s3496_s29 }
 0x26d   :  { %v989_v7 = vsel %vm290_vm6, %v986_v17, %v952_v16  ;;  %v1180_v63 = vrot.slane %v4736_v31, %v4345_v29  ;;  %v1123_v11 = vld [vmem:[%s1122_s19] sm:$0x7]  ;;  %v1184_v17 = vrot.slane %v4736_v31, %v4372_v40  ;;  %s1402_s17 = scalar_lea.vmem [#allocation5], %s1401_s0  ;;  %s1673_s27 = smul.u32 3, %s3502_s2 }
 0x26e   :  { %v992_v10 = vsel %vm294_vm7, %v989_v7, %v968_v20  ;;  %v1127_v4 = vld [vmem:[%s1126_s20] sm:$0x7]  ;;  %v1228_v15 = vrot.slane %v1123_v11, %v4345_v29  ;;  %s1677_s29 = smul.u32 3, %s3503_s23  ;;  %s3507_s0 = sld [smem:[#allocation2 + $0x385]] }
 0x26f   :  { %v1244_v20 = vrot.slane %v1127_v4, %v4345_v29  ;;  %s3513_s2 = sld [smem:[#allocation2 + $0x186]]  ;;  %s1949_s23 = smul.u32 3, %s3510_s21 }
 0x270   :  { %s3521_s21 = sld [smem:[#allocation2 + $0x87]] }
 0x306   :  { %v1028_v49 = vpop.f32.mrf.mxu0  ;;  %v1069_v53 = vpop.f32.mrf.mxu1 }
 0x307   :  { %v1075_v55 = vadd.f32 %v1028_v49, %v990_v50  ;;  %v1089_v52 = vadd.f32 %v4432_v34, %v1069_v53  ;;  %v4661_v50 = vld [vmem:[#allocation6 + $0x94] ss:$12 sps:$4 sm:$0xff]   ;;  %v4674_v49 = vld [vmem:[#allocation6 + $0x7c] ss:$12 sps:$4 sm:$0xff]   ;;  %v4678_v53 = vld [vmem:[#allocation6 + $0x78] ss:$12 sps:$4 sm:$0xff]  }
 0x308   :  { %v1030_v57 = vpop.f32.mrf.mxu0  ;;  %v3721_v54 = vpop.f32.mrf.mxu1 }
 0x309   :  { %v3478_v58 = vmul.f32 -1.442695, %v1075_v55  ;;  %v1082_v37 = vadd.f32 %v1030_v57, %v991_v61  ;;  %v4684_v55 = vld [vmem:[#allocation6 + $0x64] ss:$12 sps:$4 sm:$0xff]   ;;  %v4692_v57 = vld [vmem:[#allocation6 + $0x4c] ss:$12 sps:$4 sm:$0xff]  }
 0x30a   :  { %v1032_v28 = vpop.f32.mrf.mxu0  ;;  %v1072_v27 = vpop.f32.mrf.mxu1  ;;  %v4696_v54 = vld [vmem:[#allocation6 + $0x48] ss:$12 sps:$4 sm:$0xff]  }
 0x30b   :  { %3960 = vpow2.f32 %v3478_v58  ;;  %v3479_v8 = vmul.f32 -1.442695, %v1082_v37  ;;  %v4700_v58 = vld [vmem:[#allocation6 + $0x34] ss:$12 sps:$4 sm:$0xff]   ;;  %v4712_v28 = vld [vmem:[#allocation6 + $0x18] ss:$12 sps:$4 sm:$0xff]  }
 0x30c   :  { %v1033_v62 = vpop.f32.mrf.mxu0  ;;  %v3722_v59 = vpop.f32.mrf.mxu1  ;;  %v1115_v61 = vld [vmem:[%s1114_s16] sm:$0x7] }
 0x30d   :  { %3962 = vpow2.f32 %v3479_v8  ;;  %v1119_v37 = vld [vmem:[%s1118_s18] sm:$0x7]  ;;  %v1196_v5 = vrot.slane %v1115_v61, %v4345_v29  ;;  %s1406_s18 = scalar_lea.vmem [#allocation5], %s1405_s14  ;;  %s1678_s14 = scalar_lea.vmem [#allocation5], %s1677_s29 }
 0x30e   :  { %s3516_s29 = sld [smem:[#allocation2 + $0x306]] }
 0x318   :  { %v3961_v9 = vpop.eup %3960 }
 0x319   :  { %v1079_v12 = vadd.f32 1.0, %v3961_v9 }
 0x31a   :  { %v3963_v48 = vpop.eup %3962 }
 0x31b   :  { %3964 = vrcp.f32 %v1079_v12  ;;  %v1086_v38 = vadd.f32 1.0, %v3963_v48  ;;  %v1212_v12 = vrot.slane %v1119_v37, %v4345_v29 }
 0x328   :  { %v3965_v35 = vpop.eup %3964 }
 0x329   :  { %v1090_v41 = vmul.f32 %v3965_v35, %v1089_v52  ;;  %v1200_v52 = vrot.slane %v1115_v61, %v4372_v40 }
 0x32b   :  { %v1091_v36 = vadd.f32 %v1090_v41, %v992_v10  ;;  %v1216_v41 = vrot.slane %v1119_v37, %v4372_v40 }
 0x32d   :  { %3966 = vtanh.f32 %v1091_v36 }
 0x32e   :  { %3968 = vrcp.f32 %v1086_v38 }
 0x33a   :  { %v3967_v13 = vpop.eup %3966 }
 0x33b   :  { %v1093_v19 = vsub.f32 %v4545_v32, %v3967_v13  ;;  %v3969_v46 = vpop.eup %3968  ;;  %v4668_v32 = vld [vmem:[#allocation6 + $0x90] ss:$12 sps:$4 sm:$0xff]  }
 0x33d   :  { %v1094_v39 = vmul.f32 %v3969_v46, %v1093_v19  ;;  %v1232_v46 = vrot.slane %v1123_v11, %v4372_v40 }
 0x33f   :  { %v4651_v42 = vadd.f32 %v3967_v13, %v1094_v39 }
 0x341   :  { %v1277_v33 = vpack.c.bf16 %v4651_v42, %v4651_v42 }
 0x343   :  { %1311 = vmatmul.mubr.bf16.vlgmr.msra.gmra.mxu0 %v1277_v33  ;;  %3740 = vmatmul.mubr.bf16.vlgmr.msra.gmra.mxu1 %v1277_v33 }
 0x344   :  { %1563 = vmatpush1.bf16.msra.mxu0 %v4655_v43  ;;  %3744 = vmatpush3.bf16.msra.mxu1 %v4658_v45 }
 0x345   :  { %1564 = vmatprep.subr.bf16.mxu0 %v4661_v50  ;;  %3745 = vmatprep.subr.bf16.mxu1 %v4159_v2 }
 0x346   :  { %1594 = vmatprep.mubr.bf16.mxu0 %v4160_v3  ;;  %3759 = vmatprep.mubr.msk.bf16.mxu1 %vm4161_vm0, %v4159_v2 }
 0x348   :  { %1565 = vmatpush1.bf16.msra.mxu0 %v4668_v32  ;;  %3746 = vmatpush3.bf16.msra.mxu1 %v4671_v47 }
 0x349   :  { %1566 = vmatprep.subr.bf16.mxu0 %v4674_v49  ;;  %3747 = vmatprep.subr.bf16.mxu1 %v4159_v2 }
 0x34c   :  { %1567 = vmatpush1.bf16.msra.mxu0 %v4678_v53  ;;  %3748 = vmatpush3.bf16.msra.mxu1 %v4681_v51 }
 0x34d   :  { %1568 = vmatprep.subr.bf16.mxu0 %v4684_v55  ;;  %3749 = vmatprep.subr.bf16.mxu1 %v4159_v2 }
 0x350   :  { %1569 = vmatpush1.bf16.msra.mxu0 %v4688_v56  ;;  %3750 = vmatpush3.bf16.msra.mxu1 %v4268_v18  ;;  %v4708_v18 = vld [vmem:[#allocation6 + $0x1c] ss:$12 sps:$4 sm:$0xff]  }
 0x351   :  { %1570 = vmatprep.subr.bf16.mxu0 %v4692_v57  ;;  %3751 = vmatprep.subr.bf16.mxu1 %v4159_v2 }
 0x354   :  { %1571 = vmatpush1.bf16.msra.mxu0 %v4696_v54  ;;  %3752 = vmatpush3.bf16.msra.mxu1 %v4276_v21  ;;  %v4716_v21 = vld [vmem:[#allocation6 + $0x4] ss:$12 sps:$4 sm:$0xff]  }
 0x355   :  { %1572 = vmatprep.subr.bf16.mxu0 %v4700_v58  ;;  %3753 = vmatprep.subr.bf16.mxu1 %v4159_v2 }
 0x358   :  { %1573 = vmatpush1.bf16.msra.mxu0 %v4704_v60  ;;  %3754 = vmatpush3.bf16.msra.mxu1 %v4286_v23  ;;  %v4722_v23 = vld [vmem:[#allocation6 + $0xac] ss:$12 sps:$4 sm:$0xff]  }
 0x359   :  { %1574 = vmatprep.subr.bf16.mxu0 %v4708_v18  ;;  %3755 = vmatprep.subr.bf16.mxu1 %v4159_v2 }
 0x35c   :  { %1575 = vmatpush1.bf16.msra.mxu0 %v4712_v28  ;;  %3756 = vmatpush3.bf16.msra.mxu1 %v4291_v24  ;;  %v4728_v24 = vld [vmem:[%s1102_s10] sm:$0x7]  ;;  %s1397_s10 = smul.u32 3, %s3494_s25 }
 0x35d   :  { %1576 = vmatprep.subr.bf16.mxu0 %v4716_v21  ;;  %3757 = vmatprep.subr.bf16.mxu1 %v4159_v2  ;;  %v1148_v30 = vrot.slane %v4728_v24, %v4345_v29  ;;  %v1152_v9 = vrot.slane %v4728_v24, %v4372_v40  ;;  %s1669_s25 = smul.u32 3, %s3501_s1  ;;  %s3512_s1 = sld [smem:[#allocation2 + $0x106]] }
 0x35e   :  { %s1398_s15 = scalar_lea.vmem [#allocation5], %s1397_s10 }
 0x35f   :  { %s1670_s10 = scalar_lea.vmem [#allocation5], %s1669_s25  ;;  %s3514_s25 = sld [smem:[#allocation2 + $0x206]] }
 0x360   :  { %1577 = vmatpush1.bf16.msra.mxu0 %v4282_v22  ;;  %3758 = vmatpush3.bf16.msra.mxu1 %v4299_v25  ;;  %v4726_v22 = vld [vmem:[%s1098_s9] sm:$0x7]  ;;  %s1386_s9 = scalar_lea.vmem [#allocation5], %s1385_s24  ;;  %s1665_s24 = smul.u32 3, %s3500_s22 }
 0x361   :  { %1846 = vmatprep.subr.bf16.mxu0 %v4722_v23  ;;  %3763 = vmatprep.subr.bf16.mxu1 %v4159_v2  ;;  %v4730_v25 = vld [vmem:[%s1106_s12] sm:$0x7]  ;;  %v1132_v27 = vrot.slane %v4726_v22, %v4345_v29  ;;  %v1136_v8 = vrot.slane %v4726_v22, %v4372_v40  ;;  %s3497_s12 = sld [smem:[#allocation2 + $0x384]] }
 0x362   :  { %v1164_v62 = vrot.slane %v4730_v25, %v4345_v29  ;;  %v1168_v1 = vrot.slane %v4730_v25, %v4372_v40  ;;  %s3511_s22 = sld [smem:[#allocation2 + $0x86]] }
 0x363   :  { %v1256_v59 = vsel %vm270_vm1, %v1132_v27, %v1148_v30  ;;  %v1257_v0 = vsel %vm270_vm1, %v1136_v8, %v1152_v9  ;;  %v1140_v9 = vrot.slane %v4726_v22, %v4409_v44  ;;  %v1204_v22 = vrot.slane %v1115_v61, %v4409_v44 }
 0x364   :  { %v1259_v26 = vsel %vm274_vm2, %v1256_v59, %v1164_v62  ;;  %v1260_v7 = vsel %vm274_vm2, %v1257_v0, %v1168_v1  ;;  %v1172_v1 = vrot.slane %v4730_v25, %v4409_v44 }
 0x365   :  { %v1262_v6 = vsel %vm278_vm3, %v1259_v26, %v1180_v63  ;;  %v1263_v35 = vsel %vm278_vm3, %v1260_v7, %v1184_v17  ;;  %v1248_v63 = vrot.slane %v1127_v4, %v4372_v40  ;;  %v1188_v17 = vrot.slane %v4736_v31, %v4409_v44 }
 0x366   :  { %v1265_v14 = vsel %vm282_vm4, %v1262_v6, %v1196_v5  ;;  %v1266_v13 = vsel %vm282_vm4, %v1263_v35, %v1200_v52  ;;  %v1236_v52 = vrot.slane %v1123_v11, %v4409_v44 }
 0x367   :  { %v1268_v16 = vsel %vm286_vm5, %v1265_v14, %v1212_v12  ;;  %v1269_v30 = vsel %vm286_vm5, %v1266_v13, %v1216_v41  ;;  %v1156_v12 = vrot.slane %v4728_v24, %v4409_v44  ;;  %s1409_s16 = smul.u32 3, %s3497_s12  ;;  %s1674_s12 = scalar_lea.vmem [#allocation5], %s1673_s27 }
 0x368   :  { %v1271_v48 = vsel %vm290_vm6, %v1268_v16, %v1228_v15  ;;  %v1272_v26 = vsel %vm290_vm6, %v1269_v30, %v1232_v46  ;;  %s3515_s27 = sld [smem:[#allocation2 + $0x286]] }
 0x369   :  { %v1274_v10 = vsel %vm294_vm7, %v1271_v48, %v1244_v20  ;;  %v1275_v8 = vsel %vm294_vm7, %v1272_v26, %v1248_v63  ;;  %v1258_v15 = vsel %vm270_vm1, %v1140_v9, %v1156_v12  ;;  %v1220_v48 = vrot.slane %v1119_v37, %v4409_v44  ;;  %v4839_v63 = vld [vmem:[#allocation6 + $0x8] ss:$12 sps:$4 sm:$0xff]   ;;  %s1410_s19 = scalar_lea.vmem [#allocation5], %s1409_s16 }
 0x36a   :  { %v1261_v7 = vsel %vm274_vm2, %v1258_v15, %v1172_v1  ;;  %v4844_v26 = vld [vmem:[%s1382_s30] sm:$0x7]  ;;  %s3506_s30 = sld [smem:[#allocation2 + $0x305]] }
 0x36b   :  { %v1264_v24 = vsel %vm278_vm3, %v1261_v7, %v1188_v17  ;;  %v4854_v12 = vld [vmem:[%s1394_s13] sm:$0x7]  ;;  %s1685_s13 = smul.u32 3, %s3505_s28 }
 0x36c   :  { %v1267_v25 = vsel %vm282_vm4, %v1264_v24, %v1204_v22  ;;  %v1399_v15 = vld [vmem:[%s1398_s15] sm:$0x7]  ;;  %v1420_v22 = vrot.slane %v4844_v26, %v4372_v40  ;;  %s1961_s28 = smul.u32 3, %s3513_s2 }
 0x36d   :  { %v1270_v35 = vsel %vm286_vm5, %v1267_v25, %v1220_v48  ;;  %v1403_v17 = vld [vmem:[%s1402_s17] sm:$0x7]  ;;  %s1693_s17 = smul.u32 3, %s3507_s0 }
 0x36e   :  { %v1273_v31 = vsel %vm290_vm6, %v1270_v35, %v1236_v52  ;;  %v1407_v48 = vld [vmem:[%s1406_s18] sm:$0x7]  ;;  %v1496_v25 = vrot.slane %v1403_v17, %v4345_v29  ;;  %s1686_s18 = scalar_lea.vmem [#allocation5], %s1685_s13  ;;  %s1969_s0 = smul.u32 3, %s3515_s27 }
 0x36f   :  { %s1694_s20 = scalar_lea.vmem [#allocation5], %s1693_s17  ;;  %s1962_s13 = scalar_lea.vmem [#allocation5], %s1961_s28 }
 0x370   :  { %s1689_s15 = smul.u32 3, %s3506_s30  ;;  %s1950_s30 = scalar_lea.vmem [#allocation5], %s1949_s23 }
 0x371   :  { %s1970_s17 = scalar_lea.vmem [#allocation5], %s1969_s0  ;;  %s2237_s23 = smul.u32 3, %s3521_s21 }
 0x372   :  { %s3526_s28 = sld [smem:[#allocation2 + $0x307]] }
 0x373   :  { %s3532_s21 = sld [smem:[#allocation2 + $0x108]] }
 0x403   :  { %v1312_v36 = vpop.f32.mrf.mxu0  ;;  %v1353_v38 = vpop.f32.mrf.mxu1 }
 0x404   :  { %v1359_v19 = vadd.f32 %v1312_v36, %v1274_v10  ;;  %v1252_v10 = vrot.slane %v1127_v4, %v4409_v44  ;;  %v1373_v36 = vadd.f32 %v4432_v34, %v1353_v38  ;;  %v4813_v34 = vld [vmem:[#allocation6 + $0x68] ss:$12 sps:$4 sm:$0xff]   ;;  %v4825_v38 = vld [vmem:[#allocation6 + $0x38] ss:$12 sps:$4 sm:$0xff]  }
 0x405   :  { %v1314_v39 = vpop.f32.mrf.mxu0  ;;  %v3741_v33 = vpop.f32.mrf.mxu1 }
 0x406   :  { %v3488_v27 = vmul.f32 -1.442695, %v1359_v19  ;;  %v1366_v14 = vadd.f32 %v1314_v39, %v1275_v8  ;;  %v1276_v61 = vsel %vm294_vm7, %v1273_v31, %v1252_v10  ;;  %v1416_v8 = vrot.slane %v4844_v26, %v4345_v29  ;;  %v1411_v10 = vld [vmem:[%s1410_s19] sm:$0x7]  ;;  %s1690_s19 = scalar_lea.vmem [#allocation5], %s1689_s15 }
 0x407   :  { %v1316_v62 = vpop.f32.mrf.mxu0  ;;  %v1356_v59 = vpop.f32.mrf.mxu1  ;;  %v1512_v31 = vrot.slane %v1407_v48, %v4345_v29 }
 0x408   :  { %3970 = vpow2.f32 %v3488_v27  ;;  %v3489_v0 = vmul.f32 -1.442695, %v1366_v14  ;;  %v4831_v62 = vld [vmem:[#allocation6 + $0x20] ss:$12 sps:$4 sm:$0xff]  }
 0x409   :  { %v1317_v5 = vpop.f32.mrf.mxu0  ;;  %v3742_v6 = vpop.f32.mrf.mxu1  ;;  %v4836_v59 = vld [vmem:[#allocation6] ss:$12 sps:$4 sm:$0xff]  }
 0x40a   :  { %3972 = vpow2.f32 %v3489_v0  ;;  %v4846_v5 = vld [vmem:[%s1386_s9] sm:$0x7]  ;;  %v1464_v0 = vrot.slane %v4854_v12, %v4345_v29  ;;  %s1666_s9 = scalar_lea.vmem [#allocation5], %s1665_s24  ;;  %s1953_s24 = smul.u32 3, %s3511_s22 }
 0x40b   :  { %v4848_v6 = vld [vmem:[%s1390_s11] sm:$0x7]  ;;  %v1432_v9 = vrot.slane %v4846_v5, %v4345_v29  ;;  %v1436_v24 = vrot.slane %v4846_v5, %v4372_v40  ;;  %s1681_s11 = smul.u32 3, %s3504_s26  ;;  %s3522_s22 = sld [smem:[#allocation2 + $0x107]] }
 0x40c   :  { %v1448_v14 = vrot.slane %v4848_v6, %v4345_v29  ;;  %v1452_v35 = vrot.slane %v4848_v6, %v4372_v40  ;;  %s1957_s26 = smul.u32 3, %s3512_s1  ;;  %s3523_s1 = sld [smem:[#allocation2 + $0x187]] }
 0x40d   :  { %v1540_v1 = vsel %vm270_vm1, %v1416_v8, %v1432_v9  ;;  %s1682_s16 = scalar_lea.vmem [#allocation5], %s1681_s11 }
 0x40e   :  { %s1958_s11 = scalar_lea.vmem [#allocation5], %s1957_s26  ;;  %s3525_s26 = sld [smem:[#allocation2 + $0x287]] }
 0x412   :  { %s2245_s27 = smul.u32 3, %s3523_s1 }
 0x414   :  { %s2246_s0 = scalar_lea.vmem [#allocation5], %s2245_s27  ;;  %s3536_s27 = sld [smem:[#allocation2 + $0x308]] }
 0x415   :  { %v3971_v16 = vpop.eup %3970 }
 0x416   :  { %v1363_v20 = vadd.f32 1.0, %v3971_v16  ;;  %v1543_v16 = vsel %vm274_vm2, %v1540_v1, %v1448_v14  ;;  %v1516_v14 = vrot.slane %v1407_v48, %v4372_v40 }
 0x417   :  { %v3973_v41 = vpop.eup %3972  ;;  %v1546_v7 = vsel %vm278_vm3, %v1543_v16, %v1464_v0 }
 0x418   :  { %3974 = vrcp.f32 %v1363_v20  ;;  %v1370_v39 = vadd.f32 1.0, %v3973_v41  ;;  %v1480_v20 = vrot.slane %v1399_v15, %v4345_v29  ;;  %v1541_v41 = vsel %vm270_vm1, %v1420_v22, %v1436_v24 }
 0x419   :  { %v1532_v24 = vrot.slane %v1411_v10, %v4372_v40 }
 0x41a   :  { %v1549_v52 = vsel %vm282_vm4, %v1546_v7, %v1480_v20 }
 0x425   :  { %v3975_v13 = vpop.eup %3974 }
 0x426   :  { %v1374_v19 = vmul.f32 %v3975_v13, %v1373_v36  ;;  %v1552_v36 = vsel %vm286_vm5, %v1549_v52, %v1496_v25  ;;  %v1468_v13 = vrot.slane %v4854_v12, %v4372_v40 }
 0x428   :  { %v1375_v46 = vadd.f32 %v1374_v19, %v1276_v61  ;;  %v1528_v61 = vrot.slane %v1411_v10, %v4345_v29  ;;  %v1544_v19 = vsel %vm274_vm2, %v1541_v41, %v1452_v35  ;;  %v1424_v41 = vrot.slane %v4844_v26, %v4409_v44 }
 0x429   :  { %v1488_v26 = vrot.slane %v1399_v15, %v4409_v44 }
 0x42a   :  { %3976 = vtanh.f32 %v1375_v46  ;;  %v1555_v46 = vsel %vm290_vm6, %v1552_v36, %v1512_v31  ;;  %v1440_v36 = vrot.slane %v4846_v5, %v4409_v44 }
 0x42b   :  { %3978 = vrcp.f32 %v1370_v39  ;;  %v1484_v39 = vrot.slane %v1399_v15, %v4372_v40 }
 0x437   :  { %v3977_v37 = vpop.eup %3976 }
 0x438   :  { %v1377_v11 = vsub.f32 %v4651_v42, %v3977_v37  ;;  %v3979_v33 = vpop.eup %3978  ;;  %v4819_v42 = vld [vmem:[#allocation6 + $0x50] ss:$12 sps:$4 sm:$0xff]  }
 0x43a   :  { %v1378_v27 = vmul.f32 %v3979_v33, %v1377_v11  ;;  %v1558_v11 = vsel %vm294_vm7, %v1555_v46, %v1528_v61  ;;  %v1500_v33 = vrot.slane %v1403_v17, %v4372_v40  ;;  %v1456_v61 = vrot.slane %v4848_v6, %v4409_v44 }
 0x43c   :  { %v4793_v30 = vadd.f32 %v3977_v37, %v1378_v27  ;;  %v1547_v37 = vsel %vm278_vm3, %v1544_v19, %v1468_v13  ;;  %v1542_v19 = vsel %vm270_vm1, %v1424_v41, %v1440_v36 }
 0x43d   :  { %v1550_v8 = vsel %vm282_vm4, %v1547_v37, %v1484_v39  ;;  %v1472_v37 = vrot.slane %v4854_v12, %v4409_v44 }
 0x43e   :  { %v1561_v4 = vpack.c.bf16 %v4793_v30, %v4793_v30  ;;  %v1553_v20 = vsel %vm286_vm5, %v1550_v8, %v1500_v33  ;;  %v1545_v33 = vsel %vm274_vm2, %v1542_v19, %v1456_v61  ;;  %v1520_v8 = vrot.slane %v1407_v48, %v4409_v44 }
 0x43f   :  { %v1556_v25 = vsel %vm290_vm6, %v1553_v20, %v1516_v14  ;;  %v1548_v5 = vsel %vm278_vm3, %v1545_v33, %v1472_v37  ;;  %v1536_v14 = vrot.slane %v1411_v10, %v4409_v44 }
 0x440   :  { %1595 = vmatmul.mubr.bf16.vlgmr.msra.gmra.mxu0 %v1561_v4  ;;  %3760 = vmatmul.mubr.bf16.vlgmr.msra.gmra.mxu1 %v1561_v4  ;;  %v1559_v31 = vsel %vm294_vm7, %v1556_v25, %v1532_v24  ;;  %v1551_v6 = vsel %vm282_vm4, %v1548_v5, %v1488_v26 }
 0x441   :  { %1847 = vmatpush1.bf16.msra.mxu0 %v4655_v43  ;;  %3764 = vmatpush3.bf16.msra.mxu1 %v4658_v45 }
 0x442   :  { %1848 = vmatprep.subr.bf16.mxu0 %v4661_v50  ;;  %3765 = vmatprep.subr.bf16.mxu1 %v4159_v2 }
 0x443   :  { %1878 = vmatprep.mubr.bf16.mxu0 %v4160_v3  ;;  %3779 = vmatprep.mubr.msk.bf16.mxu1 %vm4161_vm0, %v4159_v2 }
 0x445   :  { %1849 = vmatpush1.bf16.msra.mxu0 %v4668_v32  ;;  %3766 = vmatpush3.bf16.msra.mxu1 %v4671_v47 }
 0x446   :  { %1850 = vmatprep.subr.bf16.mxu0 %v4674_v49  ;;  %3767 = vmatprep.subr.bf16.mxu1 %v4159_v2 }
 0x449   :  { %1851 = vmatpush1.bf16.msra.mxu0 %v4678_v53  ;;  %3768 = vmatpush3.bf16.msra.mxu1 %v4681_v51 }
 0x44a   :  { %1852 = vmatprep.subr.bf16.mxu0 %v4684_v55  ;;  %3769 = vmatprep.subr.bf16.mxu1 %v4159_v2 }
 0x44d   :  { %1853 = vmatpush1.bf16.msra.mxu0 %v4688_v56  ;;  %3770 = vmatpush3.bf16.msra.mxu1 %v4813_v34 }
 0x44e   :  { %1854 = vmatprep.subr.bf16.mxu0 %v4692_v57  ;;  %3771 = vmatprep.subr.bf16.mxu1 %v4159_v2 }
 0x451   :  { %1855 = vmatpush1.bf16.msra.mxu0 %v4696_v54  ;;  %3772 = vmatpush3.bf16.msra.mxu1 %v4819_v42 }
 0x452   :  { %1856 = vmatprep.subr.bf16.mxu0 %v4700_v58  ;;  %3773 = vmatprep.subr.bf16.mxu1 %v4159_v2 }
 0x455   :  { %1857 = vmatpush1.bf16.msra.mxu0 %v4704_v60  ;;  %3774 = vmatpush3.bf16.msra.mxu1 %v4825_v38 }
 0x456   :  { %1858 = vmatprep.subr.bf16.mxu0 %v4708_v18  ;;  %3775 = vmatprep.subr.bf16.mxu1 %v4159_v2 }
 0x459   :  { %1859 = vmatpush1.bf16.msra.mxu0 %v4712_v28  ;;  %3776 = vmatpush3.bf16.msra.mxu1 %v4831_v62 }
 0x45a   :  { %1860 = vmatprep.subr.bf16.mxu0 %v4716_v21  ;;  %3777 = vmatprep.subr.bf16.mxu1 %v4159_v2 }
 0x45d   :  { %1861 = vmatpush1.bf16.msra.mxu0 %v4836_v59  ;;  %3778 = vmatpush3.bf16.msra.mxu1 %v4839_v63 }
 0x45e   :  { %2130 = vmatprep.subr.bf16.mxu0 %v4722_v23  ;;  %3783 = vmatprep.subr.bf16.mxu1 %v4159_v2 }
 0x500   :  { %v1596_v27 = vpop.f32.mrf.mxu0  ;;  %v1637_v4 = vpop.f32.mrf.mxu1 }
 0x501   :  { %v1643_v9 = vadd.f32 %v1596_v27, %v1558_v11  ;;  %v1504_v27 = vrot.slane %v1403_v17, %v4409_v44 }
 0x502   :  { %v1598_v1 = vpop.f32.mrf.mxu0  ;;  %v3761_v0 = vpop.f32.mrf.mxu1 }
 0x503   :  { %v3498_v16 = vmul.f32 -1.442695, %v1643_v9  ;;  %v1650_v13 = vadd.f32 %v1598_v1, %v1559_v31  ;;  %v1554_v9 = vsel %vm286_vm5, %v1551_v6, %v1504_v27  ;;  %v4911_v0 = vld [vmem:[%s5493_s3] ss:$0 sm:$0xff] }
 0x504   :  { %v1600_v7 = vpop.f32.mrf.mxu0  ;;  %v1640_v22 = vpop.f32.mrf.mxu1  ;;  %v1557_v12 = vsel %vm290_vm6, %v1554_v9, %v1520_v8  ;;  %v1657_v15 = vadd.f32 %v4911_v0, %v1637_v4  ;;  %v4957_v4 = vld [vmem:[%s1670_s10] sm:$0x7]  ;;  %s1965_s10 = smul.u32 3, %s3514_s25 }
 0x505   :  { %3980 = vpow2.f32 %v3498_v16  ;;  %v3499_v46 = vmul.f32 -1.442695, %v1650_v13  ;;  %v1560_v17 = vsel %vm294_vm7, %v1557_v12, %v1536_v14  ;;  %v4959_v31 = vld [vmem:[%s1674_s12] sm:$0x7]  ;;  %v1716_v36 = vrot.slane %v4957_v4, %v4345_v29  ;;  %s3517_s12 = sld [smem:[#allocation2 + $0x386]]  ;;  %s2241_s25 = smul.u32 3, %s3522_s22 }
 0x506   :  { %v1601_v52 = vpop.f32.mrf.mxu0  ;;  %v3762_v35 = vpop.f32.mrf.mxu1  ;;  %v4965_v13 = vld [vmem:[%s1678_s14] sm:$0x7]  ;;  %v1732_v61 = vrot.slane %v4959_v31, %v4345_v29  ;;  %v1720_v27 = vrot.slane %v4957_v4, %v4372_v40  ;;  %v1736_v14 = vrot.slane %v4959_v31, %v4372_v40  ;;  %s1973_s14 = smul.u32 3, %s3516_s29  ;;  %s1966_s15 = scalar_lea.vmem [#allocation5], %s1965_s10 }
 0x507   :  { %3982 = vpow2.f32 %v3499_v46  ;;  %v1683_v46 = vld [vmem:[%s1682_s16] sm:$0x7]  ;;  %s2242_s10 = scalar_lea.vmem [#allocation5], %s2241_s25  ;;  %s3533_s22 = sld [smem:[#allocation2 + $0x188]] }
 0x508   :  { %v1764_v33 = vrot.slane %v1683_v46, %v4345_v29  ;;  %v1691_v6 = vld [vmem:[%s1690_s19] sm:$0x7]  ;;  %s3535_s25 = sld [smem:[#allocation2 + $0x288]] }
 0x509   :  { %v1695_v12 = vld [vmem:[%s1694_s20] sm:$0x7]  ;;  %s3520_s20 = sld [smem:[#allocation2 + $0x7]] }
 0x50b   :  { %s1977_s16 = smul.u32 3, %s3517_s12 }
 0x50c   :  { %s2253_s12 = smul.u32 3, %s3525_s26 }
 0x50d   :  { %s1978_s19 = scalar_lea.vmem [#allocation5], %s1977_s16  ;;  %s2529_s26 = smul.u32 3, %s3533_s22 }
 0x50e   :  { %s2254_s16 = scalar_lea.vmem [#allocation5], %s2253_s12 }
 0x50f   :  { %s2233_s2 = smul.u32 3, %s3520_s20  ;;  %s3531_s20 = sld [smem:[#allocation2 + $0x88]] }
 0x510   :  { %s2530_s12 = scalar_lea.vmem [#allocation5], %s2529_s26 }
 0x511   :  { %s2234_s29 = scalar_lea.vmem [#allocation5], %s2233_s2 }
 0x512   :  { %v3981_v39 = vpop.eup %3980 }
 0x513   :  { %v1647_v11 = vadd.f32 1.0, %v3981_v39  ;;  %v1748_v39 = vrot.slane %v4965_v13, %v4345_v29 }
 0x514   :  { %v3983_v1 = vpop.eup %3982 }
 0x515   :  { %3984 = vrcp.f32 %v1647_v11  ;;  %v1654_v48 = vadd.f32 1.0, %v3983_v1  ;;  %v1687_v11 = vld [vmem:[%s1686_s18] sm:$0x7]  ;;  %v1796_v1 = vrot.slane %v1691_v6, %v4345_v29  ;;  %s1974_s18 = scalar_lea.vmem [#allocation5], %s1973_s14  ;;  %s2521_s2 = smul.u32 3, %s3531_s20 }
 0x516   :  { %v1780_v8 = vrot.slane %v1687_v11, %v4345_v29 }
 0x522   :  { %v3985_v16 = vpop.eup %3984 }
 0x523   :  { %v1658_v20 = vmul.f32 %v3985_v16, %v1657_v15 }
 0x525   :  { %v1659_v7 = vadd.f32 %v1658_v20, %v1560_v17  ;;  %v1752_v17 = vrot.slane %v4965_v13, %v4372_v40  ;;  %v1812_v20 = vrot.slane %v1695_v12, %v4345_v29 }
 0x527   :  { %3986 = vtanh.f32 %v1659_v7 }
 0x528   :  { %3988 = vrcp.f32 %v1654_v48 }
 0x534   :  { %v3987_v22 = vpop.eup %3986 }
 0x535   :  { %v1661_v10 = vsub.f32 %v4793_v30, %v3987_v22  ;;  %v3989_v24 = vpop.eup %3988  ;;  %v4955_v30 = vld [vmem:[%s1666_s9] sm:$0x7]  ;;  %s1954_s9 = scalar_lea.vmem [#allocation5], %s1953_s24  ;;  %s3524_s24 = sld [smem:[#allocation2 + $0x207]] }
 0x536   :  { %v1700_v41 = vrot.slane %v4955_v30, %v4345_v29  ;;  %v1704_v5 = vrot.slane %v4955_v30, %v4372_v40 }
 0x537   :  { %v1662_v25 = vmul.f32 %v3989_v24, %v1661_v10 }
 0x538   :  { %v1824_v19 = vsel %vm270_vm1, %v1700_v41, %v1716_v36  ;;  %v1825_v15 = vsel %vm270_vm1, %v1704_v5, %v1720_v27 }
 0x539   :  { %v4916_v52 = vadd.f32 %v3987_v22, %v1662_v25  ;;  %v1827_v37 = vsel %vm274_vm2, %v1824_v19, %v1732_v61  ;;  %v1828_v7 = vsel %vm274_vm2, %v1825_v15, %v1736_v14  ;;  %v1768_v22 = vrot.slane %v1683_v46, %v4372_v40 }
 0x53a   :  { %v1830_v26 = vsel %vm278_vm3, %v1827_v37, %v1748_v39  ;;  %v1831_v10 = vsel %vm278_vm3, %v1828_v7, %v1752_v17  ;;  %v1784_v25 = vrot.slane %v1687_v11, %v4372_v40  ;;  %v1800_v19 = vrot.slane %v1691_v6, %v4372_v40 }
 0x53b   :  { %v1845_v35 = vpack.c.bf16 %v4916_v52, %v4916_v52  ;;  %v1833_v9 = vsel %vm282_vm4, %v1830_v26, %v1764_v33  ;;  %v1834_v36 = vsel %vm282_vm4, %v1831_v10, %v1768_v22  ;;  %v1724_v17 = vrot.slane %v4957_v4, %v4409_v44 }
 0x53c   :  { %v1836_v16 = vsel %vm286_vm5, %v1833_v9, %v1780_v8  ;;  %v1837_v26 = vsel %vm286_vm5, %v1834_v36, %v1784_v25  ;;  %v1816_v8 = vrot.slane %v1695_v12, %v4372_v40  ;;  %v1740_v7 = vrot.slane %v4959_v31, %v4409_v44 }
 0x53d   :  { %1879 = vmatmul.mubr.bf16.vlgmr.msra.gmra.mxu0 %v1845_v35  ;;  %3780 = vmatmul.mubr.bf16.vlgmr.msra.gmra.mxu1 %v1845_v35  ;;  %v1839_v48 = vsel %vm290_vm6, %v1836_v16, %v1796_v1  ;;  %v1840_v9 = vsel %vm290_vm6, %v1837_v26, %v1800_v19  ;;  %v1708_v16 = vrot.slane %v4955_v30, %v4409_v44 }
 0x53e   :  { %2131 = vmatpush1.bf16.msra.mxu0 %v4655_v43  ;;  %3784 = vmatpush3.bf16.msra.mxu1 %v4658_v45  ;;  %v1842_v24 = vsel %vm294_vm7, %v1839_v48, %v1812_v20  ;;  %v1843_v15 = vsel %vm294_vm7, %v1840_v9, %v1816_v8  ;;  %v1772_v30 = vrot.slane %v1683_v46, %v4409_v44 }
 0x53f   :  { %2132 = vmatprep.subr.bf16.mxu0 %v4661_v50  ;;  %3785 = vmatprep.subr.bf16.mxu1 %v4159_v2  ;;  %v1826_v48 = vsel %vm270_vm1, %v1708_v16, %v1724_v17  ;;  %v1788_v36 = vrot.slane %v1687_v11, %v4409_v44 }
 0x540   :  { %2162 = vmatprep.mubr.bf16.mxu0 %v4160_v3  ;;  %3799 = vmatprep.mubr.msk.bf16.mxu1 %vm4161_vm0, %v4159_v2 }
 0x542   :  { %2133 = vmatpush1.bf16.msra.mxu0 %v4668_v32  ;;  %3786 = vmatpush3.bf16.msra.mxu1 %v4671_v47 }
 0x543   :  { %2134 = vmatprep.subr.bf16.mxu0 %v4674_v49  ;;  %3787 = vmatprep.subr.bf16.mxu1 %v4159_v2 }
 0x546   :  { %2135 = vmatpush1.bf16.msra.mxu0 %v4678_v53  ;;  %3788 = vmatpush3.bf16.msra.mxu1 %v4681_v51 }
 0x547   :  { %2136 = vmatprep.subr.bf16.mxu0 %v4684_v55  ;;  %3789 = vmatprep.subr.bf16.mxu1 %v4159_v2 }
 0x54a   :  { %2137 = vmatpush1.bf16.msra.mxu0 %v4688_v56  ;;  %3790 = vmatpush3.bf16.msra.mxu1 %v4813_v34 }
 0x54b   :  { %2138 = vmatprep.subr.bf16.mxu0 %v4692_v57  ;;  %3791 = vmatprep.subr.bf16.mxu1 %v4159_v2 }
 0x54e   :  { %2139 = vmatpush1.bf16.msra.mxu0 %v4696_v54  ;;  %3792 = vmatpush3.bf16.msra.mxu1 %v4819_v42 }
 0x54f   :  { %2140 = vmatprep.subr.bf16.mxu0 %v4700_v58  ;;  %3793 = vmatprep.subr.bf16.mxu1 %v4159_v2 }
 0x552   :  { %2141 = vmatpush1.bf16.msra.mxu0 %v4704_v60  ;;  %3794 = vmatpush3.bf16.msra.mxu1 %v4825_v38 }
 0x553   :  { %2142 = vmatprep.subr.bf16.mxu0 %v4708_v18  ;;  %3795 = vmatprep.subr.bf16.mxu1 %v4159_v2 }
 0x556   :  { %2143 = vmatpush1.bf16.msra.mxu0 %v4712_v28  ;;  %3796 = vmatpush3.bf16.msra.mxu1 %v4831_v62 }
 0x557   :  { %2144 = vmatprep.subr.bf16.mxu0 %v4716_v21  ;;  %3797 = vmatprep.subr.bf16.mxu1 %v4159_v2 }
 0x55a   :  { %2145 = vmatpush1.bf16.msra.mxu0 %v4836_v59  ;;  %3798 = vmatpush3.bf16.msra.mxu1 %v4839_v63 }
 0x55b   :  { %2414 = vmatprep.subr.bf16.mxu0 %v4722_v23  ;;  %3803 = vmatprep.subr.bf16.mxu1 %v4159_v2 }
 0x5fd   :  { %v1880_v35 = vpop.f32.mrf.mxu0  ;;  %v1921_v41 = vpop.f32.mrf.mxu1 }
 0x5fe   :  { %v1927_v61 = vadd.f32 %v1880_v35, %v1842_v24  ;;  %v1756_v24 = vrot.slane %v4965_v13, %v4409_v44  ;;  %v1829_v35 = vsel %vm274_vm2, %v1826_v48, %v1740_v7 }
 0x5ff   :  { %v1882_v39 = vpop.f32.mrf.mxu0  ;;  %v3781_v37 = vpop.f32.mrf.mxu1 }
 0x600   :  { %v3508_v33 = vmul.f32 -1.442695, %v1927_v61  ;;  %v1934_v20 = vadd.f32 %v1882_v39, %v1843_v15  ;;  %v1832_v4 = vsel %vm278_vm3, %v1829_v35, %v1756_v24  ;;  %v1804_v61 = vrot.slane %v1691_v6, %v4409_v44  ;;  %v1979_v15 = vld [vmem:[%s1978_s19] sm:$0x7]  ;;  %s3530_s19 = sld [smem:[#allocation2 + $0x8]] }
 0x601   :  { %v1884_v5 = vpop.f32.mrf.mxu0  ;;  %v1924_v27 = vpop.f32.mrf.mxu1  ;;  %v1835_v31 = vsel %vm282_vm4, %v1832_v4, %v1772_v30  ;;  %v1820_v39 = vrot.slane %v1695_v12, %v4409_v44  ;;  %v2096_v48 = vrot.slane %v1979_v15, %v4345_v29 }
 0x602   :  { %3990 = vpow2.f32 %v3508_v33  ;;  %v3509_v22 = vmul.f32 -1.442695, %v1934_v20  ;;  %v1838_v19 = vsel %vm286_vm5, %v1835_v31, %v1788_v36  ;;  %v1941_v33 = vadd.f32 %v4911_v0, %v1921_v41 }
 0x603   :  { %v1885_v14 = vpop.f32.mrf.mxu0  ;;  %v3782_v1 = vpop.f32.mrf.mxu1  ;;  %v1841_v13 = vsel %vm290_vm6, %v1838_v19, %v1804_v61 }
 0x604   :  { %3992 = vpow2.f32 %v3509_v22  ;;  %v1844_v46 = vsel %vm294_vm7, %v1841_v13, %v1820_v39 }
 0x606   :  { %s2517_s1 = smul.u32 3, %s3530_s19 }
 0x60f   :  { %v3991_v10 = vpop.eup %3990 }
 0x610   :  { %v1931_v25 = vadd.f32 1.0, %v3991_v10 }
 0x611   :  { %v3993_v37 = vpop.eup %3992 }
 0x612   :  { %3994 = vrcp.f32 %v1931_v25  ;;  %v1938_v8 = vadd.f32 1.0, %v3993_v37 }
 0x61f   :  { %v3995_v26 = vpop.eup %3994 }
 0x620   :  { %v1942_v5 = vmul.f32 %v3995_v26, %v1941_v33 }
 0x622   :  { %v1943_v27 = vadd.f32 %v1942_v5, %v1844_v46  ;;  %v2100_v5 = vrot.slane %v1979_v15, %v4372_v40 }
 0x624   :  { %3996 = vtanh.f32 %v1943_v27 }
 0x625   :  { %3998 = vrcp.f32 %v1938_v8 }
 0x631   :  { %v3997_v11 = vpop.eup %3996 }
 0x632   :  { %v1945_v6 = vsub.f32 %v4916_v52, %v3997_v11  ;;  %v3999_v9 = vpop.eup %3998 }
 0x634   :  { %v1946_v14 = vmul.f32 %v3999_v9, %v1945_v6 }
 0x636   :  { %v5022_v1 = vadd.f32 %v3997_v11, %v1946_v14 }
 0x638   :  { %v2129_v12 = vpack.c.bf16 %v5022_v1, %v5022_v1 }
 0x63a   :  { %2163 = vmatmul.mubr.bf16.vlgmr.msra.gmra.mxu0 %v2129_v12  ;;  %3800 = vmatmul.mubr.bf16.vlgmr.msra.gmra.mxu1 %v2129_v12 }
 0x63b   :  { %2415 = vmatpush1.bf16.msra.mxu0 %v4655_v43  ;;  %3804 = vmatpush3.bf16.msra.mxu1 %v4658_v45  ;;  %v5061_v43 = vld [vmem:[%s1950_s30] sm:$0x7]  ;;  %s2238_s30 = scalar_lea.vmem [#allocation5], %s2237_s23  ;;  %s3534_s23 = sld [smem:[#allocation2 + $0x208]] }
 0x63c   :  { %2416 = vmatprep.subr.bf16.mxu0 %v4661_v50  ;;  %3805 = vmatprep.subr.bf16.mxu1 %v4159_v2  ;;  %v5063_v45 = vld [vmem:[%s1954_s9] sm:$0x7]  ;;  %v1992_v9 = vrot.slane %v5061_v43, %v4409_v44  ;;  %s2249_s9 = smul.u32 3, %s3524_s24 }
 0x63d   :  { %2446 = vmatprep.mubr.bf16.mxu0 %v4160_v3  ;;  %3819 = vmatprep.mubr.msk.bf16.mxu1 %vm4161_vm0, %v4159_v2  ;;  %v5065_v50 = vld [vmem:[%s1958_s11] sm:$0x7]  ;;  %v2008_v14 = vrot.slane %v5063_v45, %v4409_v44  ;;  %s3527_s11 = sld [smem:[#allocation2 + $0x387]]  ;;  %s2525_s24 = smul.u32 3, %s3532_s21 }
 0x63e   :  { %v2020_v41 = vrot.slane %v5065_v50, %v4372_v40  ;;  %s2250_s14 = scalar_lea.vmem [#allocation5], %s2249_s9  ;;  %s3546_s21 = sld [smem:[#allocation2 + $0x309]] }
 0x63f   :  { %2417 = vmatpush1.bf16.msra.mxu0 %v4668_v32  ;;  %3806 = vmatpush3.bf16.msra.mxu1 %v4671_v47  ;;  %v1984_v32 = vrot.slane %v5061_v43, %v4345_v29  ;;  %v2000_v47 = vrot.slane %v5063_v45, %v4345_v29  ;;  %s2526_s9 = scalar_lea.vmem [#allocation5], %s2525_s24 }
 0x640   :  { %2418 = vmatprep.subr.bf16.mxu0 %v4674_v49  ;;  %3807 = vmatprep.subr.bf16.mxu1 %v4159_v2  ;;  %v5071_v49 = vld [vmem:[%s1962_s13] sm:$0x7]  ;;  %s2257_s13 = smul.u32 3, %s3526_s28  ;;  %s2518_s28 = scalar_lea.vmem [#allocation5], %s2517_s1 }
 0x641   :  { %v2036_v7 = vrot.slane %v5071_v49, %v4372_v40 }
 0x643   :  { %2419 = vmatpush1.bf16.msra.mxu0 %v4678_v53  ;;  %3808 = vmatpush3.bf16.msra.mxu1 %v4681_v51  ;;  %v2016_v53 = vrot.slane %v5065_v50, %v4345_v29  ;;  %v2108_v51 = vsel %vm270_vm1, %v1984_v32, %v2000_v47  ;;  %v2024_v32 = vrot.slane %v5065_v50, %v4409_v44 }
 0x644   :  { %2420 = vmatprep.subr.bf16.mxu0 %v4684_v55  ;;  %3809 = vmatprep.subr.bf16.mxu1 %v4159_v2  ;;  %v1967_v55 = vld [vmem:[%s1966_s15] sm:$0x7]  ;;  %v2110_v47 = vsel %vm270_vm1, %v1992_v9, %v2008_v14  ;;  %s2261_s15 = smul.u32 3, %s3527_s11 }
 0x645   :  { %v2052_v24 = vrot.slane %v1967_v55, %v4372_v40  ;;  %s2537_s11 = smul.u32 3, %s3535_s25 }
 0x646   :  { %s2825_s26 = smul.u32 3, %s3546_s21 }
 0x647   :  { %2421 = vmatpush1.bf16.msra.mxu0 %v4688_v56  ;;  %3810 = vmatpush3.bf16.msra.mxu1 %v4813_v34  ;;  %v2032_v56 = vrot.slane %v5071_v49, %v4345_v29 }
 0x648   :  { %2422 = vmatprep.subr.bf16.mxu0 %v4692_v57  ;;  %3811 = vmatprep.subr.bf16.mxu1 %v4159_v2  ;;  %v2111_v57 = vsel %vm274_vm2, %v2108_v51, %v2016_v53 }
 0x64b   :  { %2423 = vmatpush1.bf16.msra.mxu0 %v4696_v54  ;;  %3812 = vmatpush3.bf16.msra.mxu1 %v4819_v42  ;;  %v1971_v54 = vld [vmem:[%s1970_s17] sm:$0x7]  ;;  %s2258_s17 = scalar_lea.vmem [#allocation5], %s2257_s13 }
 0x64c   :  { %2424 = vmatprep.subr.bf16.mxu0 %v4700_v58  ;;  %3813 = vmatprep.subr.bf16.mxu1 %v4159_v2  ;;  %v2048_v58 = vrot.slane %v1967_v55, %v4345_v29  ;;  %v2068_v30 = vrot.slane %v1971_v54, %v4372_v40 }
 0x64f   :  { %2425 = vmatpush1.bf16.msra.mxu0 %v4704_v60  ;;  %3814 = vmatpush3.bf16.msra.mxu1 %v4825_v38  ;;  %v2114_v60 = vsel %vm278_vm3, %v2111_v57, %v2032_v56  ;;  %v2040_v56 = vrot.slane %v5071_v49, %v4409_v44 }
 0x650   :  { %2426 = vmatprep.subr.bf16.mxu0 %v4708_v18  ;;  %3815 = vmatprep.subr.bf16.mxu1 %v4159_v2  ;;  %v1988_v18 = vrot.slane %v5061_v43, %v4372_v40  ;;  %v2117_v52 = vsel %vm282_vm4, %v2114_v60, %v2048_v58  ;;  %v2113_v58 = vsel %vm274_vm2, %v2110_v47, %v2024_v32 }
 0x651   :  { %v2056_v43 = vrot.slane %v1967_v55, %v4409_v44  ;;  %v2072_v60 = vrot.slane %v1971_v54, %v4409_v44 }
 0x653   :  { %2427 = vmatpush1.bf16.msra.mxu0 %v4712_v28  ;;  %3816 = vmatpush3.bf16.msra.mxu1 %v4831_v62  ;;  %v2004_v28 = vrot.slane %v5063_v45, %v4372_v40  ;;  %v2116_v45 = vsel %vm278_vm3, %v2113_v58, %v2040_v56  ;;  %v2259_v56 = vld [vmem:[%s2258_s17] sm:$0x7] }
 0x654   :  { %2428 = vmatprep.subr.bf16.mxu0 %v4716_v21  ;;  %3817 = vmatprep.subr.bf16.mxu1 %v4159_v2  ;;  %v1975_v21 = vld [vmem:[%s1974_s18] sm:$0x7]  ;;  %v2119_v50 = vsel %vm282_vm4, %v2116_v45, %v2056_v43  ;;  %s2262_s18 = scalar_lea.vmem [#allocation5], %s2261_s15  ;;  %s2538_s15 = scalar_lea.vmem [#allocation5], %s2537_s11 }
 0x655   :  { %v2080_v16 = vrot.slane %v1975_v21, %v4345_v29  ;;  %v2109_v17 = vsel %vm270_vm1, %v1988_v18, %v2004_v28  ;;  %v2084_v19 = vrot.slane %v1975_v21, %v4372_v40  ;;  %v2088_v18 = vrot.slane %v1975_v21, %v4409_v44  ;;  %v2263_v45 = vld [vmem:[%s2262_s18] sm:$0x7]  ;;  %s3544_s18 = sld [smem:[#allocation2 + $0x209]] }
 0x656   :  { %v2112_v22 = vsel %vm274_vm2, %v2109_v17, %v2020_v41  ;;  %v2122_v28 = vsel %vm286_vm5, %v2119_v50, %v2072_v60  ;;  %v2364_v60 = vrot.slane %v2259_v56, %v4345_v29 }
 0x657   :  { %2429 = vmatpush1.bf16.msra.mxu0 %v4836_v59  ;;  %3818 = vmatpush3.bf16.msra.mxu1 %v4839_v63  ;;  %v2115_v25 = vsel %vm278_vm3, %v2112_v22, %v2036_v7  ;;  %v2125_v49 = vsel %vm290_vm6, %v2122_v28, %v2088_v18 }
 0x658   :  { %2698 = vmatprep.subr.bf16.mxu0 %v4722_v23  ;;  %3823 = vmatprep.subr.bf16.mxu1 %v4159_v2  ;;  %v2064_v23 = vrot.slane %v1971_v54, %v4345_v29  ;;  %v2118_v31 = vsel %vm282_vm4, %v2115_v25, %v2052_v24  ;;  %v5132_v24 = vld [vmem:[#allocation6 + $0xa8] ss:$12 sps:$4 sm:$0xff]   ;;  %v5135_v25 = vld [vmem:[#allocation6 + $0xb0] ss:$12 sps:$4 sm:$0xff]  }
 0x659   :  { %v2121_v33 = vsel %vm286_vm5, %v2118_v31, %v2068_v30  ;;  %v5148_v30 = vld [vmem:[#allocation6 + $0x98] ss:$12 sps:$4 sm:$0xff]   ;;  %v5158_v31 = vld [vmem:[#allocation6 + $0x80] ss:$12 sps:$4 sm:$0xff]  }
 0x65a   :  { %v2120_v20 = vsel %vm286_vm5, %v2117_v52, %v2064_v23  ;;  %v2124_v27 = vsel %vm290_vm6, %v2121_v33, %v2084_v19  ;;  %v2104_v23 = vrot.slane %v1979_v15, %v4409_v44  ;;  %v5165_v19 = vld [vmem:[#allocation6 + $0x60] ss:$12 sps:$4 sm:$0xff]   ;;  %v5181_v33 = vld [vmem:[#allocation6 + $0x30] ss:$12 sps:$4 sm:$0xff]  }
 0x65b   :  { %v2123_v10 = vsel %vm290_vm6, %v2120_v20, %v2080_v16  ;;  %v2127_v6 = vsel %vm294_vm7, %v2124_v27, %v2100_v5  ;;  %v5210_v27 = vld [vmem:[%s2246_s0] sm:$0x7]  ;;  %s2541_s0 = smul.u32 3, %s3536_s27 }
 0x65c   :  { %v2126_v35 = vsel %vm294_vm7, %v2123_v10, %v2096_v48  ;;  %v2128_v55 = vsel %vm294_vm7, %v2125_v49, %v2104_v23  ;;  %v2316_v9 = vrot.slane %v5210_v27, %v4345_v29  ;;  %v2320_v28 = vrot.slane %v5210_v27, %v4372_v40 }
 0x65d   :  { %v2380_v23 = vrot.slane %v2263_v45, %v4345_v29 }
 0x6fa   :  { %v2164_v4 = vpop.f32.mrf.mxu0  ;;  %v2205_v36 = vpop.f32.mrf.mxu1 }
 0x6fb   :  { %v2211_v61 = vadd.f32 %v2164_v4, %v2126_v35  ;;  %v2225_v41 = vadd.f32 %v4911_v0, %v2205_v36  ;;  %v5138_v35 = vld [vmem:[#allocation6 + $0x94] ss:$12 sps:$4 sm:$0xff]   ;;  %v5151_v4 = vld [vmem:[#allocation6 + $0x7c] ss:$12 sps:$4 sm:$0xff]   ;;  %v5155_v36 = vld [vmem:[#allocation6 + $0x78] ss:$12 sps:$4 sm:$0xff]  }
 0x6fc   :  { %v2166_v39 = vpop.f32.mrf.mxu0  ;;  %v3801_v13 = vpop.f32.mrf.mxu1 }
 0x6fd   :  { %v3518_v37 = vmul.f32 -1.442695, %v2211_v61  ;;  %v2218_v12 = vadd.f32 %v2166_v39, %v2127_v6  ;;  %v5161_v61 = vld [vmem:[#allocation6 + $0x64] ss:$12 sps:$4 sm:$0xff]   ;;  %v5169_v39 = vld [vmem:[#allocation6 + $0x4c] ss:$12 sps:$4 sm:$0xff]  }
 0x6fe   :  { %v2168_v26 = vpop.f32.mrf.mxu0  ;;  %v2208_v46 = vpop.f32.mrf.mxu1  ;;  %v5173_v13 = vld [vmem:[#allocation6 + $0x48] ss:$12 sps:$4 sm:$0xff]  }
 0x6ff   :  { %4000 = vpow2.f32 %v3518_v37  ;;  %v3519_v53 = vmul.f32 -1.442695, %v2218_v12  ;;  %v5177_v37 = vld [vmem:[#allocation6 + $0x34] ss:$12 sps:$4 sm:$0xff]   ;;  %v5189_v26 = vld [vmem:[#allocation6 + $0x18] ss:$12 sps:$4 sm:$0xff]  }
 0x700   :  { %v2169_v8 = vpop.f32.mrf.mxu0  ;;  %v3802_v11 = vpop.f32.mrf.mxu1  ;;  %v2251_v6 = vld [vmem:[%s2250_s14] sm:$0x7] }
 0x701   :  { %4002 = vpow2.f32 %v3519_v53  ;;  %v2255_v12 = vld [vmem:[%s2254_s16] sm:$0x7]  ;;  %v2332_v32 = vrot.slane %v2251_v6, %v4345_v29  ;;  %s2542_s16 = scalar_lea.vmem [#allocation5], %s2541_s0  ;;  %s3540_s0 = sld [smem:[#allocation2 + $0x9]] }
 0x70c   :  { %v4001_v51 = vpop.eup %4000 }
 0x70d   :  { %v2215_v57 = vadd.f32 1.0, %v4001_v51 }
 0x70e   :  { %v4003_v52 = vpop.eup %4002 }
 0x70f   :  { %4004 = vrcp.f32 %v2215_v57  ;;  %v2222_v7 = vadd.f32 1.0, %v4003_v52  ;;  %v2348_v57 = vrot.slane %v2255_v12, %v4345_v29 }
 0x71c   :  { %v4005_v16 = vpop.eup %4004 }
 0x71d   :  { %v2226_v17 = vmul.f32 %v4005_v16, %v2225_v41  ;;  %v2336_v41 = vrot.slane %v2251_v6, %v4372_v40 }
 0x71f   :  { %v2227_v20 = vadd.f32 %v2226_v17, %v2128_v55  ;;  %v2352_v17 = vrot.slane %v2255_v12, %v4372_v40 }
 0x721   :  { %4006 = vtanh.f32 %v2227_v20 }
 0x722   :  { %4008 = vrcp.f32 %v2222_v7 }
 0x72e   :  { %v4007_v54 = vpop.eup %4006 }
 0x72f   :  { %v2229_v21 = vsub.f32 %v5022_v1, %v4007_v54  ;;  %v4009_v48 = vpop.eup %4008  ;;  %v5145_v1 = vld [vmem:[#allocation6 + $0x90] ss:$12 sps:$4 sm:$0xff]  }
 0x731   :  { %v2230_v22 = vmul.f32 %v4009_v48, %v2229_v21  ;;  %v2368_v48 = vrot.slane %v2259_v56, %v4372_v40 }
 0x733   :  { %v5128_v10 = vadd.f32 %v4007_v54, %v2230_v22 }
 0x735   :  { %v2413_v15 = vpack.c.bf16 %v5128_v10, %v5128_v10 }
 0x737   :  { %2447 = vmatmul.mubr.bf16.vlgmr.msra.gmra.mxu0 %v2413_v15  ;;  %3820 = vmatmul.mubr.bf16.vlgmr.msra.gmra.mxu1 %v2413_v15 }
 0x738   :  { %2699 = vmatpush1.bf16.msra.mxu0 %v5132_v24  ;;  %3824 = vmatpush3.bf16.msra.mxu1 %v5135_v25 }
 0x739   :  { %2700 = vmatprep.subr.bf16.mxu0 %v5138_v35  ;;  %3825 = vmatprep.subr.bf16.mxu1 %v4159_v2 }
 0x73a   :  { %2730 = vmatprep.mubr.bf16.mxu0 %v4160_v3  ;;  %3839 = vmatprep.mubr.msk.bf16.mxu1 %vm4161_vm0, %v4159_v2 }
 0x73c   :  { %2701 = vmatpush1.bf16.msra.mxu0 %v5145_v1  ;;  %3826 = vmatpush3.bf16.msra.mxu1 %v5148_v30 }
 0x73d   :  { %2702 = vmatprep.subr.bf16.mxu0 %v5151_v4  ;;  %3827 = vmatprep.subr.bf16.mxu1 %v4159_v2 }
 0x740   :  { %2703 = vmatpush1.bf16.msra.mxu0 %v5155_v36  ;;  %3828 = vmatpush3.bf16.msra.mxu1 %v5158_v31 }
 0x741   :  { %2704 = vmatprep.subr.bf16.mxu0 %v5161_v61  ;;  %3829 = vmatprep.subr.bf16.mxu1 %v4159_v2 }
 0x744   :  { %2705 = vmatpush1.bf16.msra.mxu0 %v5165_v19  ;;  %3830 = vmatpush3.bf16.msra.mxu1 %v4813_v34  ;;  %v5185_v34 = vld [vmem:[#allocation6 + $0x1c] ss:$12 sps:$4 sm:$0xff]  }
 0x745   :  { %2706 = vmatprep.subr.bf16.mxu0 %v5169_v39  ;;  %3831 = vmatprep.subr.bf16.mxu1 %v4159_v2 }
 0x748   :  { %2707 = vmatpush1.bf16.msra.mxu0 %v5173_v13  ;;  %3832 = vmatpush3.bf16.msra.mxu1 %v4819_v42  ;;  %v5193_v42 = vld [vmem:[#allocation6 + $0x4] ss:$12 sps:$4 sm:$0xff]  }
 0x749   :  { %2708 = vmatprep.subr.bf16.mxu0 %v5177_v37  ;;  %3833 = vmatprep.subr.bf16.mxu1 %v4159_v2 }
 0x74c   :  { %2709 = vmatpush1.bf16.msra.mxu0 %v5181_v33  ;;  %3834 = vmatpush3.bf16.msra.mxu1 %v4825_v38  ;;  %v4086_v38 = vld [vmem:[#allocation6 + $0xac] ss:$12 sps:$4 sm:$0xff]  }
 0x74d   :  { %2710 = vmatprep.subr.bf16.mxu0 %v5185_v34  ;;  %3835 = vmatprep.subr.bf16.mxu1 %v4159_v2 }
 0x750   :  { %2711 = vmatpush1.bf16.msra.mxu0 %v5189_v26  ;;  %3836 = vmatpush3.bf16.msra.mxu1 %v4831_v62  ;;  %v5200_v62 = vld [vmem:[%s2234_s29] sm:$0x7]  ;;  %s2522_s29 = scalar_lea.vmem [#allocation5], %s2521_s2 }
 0x751   :  { %2712 = vmatprep.subr.bf16.mxu0 %v5193_v42  ;;  %3837 = vmatprep.subr.bf16.mxu1 %v4159_v2  ;;  %v2268_v46 = vrot.slane %v5200_v62, %v4345_v29  ;;  %v2272_v53 = vrot.slane %v5200_v62, %v4372_v40 }
 0x754   :  { %2713 = vmatpush1.bf16.msra.mxu0 %v4836_v59  ;;  %3838 = vmatpush3.bf16.msra.mxu1 %v4839_v63  ;;  %v5202_v59 = vld [vmem:[%s2238_s30] sm:$0x7]  ;;  %s2533_s30 = smul.u32 3, %s3534_s23  ;;  %s3547_s23 = sld [smem:[#allocation2 + $0x389]] }
 0x755   :  { %2982 = vmatprep.subr.bf16.mxu0 %v4086_v38  ;;  %3843 = vmatprep.subr.bf16.mxu1 %v4159_v2  ;;  %v5204_v63 = vld [vmem:[%s2242_s10] sm:$0x7]  ;;  %v2284_v5 = vrot.slane %v5202_v59, %v4345_v29  ;;  %v2288_v51 = vrot.slane %v5202_v59, %v4372_v40  ;;  %s3537_s10 = sld [smem:[#allocation2 + $0x388]] }
 0x756   :  { %v2300_v8 = vrot.slane %v5204_v63, %v4345_v29  ;;  %v2304_v43 = vrot.slane %v5204_v63, %v4372_v40  ;;  %s2534_s13 = scalar_lea.vmem [#allocation5], %s2533_s30  ;;  %s2826_s30 = scalar_lea.vmem [#allocation5], %s2825_s26 }
 0x757   :  { %v2392_v11 = vsel %vm270_vm1, %v2268_v46, %v2284_v5  ;;  %v2393_v50 = vsel %vm270_vm1, %v2272_v53, %v2288_v51  ;;  %v2276_v53 = vrot.slane %v5200_v62, %v4409_v44  ;;  %v2292_v51 = vrot.slane %v5202_v59, %v4409_v44 }
 0x758   :  { %v2395_v14 = vsel %vm274_vm2, %v2392_v11, %v2300_v8  ;;  %v2396_v49 = vsel %vm274_vm2, %v2393_v50, %v2304_v43  ;;  %v2384_v11 = vrot.slane %v2263_v45, %v4372_v40  ;;  %v2340_v62 = vrot.slane %v2251_v6, %v4409_v44 }
 0x759   :  { %v2398_v47 = vsel %vm278_vm3, %v2395_v14, %v2316_v9  ;;  %v2399_v16 = vsel %vm278_vm3, %v2396_v49, %v2320_v28  ;;  %v2394_v43 = vsel %vm270_vm1, %v2276_v53, %v2292_v51  ;;  %v2356_v49 = vrot.slane %v2255_v12, %v4409_v44 }
 0x75a   :  { %v2401_v58 = vsel %vm282_vm4, %v2398_v47, %v2332_v32  ;;  %v2402_v54 = vsel %vm282_vm4, %v2399_v16, %v2336_v41  ;;  %v2388_v16 = vrot.slane %v2263_v45, %v4409_v44 }
 0x75b   :  { %v2404_v18 = vsel %vm286_vm5, %v2401_v58, %v2348_v57  ;;  %v2405_v46 = vsel %vm286_vm5, %v2402_v54, %v2352_v17  ;;  %v2308_v58 = vrot.slane %v5204_v63, %v4409_v44  ;;  %s2545_s14 = smul.u32 3, %s3537_s10 }
 0x75c   :  { %v2407_v52 = vsel %vm290_vm6, %v2404_v18, %v2364_v60  ;;  %v2408_v9 = vsel %vm290_vm6, %v2405_v46, %v2368_v48  ;;  %v2324_v18 = vrot.slane %v5210_v27, %v4409_v44 }
 0x75d   :  { %v2410_v55 = vsel %vm294_vm7, %v2407_v52, %v2380_v23  ;;  %v2411_v47 = vsel %vm294_vm7, %v2408_v9, %v2384_v11  ;;  %v2397_v23 = vsel %vm274_vm2, %v2394_v43, %v2308_v58  ;;  %v2372_v52 = vrot.slane %v2259_v56, %v4409_v44  ;;  %s2546_s17 = scalar_lea.vmem [#allocation5], %s2545_s14  ;;  %s3542_s14 = sld [smem:[#allocation2 + $0x109]] }
 0x75e   :  { %v2400_v59 = vsel %vm278_vm3, %v2397_v23, %v2324_v18 }
 0x75f   :  { %v2403_v63 = vsel %vm282_vm4, %v2400_v59, %v2340_v62 }
 0x760   :  { %v2406_v41 = vsel %vm286_vm5, %v2403_v63, %v2356_v49 }
 0x761   :  { %v2409_v27 = vsel %vm290_vm6, %v2406_v41, %v2372_v52 }
 0x762   :  { %v2412_v6 = vsel %vm294_vm7, %v2409_v27, %v2388_v16 }
 0x763   :  { %s2809_s19 = smul.u32 3, %s3542_s14 }
 0x765   :  { %s2810_s2 = scalar_lea.vmem [#allocation5], %s2809_s19 }
 0x7f7   :  { %v2448_v20 = vpop.f32.mrf.mxu0  ;;  %v2489_v7 = vpop.f32.mrf.mxu1 }
 0x7f8   :  { %v2495_v21 = vadd.f32 %v2448_v20, %v2410_v55  ;;  %v2509_v17 = vadd.f32 %v4911_v0, %v2489_v7  ;;  %v4088_v0 = vld [vmem:[#allocation6 + $0x50] ss:$12 sps:$4 sm:$0xff]  }
 0x7f9   :  { %v2450_v22 = vpop.f32.mrf.mxu0  ;;  %v3821_v15 = vpop.f32.mrf.mxu1 }
 0x7fa   :  { %v3528_v38 = vmul.f32 -1.442695, %v2495_v21  ;;  %v2502_v57 = vadd.f32 %v2450_v22, %v2411_v47 }
 0x7fb   :  { %v2452_v5 = vpop.f32.mrf.mxu0  ;;  %v2492_v8 = vpop.f32.mrf.mxu1 }
 0x7fc   :  { %4010 = vpow2.f32 %v3528_v38  ;;  %v3529_v60 = vmul.f32 -1.442695, %v2502_v57  ;;  %v2543_v5 = vld [vmem:[%s2542_s16] sm:$0x7]  ;;  %s2801_s16 = smul.u32 3, %s3540_s0 }
 0x7fd   :  { %v2453_v14 = vpop.f32.mrf.mxu0  ;;  %v3822_v32 = vpop.f32.mrf.mxu1  ;;  %v2652_v63 = vrot.slane %v2543_v5, %v4372_v40 }
 0x7fe   :  { %4012 = vpow2.f32 %v3529_v60  ;;  %v2547_v14 = vld [vmem:[%s2546_s17] sm:$0x7]  ;;  %v2648_v32 = vrot.slane %v2543_v5, %v4345_v29  ;;  %s2802_s22 = scalar_lea.vmem [#allocation5], %s2801_s16 }
 0x7ff   :  { %v2664_v57 = vrot.slane %v2547_v14, %v4345_v29 }
 0x809   :  { %v4011_v50 = vpop.eup %4010 }
 0x80a   :  { %v2499_v28 = vadd.f32 1.0, %v4011_v50 }
 0x80b   :  { %v4013_v55 = vpop.eup %4012 }
 0x80c   :  { %4014 = vrcp.f32 %v2499_v28  ;;  %v2506_v48 = vadd.f32 1.0, %v4013_v55 }
 0x819   :  { %v4015_v20 = vpop.eup %4014 }
 0x81a   :  { %v2510_v54 = vmul.f32 %v4015_v20, %v2509_v17  ;;  %v2668_v20 = vrot.slane %v2547_v14, %v4372_v40 }
 0x81c   :  { %v2511_v21 = vadd.f32 %v2510_v54, %v2412_v6 }
 0x81e   :  { %4016 = vtanh.f32 %v2511_v21 }
 0x81f   :  { %4018 = vrcp.f32 %v2506_v48 }
 0x82b   :  { %v4017_v12 = vpop.eup %4016 }
 0x82c   :  { %v2513_v56 = vsub.f32 %v5128_v10, %v4017_v12  ;;  %v4019_v22 = vpop.eup %4018  ;;  %v4089_v10 = vld [vmem:[#allocation6 + $0x38] ss:$12 sps:$4 sm:$0xff]  }
 0x82e   :  { %v2514_v15 = vmul.f32 %v4019_v22, %v2513_v56 }
 0x830   :  { %v5267_v38 = vadd.f32 %v4017_v12, %v2514_v15 }
 0x832   :  { %v2697_v45 = vpack.c.bf16 %v5267_v38, %v5267_v38 }
 0x834   :  { %2731 = vmatmul.mubr.bf16.vlgmr.msra.gmra.mxu0 %v2697_v45  ;;  %3840 = vmatmul.mubr.bf16.vlgmr.msra.gmra.mxu1 %v2697_v45 }
 0x835   :  { %2983 = vmatpush1.bf16.msra.mxu0 %v5132_v24  ;;  %3844 = vmatpush3.bf16.msra.mxu1 %v5135_v25  ;;  %v4090_v24 = vld [vmem:[#allocation6 + $0x20] ss:$12 sps:$4 sm:$0xff]  }
 0x836   :  { %2984 = vmatprep.subr.bf16.mxu0 %v5138_v35  ;;  %3845 = vmatprep.subr.bf16.mxu1 %v4159_v2  ;;  %v4091_v25 = vld [vmem:[#allocation6] ss:$12 sps:$4 sm:$0xff]   ;;  %v4092_v35 = vld [vmem:[#allocation6 + $0x8] ss:$12 sps:$4 sm:$0xff]  }
 0x837   :  { %3014 = vmatprep.mubr.bf16.mxu0 %v4160_v3  ;;  %3859 = vmatprep.mubr.msk.bf16.mxu1 %vm4161_vm0, %v4159_v2  ;;  %v4087_v3 = vld [vmem:[#allocation6 + $0x68] ss:$12 sps:$4 sm:$0xff]  }
 0x839   :  { %2985 = vmatpush1.bf16.msra.mxu0 %v5145_v1  ;;  %3846 = vmatpush3.bf16.msra.mxu1 %v5148_v30  ;;  %v5300_v1 = vld [vmem:[%s2518_s28] sm:$0x7]  ;;  %s2829_s28 = smul.u32 3, %s3547_s23 }
 0x83a   :  { %2986 = vmatprep.subr.bf16.mxu0 %v5151_v4  ;;  %3847 = vmatprep.subr.bf16.mxu1 %v4159_v2  ;;  %v5302_v30 = vld [vmem:[%s2522_s29] sm:$0x7]  ;;  %v2556_v7 = vrot.slane %v5300_v1, %v4372_v40  ;;  %v2560_v12 = vrot.slane %v5300_v1, %v4409_v44 }
 0x83b   :  { %v5304_v4 = vld [vmem:[%s2526_s9] sm:$0x7]  ;;  %v2572_v46 = vrot.slane %v5302_v30, %v4372_v40  ;;  %v2576_v56 = vrot.slane %v5302_v30, %v4409_v44  ;;  %s2830_s9 = scalar_lea.vmem [#allocation5], %s2829_s28 }
 0x83c   :  { %v2588_v9 = vrot.slane %v5304_v4, %v4372_v40  ;;  %v2592_v15 = vrot.slane %v5304_v4, %v4409_v44 }
 0x83d   :  { %2987 = vmatpush1.bf16.msra.mxu0 %v5155_v36  ;;  %3848 = vmatpush3.bf16.msra.mxu1 %v5158_v31  ;;  %v2552_v36 = vrot.slane %v5300_v1, %v4345_v29  ;;  %v2568_v31 = vrot.slane %v5302_v30, %v4345_v29  ;;  %v2677_v47 = vsel %vm270_vm1, %v2556_v7, %v2572_v46 }
 0x83e   :  { %2988 = vmatprep.subr.bf16.mxu0 %v5161_v61  ;;  %3849 = vmatprep.subr.bf16.mxu1 %v4159_v2  ;;  %v5310_v61 = vld [vmem:[%s2530_s12] sm:$0x7]  ;;  %v2680_v58 = vsel %vm274_vm2, %v2677_v47, %v2588_v9  ;;  %v2678_v45 = vsel %vm270_vm1, %v2560_v12, %v2576_v56  ;;  %v3933_v47 = vld [vmem:[%s5496_s6 + $0x28] sm:$0xff]  }
 0x83f   :  { %v2604_v51 = vrot.slane %v5310_v61, %v4372_v40 }
 0x841   :  { %2989 = vmatpush1.bf16.msra.mxu0 %v5165_v19  ;;  %3850 = vmatpush3.bf16.msra.mxu1 %v4087_v3  ;;  %v2584_v19 = vrot.slane %v5304_v4, %v4345_v29  ;;  %v2683_v50 = vsel %vm278_vm3, %v2680_v58, %v2604_v51  ;;  %v3937_v51 = vld [vmem:[%s5495_s5] sm:$0xff]  }
 0x842   :  { %2990 = vmatprep.subr.bf16.mxu0 %v5169_v39  ;;  %3851 = vmatprep.subr.bf16.mxu1 %v4159_v2  ;;  %v2676_v39 = vsel %vm270_vm1, %v2552_v36, %v2568_v31  ;;  %v2656_v36 = vrot.slane %v2543_v5, %v4409_v44 }
 0x845   :  { %2991 = vmatpush1.bf16.msra.mxu0 %v5173_v13  ;;  %3852 = vmatpush3.bf16.msra.mxu1 %v4088_v0  ;;  %v2535_v13 = vld [vmem:[%s2534_s13] sm:$0x7]  ;;  %s3541_s13 = sld [smem:[#allocation2 + $0x89]] }
 0x846   :  { %2992 = vmatprep.subr.bf16.mxu0 %v5177_v37  ;;  %3853 = vmatprep.subr.bf16.mxu1 %v4159_v2  ;;  %v2600_v37 = vrot.slane %v5310_v61, %v4345_v29  ;;  %v2620_v60 = vrot.slane %v2535_v13, %v4372_v40 }
 0x848   :  { %v2686_v59 = vsel %vm282_vm4, %v2683_v50, %v2620_v60  ;;  %v3936_v60 = vld [vmem:[%s5496_s6 + $0x10] sm:$0xff]   ;;  %v3938_v50 = vld [vmem:[%s5496_s6 + $0x8] sm:$0xff]  }
 0x849   :  { %2993 = vmatpush1.bf16.msra.mxu0 %v5181_v33  ;;  %3854 = vmatpush3.bf16.msra.mxu1 %v4089_v10  ;;  %v2679_v33 = vsel %vm274_vm2, %v2676_v39, %v2584_v19  ;;  %v2608_v10 = vrot.slane %v5310_v61, %v4409_v44  ;;  %v2672_v19 = vrot.slane %v2547_v14, %v4409_v44 }
 0x84a   :  { %2994 = vmatprep.subr.bf16.mxu0 %v5185_v34  ;;  %3855 = vmatprep.subr.bf16.mxu1 %v4159_v2  ;;  %v2539_v34 = vld [vmem:[%s2538_s15] sm:$0x7]  ;;  %s3543_s15 = sld [smem:[#allocation2 + $0x189]] }
 0x84b   :  { %v2632_v8 = vrot.slane %v2539_v34, %v4345_v29  ;;  %v2636_v28 = vrot.slane %v2539_v34, %v4372_v40  ;;  %v2640_v30 = vrot.slane %v2539_v34, %v4409_v44  ;;  %s2805_s17 = smul.u32 3, %s3541_s13 }
 0x84d   :  { %2995 = vmatpush1.bf16.msra.mxu0 %v5189_v26  ;;  %3856 = vmatpush3.bf16.msra.mxu1 %v4090_v24  ;;  %v2616_v26 = vrot.slane %v2535_v13, %v4345_v29  ;;  %v2689_v27 = vsel %vm286_vm5, %v2686_v59, %v2636_v28  ;;  %v5417_v28 = vld [vmem:[%s2802_s22] sm:$0x7]  ;;  %s2806_s1 = scalar_lea.vmem [#allocation5], %s2805_s17 }
 0x84e   :  { %2996 = vmatprep.subr.bf16.mxu0 %v5193_v42  ;;  %3857 = vmatprep.subr.bf16.mxu1 %v4159_v2  ;;  %v2682_v42 = vsel %vm278_vm3, %v2679_v33, %v2600_v37  ;;  %v2692_v6 = vsel %vm290_vm6, %v2689_v27, %v2652_v63  ;;  %v5367_v37 = vld [vmem:[%s5493_s3] ss:$0 sm:$0xff]  ;;  %s3545_s3 = sld [smem:[#allocation2 + $0x289]] }
 0x84f   :  { %v2685_v11 = vsel %vm282_vm4, %v2682_v42, %v2616_v26  ;;  %v2695_v48 = vsel %vm294_vm7, %v2692_v6, %v2668_v20  ;;  %v2840_v6 = vrot.slane %v5417_v28, %v4372_v40 }
 0x850   :  { %v2688_v53 = vsel %vm286_vm5, %v2685_v11, %v2632_v8  ;;  %s2813_s20 = smul.u32 3, %s3543_s15 }
 0x851   :  { %2997 = vmatpush1.bf16.msra.mxu0 %v4091_v25  ;;  %3858 = vmatpush3.bf16.msra.mxu1 %v4092_v35  ;;  %v2691_v43 = vsel %vm290_vm6, %v2688_v53, %v2648_v32  ;;  %v2681_v25 = vsel %vm274_vm2, %v2678_v45, %v2592_v15  ;;  %v2624_v35 = vrot.slane %v2535_v13, %v4409_v44  ;;  %v3931_v32 = vld [vmem:[%s5496_s6 + $0x38] sm:$0xff]   ;;  %v3934_v53 = vld [vmem:[%s5496_s6 + $0x20] sm:$0xff]  }
 0x852   :  { %3869 = vmatprep.subr.bf16.mxu1 %v4159_v2  ;;  %3863 = vmatprep.subr.bf16.mxu0 %v4159_v2  ;;  %v2694_v18 = vsel %vm294_vm7, %v2691_v43, %v2664_v57  ;;  %v2684_v1 = vsel %vm278_vm3, %v2681_v25, %v2608_v10  ;;  %v3084_v57 = vld [vmem:[%s5494_s4] sm:$0xff]  ;;  %v3935_v43 = vld [vmem:[%s5496_s6 + $0x18] sm:$0xff]   ;;  %s2814_s25 = scalar_lea.vmem [#allocation5], %s2813_s20 }
 0x853   :  { %v2687_v4 = vsel %vm282_vm4, %v2684_v1, %v2624_v35  ;;  %v3085_v58 = vpack.c.bf16 %v3084_v57, %v3084_v57 }
 0x854   :  { %v2690_v31 = vsel %vm286_vm5, %v2687_v4, %v2640_v30  ;;  %s2821_s24 = smul.u32 3, %s3545_s3 }
 0x855   :  { %v2693_v61 = vsel %vm290_vm6, %v2690_v31, %v2656_v36 }
 0x856   :  { %v2696_v34 = vsel %vm294_vm7, %v2693_v61, %v2672_v19  ;;  %s2822_s29 = scalar_lea.vmem [#allocation5], %s2821_s24 }
 0x8f4   :  { %v2732_v23 = vpop.f32.mrf.mxu0  ;;  %v2773_v62 = vpop.f32.mrf.mxu1 }
 0x8f5   :  { %v2779_v49 = vadd.f32 %v2732_v23, %v2694_v18  ;;  %v2793_v13 = vadd.f32 %v5367_v37, %v2773_v62  ;;  %v3939_v18 = vld [vmem:[%s5496_s6] sm:$0xff]   ;;  %v2836_v62 = vrot.slane %v5417_v28, %v4345_v29 }
 0x8f6   :  { %v2734_v52 = vpop.f32.mrf.mxu0  ;;  %v3841_v41 = vpop.f32.mrf.mxu1  ;;  %v5419_v23 = vld [vmem:[%s2806_s1] sm:$0x7] }
 0x8f7   :  { %v3538_v16 = vmul.f32 -1.442695, %v2779_v49  ;;  %v2786_v22 = vadd.f32 %v2734_v52, %v2695_v48  ;;  %v2852_v59 = vrot.slane %v5419_v23, %v4345_v29  ;;  %v5427_v49 = vld [vmem:[%s2814_s25] sm:$0x7] }
 0x8f8   :  { %v2736_v55 = vpop.f32.mrf.mxu0  ;;  %v2776_v17 = vpop.f32.mrf.mxu1  ;;  %v2892_v57 = vrot.slane %v5427_v49, %v4409_v44 }
 0x8f9   :  { %4020 = vpow2.f32 %v3538_v16  ;;  %v3539_v3 = vmul.f32 -1.442695, %v2786_v22  ;;  %v2960_v52 = vsel %vm270_vm1, %v2836_v62, %v2852_v59  ;;  %v2884_v16 = vrot.slane %v5427_v49, %v4345_v29  ;;  %v2823_v55 = vld [vmem:[%s2822_s29] sm:$0x7] }
 0x8fa   :  { %v2737_v54 = vpop.f32.mrf.mxu0  ;;  %v3842_v21 = vpop.f32.mrf.mxu1  ;;  %v2916_v48 = vrot.slane %v2823_v55, %v4345_v29  ;;  %v2831_v22 = vld [vmem:[%s2830_s9] sm:$0x7]  ;;  %v2920_v4 = vrot.slane %v2823_v55, %v4372_v40 }
 0x8fb   :  { %4022 = vpow2.f32 %v3539_v3  ;;  %v2856_v54 = vrot.slane %v5419_v23, %v4372_v40  ;;  %v2827_v21 = vld [vmem:[%s2826_s30] sm:$0x7]  ;;  %v2948_v10 = vrot.slane %v2831_v22, %v4345_v29  ;;  %v2956_v62 = vrot.slane %v2831_v22, %v4409_v44 }
 0x8fc   :  { %v2932_v15 = vrot.slane %v2827_v21, %v4345_v29 }
 0x8fd   :  { %v2961_v45 = vsel %vm270_vm1, %v2840_v6, %v2856_v54 }
 0x906   :  { %v4021_v0 = vpop.eup %4020 }
 0x907   :  { %v2783_v24 = vadd.f32 1.0, %v4021_v0  ;;  %v2888_v0 = vrot.slane %v5427_v49, %v4372_v40 }
 0x908   :  { %v4023_v39 = vpop.eup %4022 }
 0x909   :  { %4024 = vrcp.f32 %v2783_v24  ;;  %v2790_v7 = vadd.f32 1.0, %v4023_v39  ;;  %v2936_v39 = vrot.slane %v2827_v21, %v4372_v40 }
 0x916   :  { %v4025_v33 = vpop.eup %4024 }
 0x917   :  { %v2794_v26 = vmul.f32 %v4025_v33, %v2793_v13 }
 0x919   :  { %v2795_v42 = vadd.f32 %v2794_v26, %v2696_v34 }
 0x91b   :  { %4026 = vtanh.f32 %v2795_v42 }
 0x91c   :  { %4028 = vrcp.f32 %v2790_v7  ;;  %v2952_v7 = vrot.slane %v2831_v22, %v4372_v40 }
 0x928   :  { %v4027_v46 = vpop.eup %4026 }
 0x929   :  { %v2797_v5 = vsub.f32 %v5267_v38, %v4027_v46  ;;  %v4029_v8 = vpop.eup %4028  ;;  %v3932_v38 = vld [vmem:[%s5496_s6 + $0x30] sm:$0xff]   ;;  %s2817_s6 = smul.u32 3, %s3544_s18 }
 0x92b   :  { %v2798_v11 = vmul.f32 %v4029_v8, %v2797_v5  ;;  %s2818_s27 = scalar_lea.vmem [#allocation5], %s2817_s6 }
 0x92c   :  { %v2819_v41 = vld [vmem:[%s2818_s27] sm:$0x7] }
 0x92d   :  { %v5372_v9 = vadd.f32 %v4027_v46, %v2798_v11  ;;  %v2900_v17 = vrot.slane %v2819_v41, %v4345_v29  ;;  %v2904_v35 = vrot.slane %v2819_v41, %v4372_v40 }
 0x92f   :  { %v2981_v14 = vpack.c.bf16 %v5372_v9, %v5372_v9 }
 0x931   :  { %3015 = vmatmul.mubr.bf16.vlgmr.msra.gmra.mxu0 %v2981_v14  ;;  %3860 = vmatmul.mubr.bf16.vlgmr.msra.gmra.mxu1 %v2981_v14  ;;  %v2844_v14 = vrot.slane %v5417_v28, %v4409_v44 }
 0x932   :  { %3865 = vmatprep.mubr.msk.bf16.mxu0 %vm4161_vm0, %v4159_v2  ;;  %3885 = vmatprep.mubr.msk.bf16.mxu1 %vm4161_vm0, %v4159_v2 }
 0x933   :  { %3870 = vmatpush3.bf16.msra.mxu1 %v3931_v32  ;;  %3864 = vmatpush3.bf16.msra.mxu0 %v3937_v51  ;;  %v2860_v32 = vrot.slane %v5419_v23, %v4409_v44  ;;  %v2940_v23 = vrot.slane %v2827_v21, %v4409_v44 }
 0x934   :  { %3871 = vmatprep.subr.bf16.mxu1 %v4159_v2 }
 0x937   :  { %3872 = vmatpush3.bf16.msra.mxu1 %v3932_v38 }
 0x938   :  { %3873 = vmatprep.subr.bf16.mxu1 %v4159_v2 }
 0x939   :  { %3866 = vmatmul.mubr.msk.bf16.vlgmr.msra.gmra.mxu0 %vm3094_vm8, %v3085_v58 }
 0x93b   :  { %3874 = vmatpush3.bf16.msra.mxu1 %v3933_v47 }
 0x93c   :  { %3875 = vmatprep.subr.bf16.mxu1 %v4159_v2 }
 0x93f   :  { %3876 = vmatpush3.bf16.msra.mxu1 %v3934_v53  ;;  %v2962_v53 = vsel %vm270_vm1, %v2844_v14, %v2860_v32 }
 0x940   :  { %3877 = vmatprep.subr.bf16.mxu1 %v4159_v2 }
 0x943   :  { %3878 = vmatpush3.bf16.msra.mxu1 %v3935_v43 }
 0x944   :  { %3879 = vmatprep.subr.bf16.mxu1 %v4159_v2 }
 0x947   :  { %3880 = vmatpush3.bf16.msra.mxu1 %v3936_v60  ;;  %v2908_v60 = vrot.slane %v2819_v41, %v4409_v44 }
 0x948   :  { %3881 = vmatprep.subr.bf16.mxu1 %v4159_v2 }
 0x94b   :  { %3882 = vmatpush3.bf16.msra.mxu1 %v3938_v50 }
 0x94c   :  { %3883 = vmatprep.subr.bf16.mxu1 %v4159_v2  ;;  %v5421_v2 = vld [vmem:[%s2810_s2] sm:$0x7] }
 0x94d   :  { %v2868_v63 = vrot.slane %v5421_v2, %v4345_v29  ;;  %v2872_v56 = vrot.slane %v5421_v2, %v4372_v40  ;;  %v2876_v47 = vrot.slane %v5421_v2, %v4409_v44 }
 0x94f   :  { %3884 = vmatpush3.bf16.msra.mxu1 %v3939_v18  ;;  %v2963_v27 = vsel %vm274_vm2, %v2960_v52, %v2868_v63  ;;  %v2964_v24 = vsel %vm274_vm2, %v2961_v45, %v2872_v56  ;;  %v2965_v43 = vsel %vm274_vm2, %v2962_v53, %v2876_v47  ;;  %v2924_v18 = vrot.slane %v2823_v55, %v4409_v44 }
 0x950   :  { %v2966_v20 = vsel %vm278_vm3, %v2963_v27, %v2884_v16  ;;  %v2967_v1 = vsel %vm278_vm3, %v2964_v24, %v2888_v0  ;;  %v2968_v50 = vsel %vm278_vm3, %v2965_v43, %v2892_v57 }
 0x951   :  { %v2969_v12 = vsel %vm282_vm4, %v2966_v20, %v2900_v17  ;;  %v2970_v19 = vsel %vm282_vm4, %v2967_v1, %v2904_v35  ;;  %v2971_v28 = vsel %vm282_vm4, %v2968_v50, %v2908_v60 }
 0x952   :  { %v2972_v3 = vsel %vm286_vm5, %v2969_v12, %v2916_v48  ;;  %v2973_v34 = vsel %vm286_vm5, %v2970_v19, %v2920_v4  ;;  %v2974_v2 = vsel %vm286_vm5, %v2971_v28, %v2924_v18 }
 0x953   :  { %v2975_v25 = vsel %vm290_vm6, %v2972_v3, %v2932_v15  ;;  %v2976_v46 = vsel %vm290_vm6, %v2973_v34, %v2936_v39  ;;  %v2977_v59 = vsel %vm290_vm6, %v2974_v2, %v2940_v23  ;;  %v3560_v15 = vld [vmem:[%s5497_s7] ss:$0 sm:$0xff] }
 0x954   :  { %v2978_v30 = vsel %vm294_vm7, %v2975_v25, %v2948_v10  ;;  %v2979_v11 = vsel %vm294_vm7, %v2976_v46, %v2952_v7  ;;  %v2980_v41 = vsel %vm294_vm7, %v2977_v59, %v2956_v62 }
 0x9f1   :  { %v3016_v36 = vpop.f32.mrf.mxu0  ;;  %v3057_v31 = vpop.f32.mrf.mxu1 }
 0x9f2   :  { %v3063_v61 = vadd.f32 %v3016_v36, %v2978_v30  ;;  %v3077_v63 = vadd.f32 %v5367_v37, %v3057_v31 }
 0x9f3   :  { %v3018_v29 = vpop.f32.mrf.mxu0  ;;  %v3861_v13 = vpop.f32.mrf.mxu1 }
 0x9f4   :  { %v3548_v33 = vmul.f32 -1.442695, %v3063_v61  ;;  %v3070_v38 = vadd.f32 %v3018_v29, %v2979_v11 }
 0x9f5   :  { %v3020_v26 = vpop.f32.mrf.mxu0  ;;  %v3060_v42 = vpop.f32.mrf.mxu1 }
 0x9f6   :  { %4030 = vpow2.f32 %v3548_v33  ;;  %v3549_v51 = vmul.f32 -1.442695, %v3070_v38 }
 0x9f7   :  { %v3021_v5 = vpop.f32.mrf.mxu0  ;;  %v3862_v8 = vpop.f32.mrf.mxu1 }
 0x9f8   :  { %4032 = vpow2.f32 %v3549_v51 }
 0x9f9   :  { %v3132_v48 = vpop.f32.mrf.mxu0 }
 0x9fb   :  { %v3867_v12 = vpop.f32.mrf.mxu0 }
 0x9fd   :  { %v3135_v56 = vpop.f32.mrf.mxu0 }
 0x9ff   :  { %v3868_v37 = vpop.f32.mrf.mxu0 }
 0xa03   :  { %v4031_v40 = vpop.eup %4030 }
 0xa04   :  { %v3067_v58 = vadd.f32 1.0, %v4031_v40 }
 0xa05   :  { %v4033_v49 = vpop.eup %4032 }
 0xa06   :  { %4034 = vrcp.f32 %v3067_v58  ;;  %v3074_v17 = vadd.f32 1.0, %v4033_v49 }
 0xa13   :  { %v4035_v52 = vpop.eup %4034 }
 0xa14   :  { %v3078_v16 = vmul.f32 %v4035_v52, %v3077_v63 }
 0xa16   :  { %v3079_v27 = vadd.f32 %v3078_v16, %v2980_v41 }
 0xa18   :  { %4036 = vtanh.f32 %v3079_v27 }
 0xa19   :  { %4038 = vrcp.f32 %v3074_v17 }
 0xa25   :  { %v4037_v55 = vpop.eup %4036 }
 0xa26   :  { %v3081_v20 = vsub.f32 %v5372_v9, %v4037_v55  ;;  %v4039_v6 = vpop.eup %4038 }
 0xa28   :  { %v3082_v54 = vmul.f32 %v4039_v6, %v3081_v20 }
 0xa2a   :  { %v3083_v21 = vadd.f32 %v4037_v55, %v3082_v54 }
 0xa2c   :  { %v3138_v44 = vpack.c.bf16 %v3083_v21, %v3083_v21 }
 0xa2e   :  { %3886 = vmatmul.mubr.bf16.vlgmr.msra.gmra.mxu1 %v3138_v44 }
 0xaee   :  { %v3237_v22 = vpop.f32.mrf.mxu1 }
 0xaef   :  { %v3238_v45 = vadd.f32 %v3237_v22, %v3132_v48 }
 0xaf0   :  { %v3887_v3 = vpop.f32.mrf.mxu1 }
 0xaf1   :  { %v3250_v0 = vadd.f32 %v3560_v15, %v3238_v45 }
 0xaf2   :  { %v3240_v10 = vpop.f32.mrf.mxu1 }
 0xaf3   :  { %v3561_v24 = vmul.f32 -1.442695, %v3250_v0 }
 0xaf4   :  { %v3888_v9 = vpop.f32.mrf.mxu1 }
 0xaf5   :  { %4040 = vpow2.f32 %v3561_v24 }
 0xb02   :  { %v4041_v25 = vpop.eup %4040 }
 0xb03   :  { %v3254_v35 = vadd.f32 1.0, %v4041_v25 }
 0xb05   :  { %4042 = vrcp.f32 %v3254_v35 }
 0xb12   :  { %v4043_v1 = vpop.eup %4042 }
 0xb13   :  { %3258 = vst.msk [vmem:[%s5498_s8] sm:$0xff] %vm3257_vm9, %v4043_v1 }
 0xb14   :  { %3263 = vsyncpa [#allocation3], 1 }
 0xb15   :  { %3264 = vsyncpa [#allocation7], 1 }
 0xb16   :  { %3265 = vsyncpa [#allocation4], 1 }

</bundles_post_ra>
